<compile_context>
chip_gen: v6e
topology: v6e:2x2x1
jax: 0.10.0
libtpu: 0.0.40
codegen_flags: <defaults>
</compile_context>

<pallas_src>
from functools import partial

import numpy as np
import jax
import jax.numpy as jnp
from jax.experimental import pallas as pl
from jax.experimental.pallas import tpu as pltpu

K_MODES = 12  # nn.Parameter(torch.zeros(12))


# --------------------------------------------------------------------------- #
# Kernel 1: aberration product + circular-aperture phase + (precomputed) lens*aperture
# --------------------------------------------------------------------------- #
def _aberration_lens_kernel(coeffs_ref, modes_ref, fre_ref, fim_ref,
                            lre_ref, lim_ref,
                            ore_ref, oim_ref, phase_ref,
                            *, tm, step, half, r2_max):
    # aberration = prod_k exp(1j*c_k*Z_k) == exp(1j * sum_k c_k*Z_k)   (Z_k real)
    # Modes may be bf16 in HBM; upcast to f32 before the multiply-add (v5e-safe).
    phase_sum = coeffs_ref[0] * modes_ref[0].astype(jnp.float32)
    for k in range(1, K_MODES):
        phase_sum = phase_sum + coeffs_ref[k] * modes_ref[k].astype(jnp.float32)
    ab_re = jnp.cos(phase_sum)
    ab_im = jnp.sin(phase_sum)

    fre = fre_ref[...]
    fim = fim_ref[...]
    # field = field * aberration   (complex multiply)
    fr = fre * ab_re - fim * ab_im
    fi = fre * ab_im + fim * ab_re

    # CircularAperture mask computed in-kernel (no HBM plane): r^2 <= R^2 on the
    # original centered grid, with the global row index = program_id * tm + local row.
    shape = fre.shape
    row = jax.lax.broadcasted_iota(jnp.int32, shape, 0) + pl.program_id(0) * tm
    col = jax.lax.broadcasted_iota(jnp.int32, shape, 1)
    y = (row.astype(jnp.float32) - half) * step
    x = (col.astype(jnp.float32) - half) * step
    inside = (x * x + y * y) <= r2_max
    # aberrated_SLM_phase = Phase(CircularAperture(field)); 0.0 outside the aperture.
    phase_ref[...] = jnp.where(inside, jnp.arctan2(fi, fr), 0.0)

    # Thin lens + smooth-edge aperture, both static per config and precomputed on the
    # host as a single complex transmission plane (lre + 1j*lim) = exp(-1j*k*r^2/2f1)*T(r).
    lre = lre_ref[...]
    lim = lim_ref[...]
    ore_ref[...] = fr * lre - fi * lim
    oim_ref[...] = fr * lim + fi * lre


def _vmem_budget():
    """Generation-aware (double-buffered working-set budget, vmem_limit_bytes)."""
    cap = 64 << 20
    try:
        info = pltpu.get_tpu_info()
        cap = int(getattr(info, "vmem_capacity_bytes", cap))
    except Exception:
        pass
    if cap <= (64 << 20):           # v7x-class: 64 MiB VMEM per TensorCore
        return 40 << 20, 48 << 20
    return 96 << 20, 110 << 20      # v5e / v6e: 128 MiB VMEM


def _pick_tm(n, budget, bytes_per_pixel):
    """Row-tile height for kernel 1 (multiple of 16 for bf16 sublane packing)."""
    def fits(t):
        return 2 * bytes_per_pixel * t * n <= budget   # double-buffered working set

    if fits(n):
        # Whole field fits double-buffered. Still use >= 2 grid steps so the
        # "parallel" axis can shard across both v7x TensorCores and input DMA /
        # output writeback overlap compute (small overlap win on v5e/v6e too).
        if n % 32 == 0:
            return n // 2
        return n

    # Search tm downward in multiples of 16; prefer divisors of n (unmasked stores),
    # otherwise fall back to the largest fitting tile with a cdiv grid.
    best = None
    t = (n // 16) * 16
    while t >= 16:
        if fits(t):
            if n % t == 0:
                return t
            if best is None:
                best = t
        t -= 16
    return best if best is not None else min(n, 16)


def aberration_lens_aperture(coeffs, modes, fre, fim, lre, lim, *,
                             step, half, r2_max, tm=None):
    n = fre.shape[0]
    mode_bytes = K_MODES * jnp.dtype(modes.dtype).itemsize   # 24 B/px if bf16
    io_bytes = (4 + 3) * 4                                    # 4 f32 inputs + 3 f32 outputs
    bytes_per_pixel = mode_bytes + io_bytes
    budget, vmem_limit = _vmem_budget()
    if tm is None:
        tm = _pick_tm(n, budget, bytes_per_pixel)
    grid = (pl.cdiv(n, tm),)

    kernel = partial(_aberration_lens_kernel, tm=int(tm), step=float(step),
                     half=float(half), r2_max=float(r2_max))

    smem_spec = pl.BlockSpec(memory_space=pltpu.MemorySpace.SMEM)
    row_spec = pl.BlockSpec((tm, n), lambda i: (i, 0))
    modes_spec = pl.BlockSpec((K_MODES, tm, n), lambda i: (0, i, 0))
    out_shape = tuple(jax.ShapeDtypeStruct((n, n), jnp.float32) for _ in range(3))
    return pl.pallas_call(
        kernel,
        out_shape=out_shape,
        grid=grid,
        in_specs=[smem_spec, modes_spec, row_spec, row_spec, row_spec, row_spec],
        out_specs=(row_spec, row_spec, row_spec),
        compiler_params=pltpu.CompilerParams(
            dimension_semantics=("parallel",),
            vmem_limit_bytes=vmem_limit,
        ),
    )(coeffs, modes, fre, fim, lre, lim)


# --------------------------------------------------------------------------- #
# Plan: all static (config-only) planes/scalars, built once per config
# --------------------------------------------------------------------------- #
def _r2_grid_np(n, size):
    step = size / n
    coords = (np.arange(n) - n / 2 + 0.5) * step
    x2 = coords * coords
    return x2[:, None] + x2[None, :]


def build_m290_plan(n, cfg):
    lam = cfg["wavelength"]
    k_wave = 2.0 * np.pi / lam
    size = cfg["gridSize"]
    ap_r = cfg["apertureRadius"]
    ap_w = cfg["apertureSmoothWidth"]

    r2 = _r2_grid_np(n, size)
    r = np.sqrt(r2)

    # Thin lens phasor exp(-1j*k*r^2/(2*f1)) times smooth-edge transmission T(r).
    # TODO(synk): exact SmoothEdgeAperture formula not available in the source; a smooth
    # tanh edge of width apertureSmoothWidth around apertureRadius is used here.
    lens_ph = -k_wave * r2 / (2.0 * cfg["f1"])
    t = 0.5 * (1.0 - np.tanh((r - ap_r) / ap_w))
    lens_re_t = (np.cos(lens_ph) * t).astype(np.float32)
    lens_im_t = (np.sin(lens_ph) * t).astype(np.float32)

    # Expander_Fresnel (LightPipes LensFresnel convention), input curvature = 0.
    # TODO(synk): Expander_Fresnel source not provided; LightPipes LensFresnel assumed.
    z = cfg["focalLength"] + cfg["caustic"] * cfg["zR"]
    f = cfg["f2"]
    large = 1.0e7
    f1c = large * size * size / lam          # input curvature == 0
    f_eff = f * f1c / (f + f1c)
    if abs(z - f_eff) <= 1e-12 * max(abs(z), abs(f_eff)):
        z1 = large
    else:
        z1 = -z * f_eff / (z - f_eff)

    # Fresnel transfer function (FFT-based propagation stays in plain JAX/XLA).
    fx = np.fft.fftfreq(n, d=size / n)
    fsq = (fx * fx)[:, None] + (fx * fx)[None, :]
    h = np.exp(-1j * np.pi * lam * z1 * fsq).astype(np.complex64)

    ampl_scale = (f_eff - z) / f_eff
    new_size = size * ampl_scale
    new_curvature = -1.0 / (z - f_eff)
    amp = (1.0 / ampl_scale) if z1 >= 0 else 1.0

    # Spherer2Cartesian (Convert): quadratic phase on the new (scaled) grid, amplitude
    # rescale folded into the same complex plane.
    # TODO(synk): Spherer2Cartesian source not provided; LightPipes Convert() convention
    # assumed: field *= amp * exp(-1j * k * curvature * r^2 / 2), curvature -> 0 afterwards.
    r2_new = _r2_grid_np(n, new_size)
    conv_ph = -0.5 * k_wave * new_curvature * r2_new
    conv_phasor = (amp * np.exp(1j * conv_ph)).astype(np.complex64)

    return dict(
        step=float(size / n),
        half=float(n / 2.0 - 0.5),
        r2_max=float(ap_r * ap_r),
        lens_re_t=jnp.asarray(lens_re_t),
        lens_im_t=jnp.asarray(lens_im_t),
        h=jnp.asarray(h),
        conv_phasor=jnp.asarray(conv_phasor),
        new_size=float(new_size),
        final_curvature=0.0,
    )


# --------------------------------------------------------------------------- #
# Forward: Pallas kernel 1 + fused (jit) FFT Fresnel propagation + Convert phasor
# --------------------------------------------------------------------------- #
@partial(jax.jit, static_argnames=("step", "half", "r2_max"))
def _forward_impl(field_re, field_im, coeffs, modes, lre, lim, h, conv_phasor,
                  *, step, half, r2_max):
    fre, fim, slm_phase = aberration_lens_aperture(
        coeffs, modes, field_re, field_im, lre, lim,
        step=step, half=half, r2_max=r2_max)
    field = jax.lax.complex(fre, fim)
    # Fresnel propagation + spherical->cartesian conversion fused by XLA.
    # TODO(synk): if many fields / coefficient sets are evaluated, batch them into one
    # pallas_call (leading batch grid axis) and one batched FFT to amortize overheads.
    out = jnp.fft.ifft2(jnp.fft.fft2(field) * h) * conv_phasor
    return jnp.real(out).astype(jnp.float32), jnp.imag(out).astype(jnp.float32), slm_phase


def m290_forward(field_re, field_im, zernike_coeffs, zernike_modes, plan):
    out_re, out_im, slm_phase = _forward_impl(
        field_re, field_im, zernike_coeffs, zernike_modes,
        plan["lens_re_t"], plan["lens_im_t"], plan["h"], plan["conv_phasor"],
        step=plan["step"], half=plan["half"], r2_max=plan["r2_max"])
    return (out_re, out_im), plan["new_size"], plan["final_curvature"], slm_phase


if __name__ == "__main__":
    # Deterministic, config-free parameterization (values typical of the M290 setup).
    N = 128
    cfg = dict(
        wavelength=1.064e-6,
        apertureRadius=10.0e-3,
        gridSize=20.0e-3,               # apertureRadius * 2
        apertureSmoothWidth=0.5e-3,
        focalLength=0.25,               # already divided by beamMagnification
    )
    focalReduction = 1.1
    cfg["f1"] = cfg["focalLength"] * focalReduction
    cfg["f2"] = cfg["f1"] * cfg["focalLength"] / (cfg["f1"] - cfg["focalLength"])
    beamWaist = 5.0e-3
    focWaist = cfg["wavelength"] / np.pi * cfg["focalLength"] / beamWaist
    cfg["zR"] = np.pi * focWaist ** 2 / cfg["wavelength"]
    cfg["caustic"] = -2.0               # 'prefoc' caustic plane (in units of zR)

    # Static plan: built once per config, reused across forward calls.
    plan = build_m290_plan(N, cfg)

    key = jax.random.PRNGKey(0)
    k1, k2, k3 = jax.random.split(key, 3)

    # Parameters / buffers (synthetic, deterministic).
    zernike_coeffs = (0.1 * jax.random.normal(k1, (K_MODES,))).astype(jnp.float32)
    # Modes stored in bf16 (halves the dominant HBM stream); kernel upcasts to f32.
    # TODO(synk): validate slm_phase / output-field error of bf16 modes vs f32 reference.
    zernike_modes = (0.5 * jax.random.normal(k2, (K_MODES, N, N))).astype(jnp.bfloat16)

    # Input complex field: Gaussian amplitude with a random SLM-like phase.
    r2_np = _r2_grid_np(N, cfg["gridSize"]).astype(np.float32)
    amp = np.exp(-r2_np / (beamWaist ** 2)).astype(np.float32)
    phase_mask = jax.random.uniform(k3, (N, N), minval=-np.pi, maxval=np.pi)
    field_re = (jnp.asarray(amp) * jnp.cos(phase_mask)).astype(jnp.float32)
    field_im = (jnp.asarray(amp) * jnp.sin(phase_mask)).astype(jnp.float32)

    (out_re, out_im), final_size, final_curv, slm_phase = m290_forward(
        field_re, field_im, zernike_coeffs, zernike_modes, plan)

    jax.block_until_ready((out_re, out_im, slm_phase))
    assert out_re.shape == (N, N) and out_im.shape == (N, N)
    assert slm_phase.shape == (N, N)
    assert np.isfinite(np.asarray(out_re)).all()
    assert np.isfinite(np.asarray(out_im)).all()
    assert np.isfinite(np.asarray(slm_phase)).all()
    print("KERNEL_OK")
</pallas_src>

<mosaic_0001>
module attributes {stable_mosaic.version = 11 : i64} {
  func.func @_aberration_lens_kernel(%arg0: i32, %arg1: memref<12xf32, #tpu.memory_space<smem>>, %arg2: memref<12x64x128xbf16, #tpu.memory_space<vmem>>, %arg3: memref<64x128xf32, #tpu.memory_space<vmem>>, %arg4: memref<64x128xf32, #tpu.memory_space<vmem>>, %arg5: memref<64x128xf32, #tpu.memory_space<vmem>>, %arg6: memref<64x128xf32, #tpu.memory_space<vmem>>, %arg7: memref<64x128xf32, #tpu.memory_space<vmem>>, %arg8: memref<64x128xf32, #tpu.memory_space<vmem>>, %arg9: memref<64x128xf32, #tpu.memory_space<vmem>>) attributes {dimension_semantics = [#tpu.dimension_semantics<parallel>], iteration_bounds = array<i64: 2>, scalar_prefetch = 0 : i64, scratch_operands = 0 : i64, tpu.core_type = #tpu.core_type<tc>, window_params = [{transform_indices = @transform_0, window_bounds = array<i64: 12>}, {transform_indices = @transform_1, window_bounds = array<i64: 12, 64, 128>}, {transform_indices = @transform_2, window_bounds = array<i64: 64, 128>}, {transform_indices = @transform_3, window_bounds = array<i64: 64, 128>}, {transform_indices = @transform_4, window_bounds = array<i64: 64, 128>}, {transform_indices = @transform_5, window_bounds = array<i64: 64, 128>}, {transform_indices = @transform_6, window_bounds = array<i64: 64, 128>}, {transform_indices = @transform_7, window_bounds = array<i64: 64, 128>}, {transform_indices = @transform_8, window_bounds = array<i64: 64, 128>}]} {
    %c0 = arith.constant 0 : index
    %0 = memref.load %arg1[%c0] : memref<12xf32, #tpu.memory_space<smem>>
    %c0_0 = arith.constant 0 : index
    %c0_1 = arith.constant 0 : index
    %c0_2 = arith.constant 0 : index
    %1 = vector.load %arg2[%c0_0, %c0_1, %c0_2] : memref<12x64x128xbf16, #tpu.memory_space<vmem>>, vector<1x64x128xbf16>
    %2 = vector.shape_cast %1 : vector<1x64x128xbf16> to vector<64x128xbf16>
    %3 = arith.extf %2 : vector<64x128xbf16> to vector<64x128xf32>
    %4 = vector.broadcast %0 : f32 to vector<64x128xf32>
    %5 = arith.mulf %4, %3 : vector<64x128xf32>
    %c1 = arith.constant 1 : index
    %6 = memref.load %arg1[%c1] : memref<12xf32, #tpu.memory_space<smem>>
    %c1_3 = arith.constant 1 : index
    %c0_4 = arith.constant 0 : index
    %c0_5 = arith.constant 0 : index
    %7 = vector.load %arg2[%c1_3, %c0_4, %c0_5] : memref<12x64x128xbf16, #tpu.memory_space<vmem>>, vector<1x64x128xbf16>
    %8 = vector.shape_cast %7 : vector<1x64x128xbf16> to vector<64x128xbf16>
    %9 = arith.extf %8 : vector<64x128xbf16> to vector<64x128xf32>
    %10 = vector.broadcast %6 : f32 to vector<64x128xf32>
    %11 = arith.mulf %10, %9 : vector<64x128xf32>
    %12 = arith.addf %5, %11 : vector<64x128xf32>
    %c2 = arith.constant 2 : index
    %13 = memref.load %arg1[%c2] : memref<12xf32, #tpu.memory_space<smem>>
    %c2_6 = arith.constant 2 : index
    %c0_7 = arith.constant 0 : index
    %c0_8 = arith.constant 0 : index
    %14 = vector.load %arg2[%c2_6, %c0_7, %c0_8] : memref<12x64x128xbf16, #tpu.memory_space<vmem>>, vector<1x64x128xbf16>
    %15 = vector.shape_cast %14 : vector<1x64x128xbf16> to vector<64x128xbf16>
    %16 = arith.extf %15 : vector<64x128xbf16> to vector<64x128xf32>
    %17 = vector.broadcast %13 : f32 to vector<64x128xf32>
    %18 = arith.mulf %17, %16 : vector<64x128xf32>
    %19 = arith.addf %12, %18 : vector<64x128xf32>
    %c3 = arith.constant 3 : index
    %20 = memref.load %arg1[%c3] : memref<12xf32, #tpu.memory_space<smem>>
    %c3_9 = arith.constant 3 : index
    %c0_10 = arith.constant 0 : index
    %c0_11 = arith.constant 0 : index
    %21 = vector.load %arg2[%c3_9, %c0_10, %c0_11] : memref<12x64x128xbf16, #tpu.memory_space<vmem>>, vector<1x64x128xbf16>
    %22 = vector.shape_cast %21 : vector<1x64x128xbf16> to vector<64x128xbf16>
    %23 = arith.extf %22 : vector<64x128xbf16> to vector<64x128xf32>
    %24 = vector.broadcast %20 : f32 to vector<64x128xf32>
    %25 = arith.mulf %24, %23 : vector<64x128xf32>
    %26 = arith.addf %19, %25 : vector<64x128xf32>
    %c4 = arith.constant 4 : index
    %27 = memref.load %arg1[%c4] : memref<12xf32, #tpu.memory_space<smem>>
    %c4_12 = arith.constant 4 : index
    %c0_13 = arith.constant 0 : index
    %c0_14 = arith.constant 0 : index
    %28 = vector.load %arg2[%c4_12, %c0_13, %c0_14] : memref<12x64x128xbf16, #tpu.memory_space<vmem>>, vector<1x64x128xbf16>
    %29 = vector.shape_cast %28 : vector<1x64x128xbf16> to vector<64x128xbf16>
    %30 = arith.extf %29 : vector<64x128xbf16> to vector<64x128xf32>
    %31 = vector.broadcast %27 : f32 to vector<64x128xf32>
    %32 = arith.mulf %31, %30 : vector<64x128xf32>
    %33 = arith.addf %26, %32 : vector<64x128xf32>
    %c5 = arith.constant 5 : index
    %34 = memref.load %arg1[%c5] : memref<12xf32, #tpu.memory_space<smem>>
    %c5_15 = arith.constant 5 : index
    %c0_16 = arith.constant 0 : index
    %c0_17 = arith.constant 0 : index
    %35 = vector.load %arg2[%c5_15, %c0_16, %c0_17] : memref<12x64x128xbf16, #tpu.memory_space<vmem>>, vector<1x64x128xbf16>
    %36 = vector.shape_cast %35 : vector<1x64x128xbf16> to vector<64x128xbf16>
    %37 = arith.extf %36 : vector<64x128xbf16> to vector<64x128xf32>
    %38 = vector.broadcast %34 : f32 to vector<64x128xf32>
    %39 = arith.mulf %38, %37 : vector<64x128xf32>
    %40 = arith.addf %33, %39 : vector<64x128xf32>
    %c6 = arith.constant 6 : index
    %41 = memref.load %arg1[%c6] : memref<12xf32, #tpu.memory_space<smem>>
    %c6_18 = arith.constant 6 : index
    %c0_19 = arith.constant 0 : index
    %c0_20 = arith.constant 0 : index
    %42 = vector.load %arg2[%c6_18, %c0_19, %c0_20] : memref<12x64x128xbf16, #tpu.memory_space<vmem>>, vector<1x64x128xbf16>
    %43 = vector.shape_cast %42 : vector<1x64x128xbf16> to vector<64x128xbf16>
    %44 = arith.extf %43 : vector<64x128xbf16> to vector<64x128xf32>
    %45 = vector.broadcast %41 : f32 to vector<64x128xf32>
    %46 = arith.mulf %45, %44 : vector<64x128xf32>
    %47 = arith.addf %40, %46 : vector<64x128xf32>
    %c7 = arith.constant 7 : index
    %48 = memref.load %arg1[%c7] : memref<12xf32, #tpu.memory_space<smem>>
    %c7_21 = arith.constant 7 : index
    %c0_22 = arith.constant 0 : index
    %c0_23 = arith.constant 0 : index
    %49 = vector.load %arg2[%c7_21, %c0_22, %c0_23] : memref<12x64x128xbf16, #tpu.memory_space<vmem>>, vector<1x64x128xbf16>
    %50 = vector.shape_cast %49 : vector<1x64x128xbf16> to vector<64x128xbf16>
    %51 = arith.extf %50 : vector<64x128xbf16> to vector<64x128xf32>
    %52 = vector.broadcast %48 : f32 to vector<64x128xf32>
    %53 = arith.mulf %52, %51 : vector<64x128xf32>
    %54 = arith.addf %47, %53 : vector<64x128xf32>
    %c8 = arith.constant 8 : index
    %55 = memref.load %arg1[%c8] : memref<12xf32, #tpu.memory_space<smem>>
    %c8_24 = arith.constant 8 : index
    %c0_25 = arith.constant 0 : index
    %c0_26 = arith.constant 0 : index
    %56 = vector.load %arg2[%c8_24, %c0_25, %c0_26] : memref<12x64x128xbf16, #tpu.memory_space<vmem>>, vector<1x64x128xbf16>
    %57 = vector.shape_cast %56 : vector<1x64x128xbf16> to vector<64x128xbf16>
    %58 = arith.extf %57 : vector<64x128xbf16> to vector<64x128xf32>
    %59 = vector.broadcast %55 : f32 to vector<64x128xf32>
    %60 = arith.mulf %59, %58 : vector<64x128xf32>
    %61 = arith.addf %54, %60 : vector<64x128xf32>
    %c9 = arith.constant 9 : index
    %62 = memref.load %arg1[%c9] : memref<12xf32, #tpu.memory_space<smem>>
    %c9_27 = arith.constant 9 : index
    %c0_28 = arith.constant 0 : index
    %c0_29 = arith.constant 0 : index
    %63 = vector.load %arg2[%c9_27, %c0_28, %c0_29] : memref<12x64x128xbf16, #tpu.memory_space<vmem>>, vector<1x64x128xbf16>
    %64 = vector.shape_cast %63 : vector<1x64x128xbf16> to vector<64x128xbf16>
    %65 = arith.extf %64 : vector<64x128xbf16> to vector<64x128xf32>
    %66 = vector.broadcast %62 : f32 to vector<64x128xf32>
    %67 = arith.mulf %66, %65 : vector<64x128xf32>
    %68 = arith.addf %61, %67 : vector<64x128xf32>
    %c10 = arith.constant 10 : index
    %69 = memref.load %arg1[%c10] : memref<12xf32, #tpu.memory_space<smem>>
    %c10_30 = arith.constant 10 : index
    %c0_31 = arith.constant 0 : index
    %c0_32 = arith.constant 0 : index
    %70 = vector.load %arg2[%c10_30, %c0_31, %c0_32] : memref<12x64x128xbf16, #tpu.memory_space<vmem>>, vector<1x64x128xbf16>
    %71 = vector.shape_cast %70 : vector<1x64x128xbf16> to vector<64x128xbf16>
    %72 = arith.extf %71 : vector<64x128xbf16> to vector<64x128xf32>
    %73 = vector.broadcast %69 : f32 to vector<64x128xf32>
    %74 = arith.mulf %73, %72 : vector<64x128xf32>
    %75 = arith.addf %68, %74 : vector<64x128xf32>
    %c11 = arith.constant 11 : index
    %76 = memref.load %arg1[%c11] : memref<12xf32, #tpu.memory_space<smem>>
    %c11_33 = arith.constant 11 : index
    %c0_34 = arith.constant 0 : index
    %c0_35 = arith.constant 0 : index
    %77 = vector.load %arg2[%c11_33, %c0_34, %c0_35] : memref<12x64x128xbf16, #tpu.memory_space<vmem>>, vector<1x64x128xbf16>
    %78 = vector.shape_cast %77 : vector<1x64x128xbf16> to vector<64x128xbf16>
    %79 = arith.extf %78 : vector<64x128xbf16> to vector<64x128xf32>
    %80 = vector.broadcast %76 : f32 to vector<64x128xf32>
    %81 = arith.mulf %80, %79 : vector<64x128xf32>
    %82 = arith.addf %75, %81 : vector<64x128xf32>
    %83 = math.cos %82 : vector<64x128xf32>
    %84 = math.sin %82 : vector<64x128xf32>
    %c0_36 = arith.constant 0 : index
    %c0_37 = arith.constant 0 : index
    %85 = vector.load %arg3[%c0_36, %c0_37] : memref<64x128xf32, #tpu.memory_space<vmem>>, vector<64x128xf32>
    %c0_38 = arith.constant 0 : index
    %c0_39 = arith.constant 0 : index
    %86 = vector.load %arg4[%c0_38, %c0_39] : memref<64x128xf32, #tpu.memory_space<vmem>>, vector<64x128xf32>
    %87 = arith.mulf %85, %83 : vector<64x128xf32>
    %88 = arith.mulf %86, %84 : vector<64x128xf32>
    %89 = arith.subf %87, %88 : vector<64x128xf32>
    %90 = arith.mulf %85, %84 : vector<64x128xf32>
    %91 = arith.mulf %86, %83 : vector<64x128xf32>
    %92 = arith.addf %90, %91 : vector<64x128xf32>
    %93 = tpu.iota {dimensions = array<i32: 0>} : vector<64x128xi32>
    %c64_i32 = arith.constant 64 : i32
    %94 = arith.muli %arg0, %c64_i32 : i32
    %95 = vector.broadcast %94 : i32 to vector<64x128xi32>
    %96 = arith.addi %93, %95 : vector<64x128xi32>
    %97 = tpu.iota {dimensions = array<i32: 1>} : vector<64x128xi32>
    %98 = arith.sitofp %96 : vector<64x128xi32> to vector<64x128xf32>
    %cst = arith.constant 6.350000e+01 : f32
    %99 = vector.broadcast %cst : f32 to vector<64x128xf32>
    %100 = arith.subf %98, %99 : vector<64x128xf32>
    %cst_40 = arith.constant 1.562500e-04 : f32
    %101 = vector.broadcast %cst_40 : f32 to vector<64x128xf32>
    %102 = arith.mulf %100, %101 : vector<64x128xf32>
    %103 = arith.sitofp %97 : vector<64x128xi32> to vector<64x128xf32>
    %cst_41 = arith.constant 6.350000e+01 : f32
    %104 = vector.broadcast %cst_41 : f32 to vector<64x128xf32>
    %105 = arith.subf %103, %104 : vector<64x128xf32>
    %cst_42 = arith.constant 1.562500e-04 : f32
    %106 = vector.broadcast %cst_42 : f32 to vector<64x128xf32>
    %107 = arith.mulf %105, %106 : vector<64x128xf32>
    %108 = arith.mulf %107, %107 : vector<64x128xf32>
    %109 = arith.mulf %102, %102 : vector<64x128xf32>
    %110 = arith.addf %108, %109 : vector<64x128xf32>
    %cst_43 = arith.constant 9.99999974E-5 : f32
    %111 = vector.broadcast %cst_43 : f32 to vector<64x128xf32>
    %112 = arith.cmpf ole, %110, %111 : vector<64x128xf32>
    %113 = math.atan2 %92, %89 : vector<64x128xf32>
    %cst_44 = arith.constant 0.000000e+00 : f32
    %114 = vector.broadcast %cst_44 : f32 to vector<64x128xf32>
    %115 = arith.select %112, %113, %114 : vector<64x128xi1>, vector<64x128xf32>
    %c0_45 = arith.constant 0 : index
    %c0_46 = arith.constant 0 : index
    %116 = vector.load %arg9[%c0_45, %c0_46] : memref<64x128xf32, #tpu.memory_space<vmem>>, vector<64x128xf32>
    tpu.vector_store %arg9[%c0_45, %c0_46], %115 {strides = array<i32>} : memref<64x128xf32, #tpu.memory_space<vmem>>, vector<64x128xf32>,
    %c0_47 = arith.constant 0 : index
    %c0_48 = arith.constant 0 : index
    %117 = vector.load %arg5[%c0_47, %c0_48] : memref<64x128xf32, #tpu.memory_space<vmem>>, vector<64x128xf32>
    %c0_49 = arith.constant 0 : index
    %c0_50 = arith.constant 0 : index
    %118 = vector.load %arg6[%c0_49, %c0_50] : memref<64x128xf32, #tpu.memory_space<vmem>>, vector<64x128xf32>
    %119 = arith.mulf %89, %117 : vector<64x128xf32>
    %120 = arith.mulf %92, %118 : vector<64x128xf32>
    %121 = arith.subf %119, %120 : vector<64x128xf32>
    %c0_51 = arith.constant 0 : index
    %c0_52 = arith.constant 0 : index
    %122 = vector.load %arg7[%c0_51, %c0_52] : memref<64x128xf32, #tpu.memory_space<vmem>>, vector<64x128xf32>
    tpu.vector_store %arg7[%c0_51, %c0_52], %121 {strides = array<i32>} : memref<64x128xf32, #tpu.memory_space<vmem>>, vector<64x128xf32>,
    %123 = arith.mulf %89, %118 : vector<64x128xf32>
    %124 = arith.mulf %92, %117 : vector<64x128xf32>
    %125 = arith.addf %123, %124 : vector<64x128xf32>
    %c0_53 = arith.constant 0 : index
    %c0_54 = arith.constant 0 : index
    %126 = vector.load %arg8[%c0_53, %c0_54] : memref<64x128xf32, #tpu.memory_space<vmem>>, vector<64x128xf32>
    tpu.vector_store %arg8[%c0_53, %c0_54], %125 {strides = array<i32>} : memref<64x128xf32, #tpu.memory_space<vmem>>, vector<64x128xf32>,
    return
  }
  func.func @transform_0(%arg0: i32) -> i32 {
    %c0_i32 = arith.constant 0 : i32
    %c0_i32_0 = arith.constant 0 : i32
    return %c0_i32 : i32
  }
  func.func @transform_1(%arg0: i32) -> (i32, i32, i32) {
    %c0_i32 = arith.constant 0 : i32
    %c0_i32_0 = arith.constant 0 : i32
    %c0_i32_1 = arith.constant 0 : i32
    return %c0_i32, %arg0, %c0_i32_0 : i32, i32, i32
  }
  func.func @transform_2(%arg0: i32) -> (i32, i32) {
    %c0_i32 = arith.constant 0 : i32
    %c0_i32_0 = arith.constant 0 : i32
    return %arg0, %c0_i32 : i32, i32
  }
  func.func @transform_3(%arg0: i32) -> (i32, i32) {
    %c0_i32 = arith.constant 0 : i32
    %c0_i32_0 = arith.constant 0 : i32
    return %arg0, %c0_i32 : i32, i32
  }
  func.func @transform_4(%arg0: i32) -> (i32, i32) {
    %c0_i32 = arith.constant 0 : i32
    %c0_i32_0 = arith.constant 0 : i32
    return %arg0, %c0_i32 : i32, i32
  }
  func.func @transform_5(%arg0: i32) -> (i32, i32) {
    %c0_i32 = arith.constant 0 : i32
    %c0_i32_0 = arith.constant 0 : i32
    return %arg0, %c0_i32 : i32, i32
  }
  func.func @transform_6(%arg0: i32) -> (i32, i32) {
    %c0_i32 = arith.constant 0 : i32
    %c0_i32_0 = arith.constant 0 : i32
    return %arg0, %c0_i32 : i32, i32
  }
  func.func @transform_7(%arg0: i32) -> (i32, i32) {
    %c0_i32 = arith.constant 0 : i32
    %c0_i32_0 = arith.constant 0 : i32
    return %arg0, %c0_i32 : i32, i32
  }
  func.func @transform_8(%arg0: i32) -> (i32, i32) {
    %c0_i32 = arith.constant 0 : i32
    %c0_i32_0 = arith.constant 0 : i32
    return %arg0, %c0_i32 : i32, i32
  }
}

</mosaic_0001>

<bundles_post_ra>
// kernel: _forward_impl.1
= control target key start
LH: loop header
LB: loop body
LE: loop exit
PB: predicated region body
PF: predicated region fallthrough
CT: control target
= control target key end

     0   :  { %s6879_s0 = inlined_call_operand.vmem [shape: f32[12], index: 0, kind: input, shape index: {}]   ;;  %s6880_s1 = inlined_call_operand.hbm [shape: bf16[12,128,128], index: 1, kind: input, shape index: {}]   ;;  %s6881_s2 = inlined_call_operand.hbm [shape: f32[128,128], index: 2, kind: input, shape index: {}]   ;;  %s6882_s3 = inlined_call_operand.hbm [shape: f32[128,128], index: 3, kind: input, shape index: {}]   ;;  %s6883_s4 = inlined_call_operand.hbm [shape: f32[128,128], index: 4, kind: input, shape index: {}]   ;;  %s6884_s5 = inlined_call_operand.hbm [shape: f32[128,128], index: 5, kind: input, shape index: {}]   ;;  %s6885_s6 = inlined_call_operand.vmem [shape: f32[128,128], index: 6, kind: output, shape index: {0}]   ;;  %s6886_s7 = inlined_call_operand.vmem [shape: f32[128,128], index: 7, kind: output, shape index: {1}]   ;;  %s6887_s8 = inlined_call_operand.hbm [shape: f32[128,128], index: 8, kind: output, shape index: {2}]  }
   0x1   :  { %6932 = sst [smem:[#allocation49_spill]] %s6879_s0 }
   0x2   :  { %6933 = sst [smem:[#allocation50_spill]] %s6880_s1 }
   0x3   :  { %6934 = sst [smem:[#allocation51_spill]] %s6881_s2 }
   0x4   :  { %6935 = sst [smem:[#allocation52_spill]] %s6883_s4 }
   0x5   :  { %14 = vsyncpa [#allocation5], 0 }
   0x6   :  { %15 = vsyncpa [#allocation3], 0 }
   0x7   :  { %17 = vsyncpa [#allocation3 + $0x1], 0 }
   0x8   :  { %18 = vsyncpa [#allocation8], 0 }
   0x9   :  { %20 = vsyncpa [#allocation8 + $0x1], 0 }
   0xa   :  { %21 = vsyncpa [#allocation11], 0 }
   0xb   :  { %23 = vsyncpa [#allocation11 + $0x1], 0 }
   0xc   :  { %24 = vsyncpa [#allocation4], 0 }
   0xd   :  { %26 = vsyncpa [#allocation4 + $0x1], 0  ;;  %s4366_s27 = smov 0   ;;  %s4368_s28 = smov 0  }
   0xe   :  { %s4370_s29 = smov 0   ;;  %s4372_s30 = smov 0  }
   0xf LB: > { %6936 = sst [smem:[#allocation22_spill]] %s4291_s29  ;;  %s4387_s9 = sadd.s32 4294967295, %s4295_s30   ;;  %s4295_s30 = sphi %s4372_s30, %s7082_s30   ;;  %s4291_s29 = sphi %s4370_s29, %s7084_s29   ;;  %s4287_s28 = sphi %s4368_s28, %s7086_s28   ;;  %s4283_s27 = sphi %s4366_s27, %s7085_s27  }
  0x10   : > { %s3479_s10 = sadd.s32 4294967294, %s4295_s30   ;;  %s4391_s11 = sadd.s32 1, %s4295_s30  }
  0x11   : > { %6937 = sst [smem:[#allocation23_spill]] %s4391_s11  ;;  %s60_s12 = sadd.s32 1, %s4291_s29 }
  0x12   : > { %s57_s13 = ssub.s32 %s4295_s30, %s4391_s11  ;;  %p67_p0 = scmp.ne.s32.totalorder %s4291_s29, %s4287_s28 }
  0x13   : > { %p58_p1 = scmp.eq.s32.totalorder %s57_s13, 0  ;;  %p68_p2 = scmp.eq.s32.totalorder %s4295_s30, 0 }
  0x14   : > { %p73_p3 = scmp.ne.s32.totalorder %s4287_s28, %s4283_s27  ;;  %p6894_p4 = scmp.eq.s32.totalorder %s4387_s9, 0 }
  0x15   : > { %s4403_s14 = scalar_select %p58_p1, %s4291_s29, %s60_s12  }
  0x16   : > { %p4405_p5 = por %p68_p2, %p67_p0  ;;  %p4411_p6 = por %p6894_p4, %p73_p3 }
  0x17   : > { %6938 = sst [smem:[#allocation24_spill]] %s4403_s14  ;;  %p253_p7 = scmp.eq.s32.totalorder %s4387_s9, 1 }
  0x18   : > { %s6940_s16 = scalar_select %p4411_p6, 1, 0 }
  0x19   : > { %p259_p8 = scmp.eq.s32.totalorder %s3479_s10, 1  ;;  %p3480_p9 = scmp.ge.s32.totalorder %s4295_s30, 1 }
  0x1a   : > { %p266_p10 = scmp.lt.s32.totalorder %s4295_s30, 3  ;;  %p4418_p11 = por %p253_p7, %p67_p0 }
  0x1b   : > { %p4422_p12 = por %p259_p8, %p73_p3  ;;  %s6944_s0 = sld [smem:[#allocation49_spill]] }
  0x1c   : > { %s6941_s17 = scalar_select %p4418_p11, 1, 0 }
  0x1d   : > { %s6942_s18 = scalar_select %p4422_p12, 1, 0 }
  0x1e   : > { %p4426_p13 = pnand %p3480_p9, %p266_p10 }
  0x20   : > { %p3990_p1 = pneg %p4426_p13 }
  0x21   : > { %s279_s22 = sshll.u32 %s6944_s0, 4  ;;  %s280_s22 = int_to_ptr.vmem [resolvable:$true] %s279_s22 }
  0x22   : > { %p3991_p0 = pnand %p3990_p1, %p6894_p4  ;;  %s4100_s23 = scalar_lea.vmem %s280_s22, 16 }
  0x23   : > { %p4101_p2 = scmp.ne.s32.totalorder %s280_s22, %s4100_s23  ;;  %p4108_p12 = scmp.lt.s32.totalorder %s280_s22, %s280_s22 }
  0x24   : > { %p4102_p3 = pneg %p3991_p0  ;;  %p4109_p9 = scmp.lt.s32.totalorder %s4100_s23, %s4100_s23 }
  0x26   : > { %p4103_p7 = pnand %p4102_p3, %p4101_p2  ;;  %p4110_p10 = por %p4109_p9, %p4108_p12 }
  0x28   : > { %p4104_p8 = pneg %p4103_p7 }
  0x2a   : > { %p4111_p11 = pnand %p4110_p10, %p4104_p8 }
  0x2c   : > { %4114 = shalt.err (!%p4111_p11)
}
  0x2d   : > { %s4297_s24 = smov [#allocation2]   ;;  %p6893_p6 = scmp.ge.s32.totalorder %s4295_s30, 2 }
  0x2e   : > { %3993 = dma.vmem_to_smem (!%p3991_p0), %s280_s22, 16, %s4297_s24, [#allocation5]  }
  0x2f   : > { %286 = sbr.rel (%p6893_p6) target bundleno = 168 (0xa8), region = 20 }
  0x34   : > { %s290_s25 = sand.u32 1, %s4291_s29   ;;  %s3688_s10 = sshll.u32 %s4295_s30, 9 }
  0x35   : > { %s3933_s26 = smul.u32 384, %s290_s25  ;;  %s4298_s12 = smov 1024  }
  0x36   : > { %3970 = sst [smem:[#allocation15]] (%p4405_p5), %s4298_s12  ;;  %s4299_s14 = smov 512  }
  0x37   : > { %s3969_s13 = scalar_select %p4405_p5, [#allocation0], [#allocation16] }
  0x38   : > { %s6945_s1 = sld [smem:[#allocation50_spill]]  ;;  %s294_s24 = scalar_lea.vmem [#allocation6], %s3933_s26 }
  0x39   : > { %s305_s23 = sld [smem:[%s3969_s13]]   ;;  %s313_s0 = sshll.u32 %s294_s24, 4  ;;  %s314_s0 = int_to_ptr.vmem [resolvable:$true] %s313_s0 }
  0x3a   : > { %3971 = sst [smem:[#allocation15 + $0x1]] (%p4405_p5), %s4299_s14  ;;  %s4300_s29 = smov 8  }
  0x3b   : > { %3972 = sst [smem:[#allocation15 + $0x2]] (%p4405_p5), %s4300_s29  ;;  %s4301_s11 = smov 64  }
  0x3c   : > { %3973 = sst [smem:[#allocation15 + $0x3]] (%p4405_p5), %s4301_s11  ;;  %s4302_s12 = smov 4  }
  0x3d   : > { %3974 = sst [smem:[#allocation15 + $0x4]] (%p4405_p5), %s4301_s11  ;;  %s291_s26 = scalar_lea.sflag [#allocation3], %s290_s25 }
  0x3e   : > { %s300_s22 = scalar_lea.hbm %s6945_s1, %s3688_s10  ;;  %3975 = sst [smem:[#allocation15 + $0x5]] (%p4405_p5), %s4302_s12 }
  0x3f   : > { %s3485_s10 = sshll.u32 %s305_s23, 26  ;;  %s4303_s20 = smov 131072  }
  0x40   : > { %s3486_s13 = sadd.s32 134217728, %s3485_s10  ;;  %s336_s29 = sand.u32 1, %s4295_s30  }
  0x41   : > { %3976 = dma.general (%p4405_p5), %s300_s22, 6144, %s314_s0, %s291_s26, %s4303_s20, [#allocation15], %s3486_s13, 0  }
  0x42   : > { %s4462_s14 = sshll.u32 %s290_s25, 6  ;;  %s4465_s21 = sshll.u32 %s4295_s30, 10 }
  0x43   : > { %s340_s11 = scalar_lea.vmem [#allocation7], %s4462_s14  ;;  %s6946_s2 = sld [smem:[#allocation51_spill]] }
  0x44   : > { %s347_s24 = sshll.u32 %s340_s11, 4  ;;  %s4478_s0 = scalar_lea.sflag [#allocation8], %s336_s29  ;;  %s4474_s24 = int_to_ptr.vmem [resolvable:$true] %s347_s24 }
  0x49   : > { %s4472_s10 = scalar_lea.hbm %s6946_s2, %s4465_s21  ;;  %s4119_s26 = scalar_lea.hbm %s6946_s2, 2048 }
  0x4a   : > { %s4115_s25 = scalar_lea.hbm %s4472_s10, 1024  ;;  %p4120_p0 = scmp.lt.s32.totalorder %s4472_s10, %s6946_s2 }
  0x4b   : > { %p4116_p11 = scmp.ne.s32.totalorder %s4472_s10, %s4115_s25  ;;  %p4121_p2 = scmp.lt.s32.totalorder %s4119_s26, %s4115_s25 }
  0x4d   : > { %p4117_p12 = pnand %p4116_p11, %p4405_p5  ;;  %p4122_p3 = por %p4121_p2, %p4120_p0 }
  0x4f   : > { %p4118_p1 = pneg %p4117_p12 }
  0x51   : > { %p4123_p7 = pnand %p4122_p3, %p4118_p1 }
  0x53   : > { %4126 = shalt.err (!%p4123_p7)
}
  0x54   : > { %s4127_s12 = scalar_lea.vmem %s4474_s24, 1024  ;;  %s4304_s23 = smov [#allocation7]  }
  0x55   : > { %p4128_p8 = scmp.ne.s32.totalorder %s4474_s24, %s4127_s12  ;;  %s4131_s22 = sshll.u32 %s4304_s23, 4  ;;  %s4132_s22 = int_to_ptr.vmem [resolvable:$false] %s4131_s22 }
  0x56   : > { %s4133_s13 = scalar_lea.vmem %s4132_s22, 2048  ;;  %p4134_p11 = scmp.lt.s32.totalorder %s4474_s24, %s4132_s22 }
  0x57   : > { %p4129_p9 = pnand %p4128_p8, %p4405_p5  ;;  %p4135_p12 = scmp.lt.s32.totalorder %s4133_s13, %s4127_s12 }
  0x59   : > { %p4130_p10 = pneg %p4129_p9  ;;  %p4136_p6 = por %p4135_p12, %p4134_p11 }
  0x5b   : > { %p4137_p4 = pnand %p4136_p6, %p4130_p10 }
  0x5d   : > { %4140 = shalt.err (!%p4137_p4)
}
  0x5e   : > { %s6895_s25 = smov 128   ;;  %s6897_s26 = smov 8  }
  0x5f   : > { %3977 = dma.hbm_to_vmem [thread:$0]  (%p4405_p5), %s4472_s10, 1024, %s4474_s24, %s4478_s0, %s6895_s25, %s6895_s25, %s6897_s26  }
  0x60   : > { %s6947_s4 = sld [smem:[#allocation52_spill]]  ;;  %s382_s23 = scalar_lea.vmem [#allocation10], %s4462_s14 }
  0x61   : > { %s389_s22 = sshll.u32 %s382_s23, 4  ;;  %s4515_s13 = scalar_lea.sflag [#allocation11], %s336_s29  ;;  %s4511_s22 = int_to_ptr.vmem [resolvable:$true] %s389_s22 }
  0x66   : > { %s4508_s12 = scalar_lea.hbm %s6947_s4, %s4465_s21  ;;  %s4145_s20 = scalar_lea.hbm %s6947_s4, 2048 }
  0x67   : > { %s4141_s1 = scalar_lea.hbm %s4508_s12, 1024  ;;  %p4146_p0 = scmp.lt.s32.totalorder %s4508_s12, %s6947_s4 }
  0x68   : > { %p4142_p4 = scmp.ne.s32.totalorder %s4508_s12, %s4141_s1  ;;  %p4147_p2 = scmp.lt.s32.totalorder %s4145_s20, %s4141_s1 }
  0x6a   : > { %p4143_p6 = pnand %p4142_p4, %p4405_p5  ;;  %p4148_p3 = por %p4147_p2, %p4146_p0 }
  0x6c   : > { %p4144_p1 = pneg %p4143_p6 }
  0x6e   : > { %p4149_p7 = pnand %p4148_p3, %p4144_p1 }
  0x70   : > { %4152 = shalt.err (!%p4149_p7)
}
  0x71   : > { %s4153_s29 = scalar_lea.vmem %s4511_s22, 1024  ;;  %s4307_s23 = smov [#allocation10]  }
  0x72   : > { %p4154_p8 = scmp.ne.s32.totalorder %s4511_s22, %s4153_s29  ;;  %s4157_s24 = sshll.u32 %s4307_s23, 4  ;;  %s4158_s24 = int_to_ptr.vmem [resolvable:$false] %s4157_s24 }
  0x73   : > { %s4159_s10 = scalar_lea.vmem %s4158_s24, 2048  ;;  %p4160_p11 = scmp.lt.s32.totalorder %s4511_s22, %s4158_s24 }
  0x74   : > { %p4155_p9 = pnand %p4154_p8, %p4405_p5  ;;  %p4161_p12 = scmp.lt.s32.totalorder %s4159_s10, %s4153_s29 }
  0x76   : > { %p4156_p10 = pneg %p4155_p9  ;;  %p4162_p4 = por %p4161_p12, %p4160_p11 }
  0x78   : > { %p4163_p6 = pnand %p4162_p4, %p4156_p10 }
  0x7a   : > { %4166 = shalt.err (!%p4163_p6)
}
  0x7b   : > { %s6948_s1 = smov 128   ;;  %s4545_s11 = scalar_lea.hbm %s6882_s3, %s4465_s21 }
  0x7c   : > { %3979 = dma.hbm_to_vmem [thread:$0]  (%p4405_p5), %s4508_s12, 1024, %s4511_s22, %s4515_s13, %s6948_s1, %s6948_s1, %s6897_s26  }
  0x7d   : > { %s361_s29 = scalar_lea.vmem [#allocation9], %s4462_s14  ;;  %s4167_s24 = scalar_lea.hbm %s4545_s11, 1024 }
  0x7e   : > { %s368_s23 = sshll.u32 %s361_s29, 4  ;;  %p4168_p1 = scmp.ne.s32.totalorder %s4545_s11, %s4167_s24  ;;  %s369_s23 = int_to_ptr.vmem [resolvable:$true] %s368_s23 }
  0x7f   : > { %s4171_s12 = scalar_lea.hbm %s6882_s3, 2048  ;;  %p4172_p3 = scmp.lt.s32.totalorder %s4545_s11, %s6882_s3 }
  0x80   : > { %p4169_p0 = pnand %p4168_p1, %p4405_p5  ;;  %p4173_p7 = scmp.lt.s32.totalorder %s4171_s12, %s4167_s24 }
  0x82   : > { %p4170_p2 = pneg %p4169_p0  ;;  %p4174_p8 = por %p4173_p7, %p4172_p3 }
  0x84   : > { %p4175_p9 = pnand %p4174_p8, %p4170_p2 }
  0x86   : > { %4178 = shalt.err (!%p4175_p9)
}
  0x87   : > { %s4179_s25 = scalar_lea.vmem %s369_s23, 1024  ;;  %s4308_s20 = smov [#allocation9]  }
  0x88   : > { %p4180_p10 = scmp.ne.s32.totalorder %s369_s23, %s4179_s25  ;;  %s4183_s29 = sshll.u32 %s4308_s20, 4  ;;  %s4184_s29 = int_to_ptr.vmem [resolvable:$false] %s4183_s29 }
  0x89   : > { %s4185_s4 = scalar_lea.vmem %s4184_s29, 2048  ;;  %p4186_p4 = scmp.lt.s32.totalorder %s369_s23, %s4184_s29 }
  0x8a   : > { %p4181_p11 = pnand %p4180_p10, %p4405_p5  ;;  %p4187_p6 = scmp.lt.s32.totalorder %s4185_s4, %s4179_s25 }
  0x8c   : > { %p4182_p12 = pneg %p4181_p11  ;;  %p4188_p1 = por %p4187_p6, %p4186_p4 }
  0x8e   : > { %p4189_p0 = pnand %p4188_p1, %p4182_p12 }
  0x90   : > { %4192 = shalt.err (!%p4189_p0)
}
  0x91   : > { %s6949_s2 = smov 8   ;;  %s4572_s10 = scalar_lea.hbm %s6884_s5, %s4465_s21 }
  0x92   : > { %3978 = dma.hbm_to_vmem [thread:$0]  (%p4405_p5), %s4545_s11, 1024, %s369_s23, %s4478_s0, %s6948_s1, %s6948_s1, %s6949_s2  }
  0x93   : > { %s403_s4 = scalar_lea.vmem [#allocation12], %s4462_s14  ;;  %s4193_s22 = scalar_lea.hbm %s4572_s10, 1024 }
  0x94   : > { %s410_s12 = sshll.u32 %s403_s4, 4  ;;  %p4194_p2 = scmp.ne.s32.totalorder %s4572_s10, %s4193_s22  ;;  %s411_s12 = int_to_ptr.vmem [resolvable:$true] %s410_s12 }
  0x95   : > { %s4197_s0 = scalar_lea.hbm %s6884_s5, 2048  ;;  %p4198_p8 = scmp.lt.s32.totalorder %s4572_s10, %s6884_s5 }
  0x96   : > { %p4195_p3 = pnand %p4194_p2, %p4405_p5  ;;  %p4199_p9 = scmp.lt.s32.totalorder %s4197_s0, %s4193_s22 }
  0x98   : > { %p4196_p7 = pneg %p4195_p3  ;;  %p4200_p10 = por %p4199_p9, %p4198_p8 }
  0x9a   : > { %p4201_p11 = pnand %p4200_p10, %p4196_p7 }
  0x9c   : > { %4204 = shalt.err (!%p4201_p11)
}
  0x9d   : > { %s4205_s14 = scalar_lea.vmem %s411_s12, 1024  ;;  %s4309_s21 = smov [#allocation12]  }
  0x9e   : > { %p4206_p12 = scmp.ne.s32.totalorder %s411_s12, %s4205_s14  ;;  %s4209_s29 = sshll.u32 %s4309_s21, 4  ;;  %s4210_s29 = int_to_ptr.vmem [resolvable:$false] %s4209_s29 }
  0x9f   : > { %s4211_s26 = scalar_lea.vmem %s4210_s29, 2048  ;;  %p4212_p1 = scmp.lt.s32.totalorder %s411_s12, %s4210_s29 }
  0xa0   : > { %p4207_p4 = pnand %p4206_p12, %p4405_p5  ;;  %p4213_p0 = scmp.lt.s32.totalorder %s4211_s26, %s4205_s14 }
  0xa2   : > { %p4208_p6 = pneg %p4207_p4  ;;  %p4214_p2 = por %p4213_p0, %p4212_p1 }
  0xa4   : > { %p4215_p3 = pnand %p4214_p2, %p4208_p6 }
  0xa6   : > { %4218 = shalt.err (!%p4215_p3)
}
  0xa7   : > { %3980 = dma.hbm_to_vmem [thread:$0]  (%p4405_p5), %s4572_s10, 1024, %s411_s12, %s4515_s13, %s6948_s1, %s6948_s1, %s6949_s2  }
  0xa8 PF: > { %422 = sbr.rel (%p4426_p13) target bundleno = 630 (0x276), region = 44 }
  0xad   : > { %p6950_p7 = scmp.eq.s32.totalorder %s4387_s9, 0 }
  0xaf   : > { %4262 = dma.done.wait (%p6950_p7), [#allocation5], 16   ;;  %p6951_p8 = pmov %p6950_p7 }
  0xb0   : > { %s4602_s24 = sand.u32 1, %s4287_s28   ;;  %p6952_p5 = scmp.ne.s32.totalorder %s6940_s16, 0 }
  0xb1   : > { %4264 = vsyncadd (%p6951_p8), [#allocation5], 4294967280  ;;  %s3934_s15 = smul.u32 384, %s4602_s24  ;;  %s429_s4 = scalar_lea.sflag [#allocation3], %s4602_s24 }
  0xb3   : > { %s4606_s22 = scalar_lea.vmem [#allocation6], %s3934_s15 }
  0xb4   : > { %4266 = dma.done.wait (%p6952_p5), %s429_s4, 6144  }
  0xb5   : > { %4268 = vsyncadd (%p6952_p5), %s429_s4, 4294961152  ;;  %s437_s19 = sand.u32 1, %s4387_s9   ;;  %s4614_s13 = sshll.u32 %s4602_s24, 6 }
  0xb6   : > { %s438_s1 = scalar_lea.sflag [#allocation8], %s437_s19  ;;  %s4617_s2 = scalar_lea.vmem [#allocation7], %s4614_s13 }
  0xb7   : > { %4270 = dma.done.wait (%p6952_p5), %s438_s1, 2048  }
  0xb8   : > { %4272 = vsyncadd (%p6952_p5), %s438_s1, 4294965248  ;;  %s4624_s10 = scalar_lea.vmem [#allocation9], %s4614_s13  ;;  %s456_s12 = scalar_lea.sflag [#allocation11], %s437_s19 }
  0xb9   : > { %s4627_s25 = scalar_lea.vmem [#allocation10], %s4614_s13 }
  0xba   : > { %4274 = dma.done.wait (%p6952_p5), %s456_s12, 2048  }
  0xbb   : > { %4276 = vsyncadd (%p6952_p5), %s456_s12, 4294965248  ;;  %s4634_s20 = scalar_lea.vmem [#allocation12], %s4614_s13 }
  0xbc   : > { %473 = sfence }
  0xbd   : > { %s550_s0 = sld [smem:[#allocation2]]  ;;  %v3695_v0 = vld [vmem:[%s4606_s22] sm:$0xff]   ;;  %v3886_v1 = vld [vmem:[%s4606_s22 + $0x8] sm:$0xff]   ;;  %v3887_v2 = vld [vmem:[%s4606_s22 + $0x10] sm:$0xff]   ;;  %p7079_p10 = scmp.ne.s32.totalorder %s6941_s17, 0 }
  0xbe   : > { %s3510_s11 = sld [smem:[#allocation2 + $0x1]]  ;;  %v3888_v3 = vld [vmem:[%s4606_s22 + $0x18] sm:$0xff]   ;;  %v3889_v4 = vld [vmem:[%s4606_s22 + $0x20] sm:$0xff]   ;;  %v3696_v5 = vunpack.c.l.bf16 %v3695_v0  ;;  %v3697_v6 = vunpack.c.h.bf16 %v3695_v0  ;;  %v3700_v7 = vunpack.c.l.bf16 %v3886_v1  ;;  %v3701_v8 = vunpack.c.h.bf16 %v3886_v1  ;;  %v3890_v9 = vld [vmem:[%s4606_s22 + $0x28] sm:$0xff]  }
  0xbf   : > { %s4641_s16 = sld [smem:[#allocation2 + $0x2]]  ;;  %v3891_v10 = vld [vmem:[%s4606_s22 + $0x30] sm:$0xff]   ;;  %v3704_v11 = vunpack.c.l.bf16 %v3887_v2  ;;  %v3705_v12 = vunpack.c.h.bf16 %v3887_v2  ;;  %v3708_v13 = vunpack.c.l.bf16 %v3888_v3  ;;  %v3712_v14 = vunpack.c.l.bf16 %v3889_v4  ;;  %v3892_v15 = vld [vmem:[%s4606_s22 + $0x38] sm:$0xff]   ;;  %v3893_v16 = vld [vmem:[%s4606_s22 + $0x40] sm:$0xff]  }
  0xc0   : > { %v3709_v17 = vunpack.c.h.bf16 %v3888_v3  ;;  %v3713_v19 = vunpack.c.h.bf16 %v3889_v4  ;;  %v4648_v21 = vld [vmem:[%s4606_s22 + $0x48] sm:$0xff]   ;;  %s4650_s23 = sld [smem:[#allocation2 + $0x3]]  ;;  %v3716_v22 = vunpack.c.l.bf16 %v3890_v9  ;;  %v3717_v23 = vunpack.c.h.bf16 %v3890_v9  ;;  %v4653_v26 = vld [vmem:[%s4606_s22 + $0x50] sm:$0xff]   ;;  %v4656_v27 = vld [vmem:[%s4606_s22 + $0x58] sm:$0xff]  }
  0xc1   : > { %v3720_v24 = vunpack.c.l.bf16 %v3891_v10  ;;  %v3721_v25 = vunpack.c.h.bf16 %v3891_v10  ;;  %v3724_v28 = vunpack.c.l.bf16 %v3892_v15  ;;  %v3725_v29 = vunpack.c.h.bf16 %v3892_v15  ;;  %v3897_v32 = vld [vmem:[%s4606_s22 + $0x60] sm:$0xff]   ;;  %v4662_v37 = vld [vmem:[%s4606_s22 + $0x68] sm:$0xff]   ;;  %s4670_s14 = sld [smem:[#allocation2 + $0x4]]  ;;  %v4683_v63 = vld [vmem:[%s4606_s22 + $0x70] sm:$0xff]  }
  0xc2   : > { %v3728_v30 = vunpack.c.l.bf16 %v3893_v16  ;;  %v3729_v31 = vunpack.c.h.bf16 %v3893_v16  ;;  %v3732_v35 = vunpack.c.l.bf16 %v4648_v21  ;;  %v3733_v36 = vunpack.c.h.bf16 %v4648_v21  ;;  %v3901_v58 = vld [vmem:[%s4606_s22 + $0x80] sm:$0xff]   ;;  %s4679_s21 = sld [smem:[#allocation2 + $0x5]] }
  0xc3   : > { %v567_v18 = vstv %s550_s0  ;;  %v3736_v38 = vunpack.c.l.bf16 %v4653_v26  ;;  %v3737_v39 = vunpack.c.h.bf16 %v4653_v26  ;;  %v3740_v40 = vunpack.c.l.bf16 %v4656_v27  ;;  %s4696_s29 = sld [smem:[#allocation2 + $0x6]]  ;;  %v4703_v26 = vld [vmem:[%s4606_s22 + $0xa8] sm:$0xff]  }
  0xc4   : > { %v594_v20 = vstv %s3510_s11  ;;  %v568_v33 = vmul.f32 %v3696_v5, %v567_v18  ;;  %v569_v42 = vmul.f32 %v3697_v6, %v567_v18  ;;  %v3741_v44 = vunpack.c.h.bf16 %v4656_v27  ;;  %s4712_s26 = sld [smem:[#allocation2 + $0x7]] }
  0xc5   : > { %v595_v34 = vmul.f32 %v3712_v14, %v594_v20  ;;  %v4668_v41 = vstv %s4641_s16  ;;  %v596_v43 = vmul.f32 %v3713_v19, %v594_v20  ;;  %v3744_v45 = vunpack.c.l.bf16 %v3897_v32  ;;  %s4730_s15 = sld [smem:[#allocation2 + $0x8]] }
  0xc6   : > { %v570_v46 = vmul.f32 %v3700_v7, %v567_v18  ;;  %v597_v47 = vmul.f32 %v3716_v22, %v594_v20  ;;  %v3745_v48 = vunpack.c.h.bf16 %v3897_v32  ;;  %v3748_v49 = vunpack.c.l.bf16 %v4662_v37  ;;  %v3909_v32 = vld [vmem:[%s4606_s22 + $0xc0] sm:$0xff]   ;;  %s4747_s4 = sld [smem:[#allocation2 + $0x9]] }
  0xc7   : > { %v571_v50 = vmul.f32 %v3701_v8, %v567_v18  ;;  %v572_v51 = vmul.f32 %v3704_v11, %v567_v18  ;;  %v603_v52 = vadd.f32 %v595_v34, %v568_v33  ;;  %v630_v53 = vmul.f32 %v3728_v30, %v4668_v41  ;;  %v4689_v8 = vld [vmem:[%s4606_s22 + $0x88] sm:$0xff]   ;;  %s4771_s19 = sld [smem:[#allocation2 + $0xa]] }
  0xc8   : > { %v573_v54 = vmul.f32 %v3705_v12, %v567_v18  ;;  %v574_v55 = vmul.f32 %v3708_v13, %v567_v18  ;;  %v598_v56 = vmul.f32 %v3717_v23, %v594_v20  ;;  %v4676_v57 = vstv %s4650_s23  ;;  %v3905_v13 = vld [vmem:[%s4606_s22 + $0xa0] sm:$0xff]   ;;  %s4797_s1 = sld [smem:[#allocation2 + $0xb]] }
  0xc9   : > { %v575_v59 = vmul.f32 %v3709_v17, %v567_v18  ;;  %v599_v60 = vmul.f32 %v3720_v24, %v594_v20  ;;  %v604_v61 = vadd.f32 %v596_v43, %v569_v42  ;;  %v631_v62 = vmul.f32 %v3729_v31, %v4668_v41 }
  0xca   : > { %v600_v0 = vmul.f32 %v3721_v25, %v594_v20  ;;  %v605_v1 = vadd.f32 %v597_v47, %v570_v46  ;;  %v632_v2 = vmul.f32 %v3732_v35, %v4668_v41  ;;  %v3749_v3 = vunpack.c.h.bf16 %v4662_v37 }
  0xcb   : > { %v601_v4 = vmul.f32 %v3724_v28, %v594_v20  ;;  %v638_v5 = vadd.f32 %v630_v53, %v603_v52  ;;  %v665_v6 = vmul.f32 %v3744_v45, %v4676_v57  ;;  %v3760_v7 = vunpack.c.l.bf16 %v3901_v58  ;;  %v3900_v52 = vld [vmem:[%s4606_s22 + $0x78] sm:$0xff]  }
  0xcc   : > { %v602_v9 = vmul.f32 %v3725_v29, %v594_v20  ;;  %v606_v10 = vadd.f32 %v598_v56, %v571_v50  ;;  %v3752_v11 = vunpack.c.l.bf16 %v4683_v63  ;;  %v4693_v12 = vstv %s4670_s14  ;;  %s3693_s14 = sshll.u32 %s4387_s9, 10 }
  0xcd   : > { %v607_v14 = vadd.f32 %v599_v60, %v572_v51  ;;  %v639_v15 = vadd.f32 %v631_v62, %v604_v61  ;;  %v666_v16 = vmul.f32 %v3745_v48, %v4676_v57  ;;  %v3761_v17 = vunpack.c.h.bf16 %v3901_v58  ;;  %v4723_v48 = vld [vmem:[%s4606_s22 + $0xc8] sm:$0xff]  }
  0xce   : > { %v608_v18 = vadd.f32 %v600_v0, %v573_v54  ;;  %v640_v19 = vadd.f32 %v632_v2, %v605_v1  ;;  %v667_v20 = vmul.f32 %v3748_v49, %v4676_v57  ;;  %v3764_v21 = vunpack.c.l.bf16 %v4689_v8  ;;  %v3913_v54 = vld [vmem:[%s4606_s22 + $0xe0] sm:$0xff]   ;;  %v4738_v2 = vld [vmem:[%s4606_s22 + $0xe8] sm:$0xff]  }
  0xcf   : > { %v609_v22 = vadd.f32 %v601_v4, %v574_v55  ;;  %v673_v23 = vadd.f32 %v665_v6, %v638_v5  ;;  %v700_v24 = vmul.f32 %v3760_v7, %v4693_v12  ;;  %v3776_v25 = vunpack.c.l.bf16 %v3905_v13  ;;  %v3917_v7 = vld [vmem:[%s4606_s22 + $0x100] sm:$0xff]  }
  0xd0   : > { %v633_v28 = vmul.f32 %v3733_v36, %v4668_v41  ;;  %v634_v29 = vmul.f32 %v3736_v38, %v4668_v41  ;;  %v635_v30 = vmul.f32 %v3737_v39, %v4668_v41  ;;  %v4709_v31 = vstv %s4679_s21 }
  0xd1   : > { %v636_v33 = vmul.f32 %v3740_v40, %v4668_v41  ;;  %v674_v34 = vadd.f32 %v666_v16, %v639_v15  ;;  %v701_v35 = vmul.f32 %v3761_v17, %v4693_v12  ;;  %v3777_v42 = vunpack.c.h.bf16 %v3905_v13 }
  0xd2   : > { %v610_v36 = vadd.f32 %v602_v9, %v575_v59  ;;  %v675_v43 = vadd.f32 %v667_v20, %v640_v19  ;;  %v702_v38 = vmul.f32 %v3764_v21, %v4693_v12  ;;  %v3780_v39 = vunpack.c.l.bf16 %v4703_v26  ;;  %v4757_v20 = vld [vmem:[%s4606_s22 + $0x108] sm:$0xff]  }
  0xd3   : > { %v637_v45 = vmul.f32 %v3741_v44, %v4668_v41  ;;  %v708_v46 = vadd.f32 %v700_v24, %v673_v23  ;;  %v735_v40 = vmul.f32 %v3776_v25, %v4709_v31  ;;  %v3792_v47 = vunpack.c.l.bf16 %v3909_v32  ;;  %v3921_v25 = vld [vmem:[%s4606_s22 + $0x120] sm:$0xff]  }
  0xd4   : > { %v641_v49 = vadd.f32 %v633_v28, %v606_v10  ;;  %v642_v50 = vadd.f32 %v634_v29, %v607_v14  ;;  %v643_v51 = vadd.f32 %v635_v30, %v608_v18  ;;  %v4727_v53 = vstv %s4696_s29 }
  0xd5   : > { %v644_v55 = vadd.f32 %v636_v33, %v609_v22  ;;  %v709_v27 = vadd.f32 %v701_v35, %v674_v34  ;;  %v736_v41 = vmul.f32 %v3777_v42, %v4709_v31  ;;  %v3793_v44 = vunpack.c.h.bf16 %v3909_v32  ;;  %v3903_v34 = vld [vmem:[%s4606_s22 + $0x90] sm:$0xff]  }
  0xd6   : > { %v3753_v56 = vunpack.c.h.bf16 %v4683_v63  ;;  %v710_v58 = vadd.f32 %v702_v38, %v675_v43  ;;  %v737_v59 = vmul.f32 %v3780_v39, %v4709_v31  ;;  %v3796_v60 = vunpack.c.l.bf16 %v4723_v48  ;;  %v4777_v39 = vld [vmem:[%s4606_s22 + $0x128] sm:$0xff]  }
  0xd7   : > { %v3756_v61 = vunpack.c.l.bf16 %v3900_v52  ;;  %v743_v62 = vadd.f32 %v735_v40, %v708_v46  ;;  %v770_v0 = vmul.f32 %v3792_v47, %v4727_v53  ;;  %v3808_v1 = vunpack.c.l.bf16 %v3913_v54  ;;  %v3904_v46 = vld [vmem:[%s4606_s22 + $0x98] sm:$0xff]  }
  0xd8   : > { %v645_v4 = vadd.f32 %v637_v45, %v610_v36  ;;  %v3757_v5 = vunpack.c.h.bf16 %v3900_v52  ;;  %v668_v6 = vmul.f32 %v3749_v3, %v4676_v57  ;;  %v4744_v63 = vstv %s4712_s26 }
  0xd9   : > { %v669_v9 = vmul.f32 %v3752_v11, %v4676_v57  ;;  %v744_v10 = vadd.f32 %v736_v41, %v709_v27  ;;  %v771_v13 = vmul.f32 %v3793_v44, %v4727_v53  ;;  %v3809_v14 = vunpack.c.h.bf16 %v3913_v54 }
  0xda   : > { %v670_v15 = vmul.f32 %v3753_v56, %v4676_v57  ;;  %v745_v16 = vadd.f32 %v737_v59, %v710_v58  ;;  %v772_v37 = vmul.f32 %v3796_v60, %v4727_v53  ;;  %v3812_v3 = vunpack.c.l.bf16 %v4738_v2 }
  0xdb   : > { %v671_v17 = vmul.f32 %v3756_v61, %v4676_v57  ;;  %v778_v18 = vadd.f32 %v770_v0, %v743_v62  ;;  %v805_v19 = vmul.f32 %v3808_v1, %v4744_v63  ;;  %v3824_v11 = vunpack.c.l.bf16 %v3917_v7  ;;  %v4793_v61 = vld [vmem:[%s4606_s22 + $0x148] sm:$0xff]  }
  0xdc   : > { %v672_v21 = vmul.f32 %v3757_v5, %v4676_v57  ;;  %v676_v22 = vadd.f32 %v668_v6, %v641_v49  ;;  %v3765_v23 = vunpack.c.h.bf16 %v4689_v8  ;;  %v4762_v24 = vstv %s4730_s15  ;;  %s6833_s15 = scalar_lea.hbm %s6887_s8, %s3693_s14 }
  0xdd   : > { %v677_v28 = vadd.f32 %v669_v9, %v642_v50  ;;  %v779_v29 = vadd.f32 %v771_v13, %v744_v10  ;;  %v806_v30 = vmul.f32 %v3809_v14, %v4744_v63  ;;  %v3825_v32 = vunpack.c.h.bf16 %v3917_v7  ;;  %v3925_v50 = vld [vmem:[%s4606_s22 + $0x140] sm:$0xff]  }
  0xde   : > { %v4766_v33 = vadd.f32 %v670_v15, %v643_v51  ;;  %v780_v35 = vadd.f32 %v772_v37, %v745_v16  ;;  %v807_v57 = vmul.f32 %v3812_v3, %v4744_v63  ;;  %v3828_v8 = vunpack.c.l.bf16 %v4757_v20  ;;  %v3929_v16 = vld [vmem:[%s4606_s22 + $0x160] sm:$0xff]   ;;  %v3907_v3 = vld [vmem:[%s4606_s22 + $0xb0] sm:$0xff]  }
  0xdf   : > { %v4773_v42 = vadd.f32 %v671_v17, %v644_v55  ;;  %v813_v36 = vadd.f32 %v805_v19, %v778_v18  ;;  %v840_v43 = vmul.f32 %v3824_v11, %v4762_v24  ;;  %v3840_v38 = vunpack.c.l.bf16 %v3921_v25  ;;  %v3908_v11 = vld [vmem:[%s4606_s22 + $0xb8] sm:$0xff]  }
  0xe0   : > { %v4779_v45 = vadd.f32 %v672_v21, %v645_v4  ;;  %v703_v40 = vmul.f32 %v3765_v23, %v4693_v12  ;;  %v3781_v47 = vunpack.c.h.bf16 %v4703_v26  ;;  %v4785_v49 = vstv %s4747_s4 }
  0xe1   : > { %v3768_v51 = vunpack.c.l.bf16 %v3903_v34  ;;  %v814_v52 = vadd.f32 %v806_v30, %v779_v29  ;;  %v841_v54 = vmul.f32 %v3825_v32, %v4762_v24  ;;  %v3841_v55 = vunpack.c.h.bf16 %v3921_v25  ;;  %v4816_v25 = vld [vmem:[%s4606_s22 + $0x168] sm:$0xff]  }
  0xe2   : > { %v3769_v27 = vunpack.c.h.bf16 %v3903_v34  ;;  %v815_v41 = vadd.f32 %v807_v57, %v780_v35  ;;  %v842_v44 = vmul.f32 %v3828_v8, %v4762_v24  ;;  %v3844_v56 = vunpack.c.l.bf16 %v4777_v39 }
  0xe3   : > { %v3772_v58 = vunpack.c.l.bf16 %v3904_v46  ;;  %v848_v59 = vadd.f32 %v840_v43, %v813_v36  ;;  %v875_v60 = vmul.f32 %v3840_v38, %v4785_v49  ;;  %v3856_v26 = vunpack.c.l.bf16 %v3925_v50 }
  0xe4   : > { %v3773_v62 = vunpack.c.h.bf16 %v3904_v46  ;;  %v711_v0 = vadd.f32 %v703_v40, %v676_v22  ;;  %v738_v1 = vmul.f32 %v3781_v47, %v4709_v31  ;;  %v3797_v4 = vunpack.c.h.bf16 %v4723_v48 }
  0xe5   : > { %v704_v5 = vmul.f32 %v3768_v51, %v4693_v12  ;;  %v849_v6 = vadd.f32 %v841_v54, %v814_v52  ;;  %v876_v7 = vmul.f32 %v3841_v55, %v4785_v49  ;;  %v3857_v9 = vunpack.c.h.bf16 %v3925_v50 }
  0xe6   : > { %v850_v10 = vadd.f32 %v842_v44, %v815_v41  ;;  %v877_v13 = vmul.f32 %v3844_v56, %v4785_v49  ;;  %v3860_v14 = vunpack.c.l.bf16 %v4793_v61  ;;  %v4804_v15 = vstv %s4771_s19  ;;  %s4318_s19 = smov [#allocation13]  }
  0xe7   : > { %v705_v48 = vmul.f32 %v3769_v27, %v4693_v12  ;;  %v706_v37 = vmul.f32 %v3772_v58, %v4693_v12  ;;  %v883_v17 = vadd.f32 %v875_v60, %v848_v59  ;;  %v910_v18 = vmul.f32 %v3856_v26, %v4804_v15  ;;  %v3911_v59 = vld [vmem:[%s4606_s22 + $0xd0] sm:$0xff]  }
  0xe8   : > { %v707_v19 = vmul.f32 %v3773_v62, %v4693_v12  ;;  %v746_v21 = vadd.f32 %v738_v1, %v711_v0  ;;  %v773_v22 = vmul.f32 %v3797_v4, %v4727_v53  ;;  %v3813_v23 = vunpack.c.h.bf16 %v4738_v2  ;;  %v3912_v62 = vld [vmem:[%s4606_s22 + $0xd8] sm:$0xff]  }
  0xe9   : > { %v712_v29 = vadd.f32 %v704_v5, %v677_v28  ;;  %v884_v30 = vadd.f32 %v876_v7, %v849_v6  ;;  %v911_v32 = vmul.f32 %v3857_v9, %v4804_v15  ;;  %v3872_v34 = vunpack.c.l.bf16 %v3929_v16 }
  0xea   : > { %v3784_v35 = vunpack.c.l.bf16 %v3907_v3  ;;  %v3785_v57 = vunpack.c.h.bf16 %v3907_v3  ;;  %v885_v8 = vadd.f32 %v877_v13, %v850_v10  ;;  %v912_v36 = vmul.f32 %v3860_v14, %v4804_v15 }
  0xeb   : > { %v3788_v12 = vunpack.c.l.bf16 %v3908_v11  ;;  %v918_v43 = vadd.f32 %v910_v18, %v883_v17  ;;  %v3873_v38 = vunpack.c.h.bf16 %v3929_v16  ;;  %v3876_v46 = vunpack.c.l.bf16 %v4816_v25 }
  0xec   : > { %v781_v2 = vadd.f32 %v773_v22, %v746_v21  ;;  %v808_v40 = vmul.f32 %v3813_v23, %v4744_v63  ;;  %v3829_v28 = vunpack.c.h.bf16 %v4757_v20  ;;  %v4824_v47 = vstv %s4797_s1  ;;  %s4223_s1 = sshll.u32 %s4318_s19, 4  ;;  %s4224_s1 = int_to_ptr.vmem [resolvable:$false] %s4223_s1 }
  0xed   : > { %v3789_v50 = vunpack.c.h.bf16 %v3908_v11  ;;  %v919_v51 = vadd.f32 %v911_v32, %v884_v30  ;;  %v945_v52 = vmul.f32 %v3872_v34, %v4824_v47  ;;  %v946_v54 = vmul.f32 %v3873_v38, %v4824_v47 }
  0xee   : > { %v713_v55 = vadd.f32 %v705_v48, %v4766_v33  ;;  %v739_v27 = vmul.f32 %v3784_v35, %v4709_v31  ;;  %v920_v41 = vadd.f32 %v912_v36, %v885_v8  ;;  %v947_v44 = vmul.f32 %v3876_v46, %v4824_v47 }
  0xef   : > { %v714_v56 = vadd.f32 %v706_v37, %v4773_v42  ;;  %v715_v20 = vadd.f32 %v707_v19, %v4779_v45  ;;  %v740_v58 = vmul.f32 %v3785_v57, %v4709_v31  ;;  %v4835_v60 = vadd.f32 %v945_v52, %v918_v43 }
  0xf0   : > { %v741_v26 = vmul.f32 %v3788_v12, %v4709_v31  ;;  %v816_v0 = vadd.f32 %v808_v40, %v781_v2  ;;  %v843_v33 = vmul.f32 %v3829_v28, %v4762_v24  ;;  %v3845_v1 = vunpack.c.h.bf16 %v4777_v39 }
  0xf1   : > { %v742_v4 = vmul.f32 %v3789_v50, %v4709_v31  ;;  %v4842_v5 = vadd.f32 %v946_v54, %v919_v51  ;;  %v961_v42 = vand.u32 2147483647, %v4835_v60  ;;  %v964_v45 = vand.u32 2139095040, %v4835_v60 }
  0xf2   : > { %v4846_v6 = vadd.f32 %v739_v27, %v712_v29  ;;  %v3800_v7 = vunpack.c.l.bf16 %v3911_v59  ;;  %v3801_v9 = vunpack.c.h.bf16 %v3911_v59  ;;  %v4848_v10 = vadd.f32 %v947_v44, %v920_v41 }
  0xf3   : > { %v4850_v13 = vadd.f32 %v740_v58, %v713_v55  ;;  %v3804_v14 = vunpack.c.l.bf16 %v3912_v62  ;;  %v3805_v16 = vunpack.c.h.bf16 %v3912_v62  ;;  %v965_v48 = vshrl.u32 %v964_v45, 23 }
  0xf4   : > { %v851_v39 = vadd.f32 %v843_v33, %v816_v0  ;;  %v878_v31 = vmul.f32 %v3845_v1, %v4785_v49  ;;  %v968_v37 = vand.u32 8388607, %v961_v42  ;;  %v1064_v3 = vand.u32 2147483647, %v4842_v5 }
  0xf5   : > { %v4856_v17 = vadd.f32 %v741_v26, %v714_v56  ;;  %v3861_v18 = vunpack.c.h.bf16 %v4793_v61  ;;  %v3609_v19 = vadd.s32 4294967169, %v965_v48  ;;  %v1067_v11 = vand.u32 2139095040, %v4842_v5 }
  0xf6   : > { %v4860_v21 = vadd.f32 %v742_v4, %v715_v20  ;;  %v4863_v22 = vmul.f32 %v3800_v7, %v4727_v53  ;;  %v4866_v23 = vmul.f32 %v3801_v9, %v4727_v53  ;;  %v1170_v29 = vand.u32 2139095040, %v4848_v10 }
  0xf7   : > { %v4870_v30 = vmul.f32 %v3804_v14, %v4727_v53  ;;  %v4873_v32 = vmul.f32 %v3805_v16, %v4727_v53  ;;  %v971_v61 = vadd.s32 1, %v3609_v19  ;;  %v1068_v34 = vshrl.u32 %v1067_v11, 23 }
  0xf8   : > { %v4875_v35 = vadd.f32 %v878_v31, %v851_v39  ;;  %v969_v57 = vor.u32 8388608, %v968_v37  ;;  %v1071_v8 = vand.u32 8388607, %v1064_v3  ;;  %v1171_v36 = vshrl.u32 %v1170_v29, 23 }
  0xf9   : > { %v4880_v12 = vmul.f32 %v3861_v18, %v4804_v15  ;;  %vm972_vm0 = vcmp.gt.s32.totalorder %v971_v61, 0  ;;  %v3613_v43 = vadd.s32 4294967169, %v1068_v34  ;;  %v4310_v52 = vmov 683565275  }
  0xfa   : > { %v973_v38 = vsel %vm972_vm0, %v971_v61, 0  ;;  %v3617_v46 = vadd.s32 4294967169, %v1171_v36  ;;  %v4882_v53 = vshll.u32 %v969_v57, 8  ;;  %v1072_v28 = vor.u32 8388608, %v1071_v8 }
  0xfb   : > { %v974_v2 = vshrl.u32 %v973_v38, 5  ;;  %v975_v40 = vand.u32 31, %v973_v38  ;;  %v1074_v50 = vadd.s32 1, %v3613_v43  ;;  %v4311_v55 = vmov 2475754826  }
  0xfc   : > { %v4312_v41 = vmov 2131351028   ;;  %v4313_v56 = vmov 2102212464   ;;  %v4314_v58 = vmov 920167782  }
  0xfd   : > { %v976_v51 = vsub.s32 32, %v975_v40  ;;  %v978_v54 = vshll.u32 %v4310_v52, %v975_v40  ;;  %v981_v27 = vshll.u32 %v4311_v55, %v975_v40  ;;  %v984_v44 = vshll.u32 %v4312_v41, %v975_v40 }
  0xfe   : > { %v987_v20 = vshll.u32 %v4313_v56, %v975_v40  ;;  %v990_v59 = vshll.u32 %v4314_v58, %v975_v40  ;;  %vm993_vm1 = vcmp.lt.s32.totalorder %v974_v2, 1  ;;  %v4889_v26 = vadd.s32 1, %v3617_v46 }
  0xff   : > { %v977_v62 = vshrl.u32 %v4310_v52, %v976_v51  ;;  %v979_v0 = vshrl.u32 %v4311_v55, %v976_v51  ;;  %v982_v33 = vshrl.u32 %v4312_v41, %v976_v51  ;;  %v985_v1 = vshrl.u32 %v4313_v56, %v976_v51 }
 0x100   : > { %v988_v4 = vshrl.u32 %v4314_v58, %v976_v51  ;;  %v4315_v45 = vmov 1326507024   ;;  %vm994_vm2 = vcmp.lt.s32.totalorder %v974_v2, 2  ;;  %vm996_vm3 = vcmp.lt.s32.totalorder %v974_v2, 4 }
 0x101   : > { %v991_v7 = vshrl.u32 %v4315_v45, %v976_v51  ;;  %v980_v9 = vor.u32 %v979_v0, %v978_v54  ;;  %v983_v14 = vor.u32 %v982_v33, %v981_v27  ;;  %v986_v16 = vor.u32 %v985_v1, %v984_v44 }
 0x102   : > { %vm1075_vm4 = vcmp.gt.s32.totalorder %v1074_v50, 0  ;;  %v989_v48 = vor.u32 %v988_v4, %v987_v20  ;;  %vm995_vm5 = vcmp.lt.s32.totalorder %v974_v2, 3  ;;  %v4900_v57 = vshll.u32 %v1072_v28, 8 }
 0x103   : > { %v992_v39 = vor.u32 %v991_v7, %v990_v59  ;;  %v1076_v31 = vsel %vm1075_vm4, %v1074_v50, 0  ;;  %v997_v37 = vsel %vm993_vm1, %v977_v62, %v980_v9  ;;  %v998_v18 = vsel %vm996_vm3, %v986_v16, 2102212464 }
 0x104   : > { %v1001_v19 = vsel %vm993_vm1, %v980_v9, %v983_v14  ;;  %v1005_v11 = vsel %vm993_vm1, %v983_v14, %v986_v16  ;;  %v999_v29 = vsel %vm995_vm5, %v983_v14, %v998_v18  ;;  %v1002_v61 = vsel %vm996_vm3, %v989_v48, 920167782 }
 0x105   : > { %v1006_v34 = vsel %vm996_vm3, %v992_v39, 1326507024  ;;  %v1003_v8 = vsel %vm995_vm5, %v986_v16, %v1002_v61  ;;  %v1077_v43 = vshrl.u32 %v1076_v31, 5  ;;  %v1078_v38 = vand.u32 31, %v1076_v31 }
 0x106   : > { %v1007_v36 = vsel %vm995_vm5, %v989_v48, %v1006_v34  ;;  %v1000_v46 = vsel %vm994_vm2, %v997_v37, %v999_v29  ;;  %v1004_v40 = vsel %vm994_vm2, %v1001_v19, %v1003_v8  ;;  %vm1178_vm6 = vcmp.gt.s32.totalorder %v4889_v26, 0 }
 0x107   : > { %v1008_v50 = vsel %vm994_vm2, %v1005_v11, %v1007_v36  ;;  %v4911_v27 = vmul.u32.u64.low %v4882_v53, %v1004_v40  ;;  %v4912_v28 = vmul.u32.u64.high %v4882_v53, %v1004_v40, %v4911_v27  ;;  %v1079_v44 = vsub.s32 32, %v1078_v38 }
 0x108   : > { %v4907_v51 = vmul.u32.u64.low %v4882_v53, %v1008_v50  ;;  %v4908_v54 = vmul.u32.u64.high %v4882_v53, %v1008_v50, %v4907_v51  ;;  %v1081_v20 = vshll.u32 %v4310_v52, %v1078_v38  ;;  %v1084_v59 = vshll.u32 %v4311_v55, %v1078_v38 }
 0x109   : > { %v1087_v62 = vshll.u32 %v4312_v41, %v1078_v38  ;;  %v1016_v2 = vmul.u32 %v4882_v53, %v1000_v46  ;;  %v1090_v0 = vshll.u32 %v4313_v56, %v1078_v38  ;;  %v1093_v33 = vshll.u32 %v4314_v58, %v1078_v38 }
 0x10a   : > { %vm1096_vm7 = vcmp.lt.s32.totalorder %v1077_v43, 1  ;;  %v1080_v1 = vshrl.u32 %v4310_v52, %v1079_v44  ;;  %v1082_v4 = vshrl.u32 %v4311_v55, %v1079_v44  ;;  %v1085_v7 = vshrl.u32 %v4312_v41, %v1079_v44 }
 0x10b   : > { %v1088_v9 = vshrl.u32 %v4313_v56, %v1079_v44  ;;  %vm1018_vm8 = vc.u32 %v4908_v54, %v4911_v27  ;;  %v1019_v14 = vadd.s32 1, %v4912_v28  ;;  %v1091_v53 = vshrl.u32 %v4314_v58, %v1079_v44 }
 0x10c   : > { %vm1097_vm9 = vcmp.lt.s32.totalorder %v1077_v43, 2  ;;  %v1083_v16 = vor.u32 %v1082_v4, %v1081_v20  ;;  %v1086_v48 = vor.u32 %v1085_v7, %v1084_v59  ;;  %v1094_v31 = vshrl.u32 %v4315_v45, %v1079_v44 }
 0x10d   : > { %v1089_v39 = vor.u32 %v1088_v9, %v1087_v62  ;;  %v1020_v37 = vsel %vm1018_vm8, %v1019_v14, %v4912_v28  ;;  %v1092_v18 = vor.u32 %v1091_v53, %v1090_v0  ;;  %vm1098_vm10 = vcmp.lt.s32.totalorder %v1077_v43, 3  ;;  %v3915_v62 = vld [vmem:[%s4606_s22 + $0xf0] sm:$0xff]  }
 0x10e   : > { %vm1099_vm11 = vcmp.lt.s32.totalorder %v1077_v43, 4  ;;  %v4931_v19 = vadd.s32 %v1020_v37, %v1016_v2  ;;  %v1095_v11 = vor.u32 %v1094_v31, %v1093_v33  ;;  %v1100_v29 = vsel %vm1096_vm7, %v1080_v1, %v1083_v16 }
 0x10f   : > { %v1101_v61 = vsel %vm1099_vm11, %v1089_v39, 2102212464  ;;  %v1104_v8 = vsel %vm1096_vm7, %v1083_v16, %v1086_v48  ;;  %v1105_v36 = vsel %vm1099_vm11, %v1092_v18, 920167782  ;;  %v1108_v38 = vsel %vm1096_vm7, %v1086_v48, %v1089_v39 }
 0x110   : > { %v1102_v34 = vsel %vm1098_vm10, %v1086_v48, %v1101_v61  ;;  %v3877_v46 = vunpack.c.h.bf16 %v4816_v25  ;;  %v1106_v40 = vsel %vm1098_vm10, %v1089_v39, %v1105_v36  ;;  %v1109_v50 = vsel %vm1099_vm11, %v1095_v11, 1326507024 }
 0x111   : > { %v1179_v51 = vsel %vm1178_vm6, %v4889_v26, 0  ;;  %v1022_v28 = vadd.s32 536870912, %v4931_v19  ;;  %v1107_v44 = vsel %vm1097_vm9, %v1104_v8, %v1106_v40  ;;  %v1110_v20 = vsel %vm1098_vm10, %v1092_v18, %v1109_v50 }
 0x112   : > { %v1167_v59 = vand.u32 2147483647, %v4848_v10  ;;  %v1103_v2 = vsel %vm1097_vm9, %v1100_v29, %v1102_v34  ;;  %v1111_v25 = vsel %vm1097_vm9, %v1108_v38, %v1110_v20  ;;  %v1181_v4 = vand.u32 31, %v1179_v51 }
 0x113   : > { %v4950_v0 = vmul.u32.u64.low %v4900_v57, %v1107_v44  ;;  %v4951_v33 = vmul.u32.u64.high %v4900_v57, %v1107_v44, %v4950_v0  ;;  %v4955_v26 = vmul.u32.u64.low %v4900_v57, %v1111_v25  ;;  %v4956_v1 = vmul.u32.u64.high %v4900_v57, %v1111_v25, %v4955_v26 }
 0x114   : > { %v782_v7 = vadd.f32 %v4863_v22, %v4846_v6  ;;  %v4962_v9 = vadd.f32 %v4866_v23, %v4850_v13  ;;  %v4966_v43 = vadd.f32 %v4870_v30, %v4856_v17  ;;  %v4970_v14 = vadd.f32 %v4873_v32, %v4860_v21  ;;  %v3916_v23 = vld [vmem:[%s4606_s22 + $0xf8] sm:$0xff]  }
 0x115   : > { %v3816_v53 = vunpack.c.l.bf16 %v3915_v62  ;;  %v921_v16 = vadd.f32 %v4880_v12, %v4875_v35  ;;  %v1119_v48 = vmul.u32 %v4900_v57, %v1103_v2  ;;  %v1182_v39 = vsub.s32 32, %v1181_v4 }
 0x116   : > { %v948_v6 = vmul.f32 %v3877_v46, %v4824_v47  ;;  %v4976_v22 = vshrl.u32 %v1022_v28, 30  ;;  %v1122_v13 = vadd.s32 1, %v4951_v33  ;;  %v1174_v17 = vand.u32 8388607, %v1167_v59 }
 0x117   : > { %vm1121_vm12 = vc.u32 %v4956_v1, %v4950_v0  ;;  %v4984_v21 = vshrl.u32 %v1179_v51, 5  ;;  %v1184_v30 = vshll.u32 %v4310_v52, %v1181_v4  ;;  %v1187_v32 = vshll.u32 %v4311_v55, %v1181_v4  ;;  %v3919_v51 = vld [vmem:[%s4606_s22 + $0x110] sm:$0xff]  }
 0x118   : > { %v1123_v35 = vsel %vm1121_vm12, %v1122_v13, %v4951_v33  ;;  %v1185_v12 = vshrl.u32 %v4311_v55, %v1182_v39  ;;  %v1190_v57 = vshll.u32 %v4312_v41, %v1181_v4  ;;  %v1193_v31 = vshll.u32 %v4313_v56, %v1181_v4 }
 0x119   : > { %v1124_v37 = vadd.s32 %v1123_v35, %v1119_v48  ;;  %v1188_v18 = vshrl.u32 %v4312_v41, %v1182_v39  ;;  %v1191_v11 = vshrl.u32 %v4313_v56, %v1182_v39  ;;  %v1194_v29 = vshrl.u32 %v4314_v58, %v1182_v39 }
 0x11a   : > { %v3817_v61 = vunpack.c.h.bf16 %v3915_v62  ;;  %v3820_v34 = vunpack.c.l.bf16 %v3916_v23  ;;  %v809_v8 = vmul.f32 %v3816_v53, %v4744_v63  ;;  %v1024_v36 = vshll.u32 %v4976_v22, 30 }
 0x11b   : > { %v4997_v38 = vadd.f32 %v948_v6, %v921_v16  ;;  %v1125_v46 = vadd.s32 536870912, %v1124_v37  ;;  %v1175_v40 = vor.u32 8388608, %v1174_v17  ;;  %v1186_v50 = vor.u32 %v1185_v12, %v1184_v30  ;;  %v5016_v17 = vld [vmem:[%s4606_s22 + $0x130] sm:$0xff]  }
 0x11c   : > { %v1189_v28 = vor.u32 %v1188_v18, %v1187_v32  ;;  %v1195_v44 = vor.u32 %v1194_v29, %v1193_v31  ;;  %v1196_v20 = vshll.u32 %v4314_v58, %v1181_v4  ;;  %v1197_v2 = vshrl.u32 %v4315_v45, %v1182_v39 }
 0x11d   : > { %v1192_v25 = vor.u32 %v1191_v11, %v1190_v57  ;;  %vm1199_vm13 = vcmp.lt.s32.totalorder %v4984_v21, 1  ;;  %vm1201_vm14 = vcmp.lt.s32.totalorder %v4984_v21, 3  ;;  %vm1202_vm15 = vcmp.lt.s32.totalorder %v4984_v21, 4  ;;  %v3920_v57 = vld [vmem:[%s4606_s22 + $0x118] sm:$0xff]  }
 0x11e   : > { %v5006_v62 = vsub.s32 %v4931_v19, %v1024_v36  ;;  %v5008_v33 = vshrl.u32 %v1125_v46, 30  ;;  %v1198_v26 = vor.u32 %v1197_v2, %v1196_v20  ;;  %v1208_v53 = vsel %vm1202_vm15, %v1195_v44, 920167782 }
 0x11f   : > { %v3821_v4 = vunpack.c.h.bf16 %v3916_v23  ;;  %v810_v16 = vmul.f32 %v3817_v61, %v4744_v63  ;;  %v3832_v48 = vunpack.c.l.bf16 %v3919_v51  ;;  %v1183_v6 = vshrl.u32 %v4310_v52, %v1182_v39 }
 0x120   : > { %v811_v13 = vmul.f32 %v3820_v34, %v4744_v63  ;;  %vm1200_vm0 = vcmp.lt.s32.totalorder %v4984_v21, 2  ;;  %v1207_v19 = vsel %vm1199_vm13, %v1186_v50, %v1189_v28  ;;  %v1273_v30 = vand.u32 2139095040, %v4997_v38  ;;  %v5068_v21 = vld [vmem:[%s4606_s22 + $0x170] sm:$0xff]  }
 0x121   : > { %v1204_v32 = vsel %vm1202_vm15, %v1192_v25, 2102212464  ;;  %v1209_v23 = vsel %vm1201_vm14, %v1192_v25, %v1208_v53  ;;  %v1211_v39 = vsel %vm1199_vm13, %v1189_v28, %v1192_v25  ;;  %v1212_v35 = vsel %vm1202_vm15, %v1198_v26, 1326507024 }
 0x122   : > { %v817_v12 = vadd.f32 %v809_v8, %v782_v7  ;;  %v1027_v31 = vsub.s32 0, %v5006_v62  ;;  %v1127_v18 = vshll.u32 %v5008_v33, 30  ;;  %v1215_v11 = vshll.u32 %v1175_v40, 8 }
 0x123   : > { %v844_v29 = vmul.f32 %v3832_v48, %v4762_v24  ;;  %v3848_v61 = vunpack.c.l.bf16 %v5016_v17  ;;  %v1203_v34 = vsel %vm1199_vm13, %v1183_v6, %v1186_v50  ;;  %v1213_v36 = vsel %vm1201_vm14, %v1195_v44, %v1212_v35  ;;  %v5047_v50 = vld [vmem:[%s4606_s22 + $0x150] sm:$0xff]  }
 0x124   : > { %v1205_v7 = vsel %vm1201_vm14, %v1189_v28, %v1204_v32  ;;  %v1210_v8 = vsel %vm1200_vm0, %v1207_v19, %v1209_v23  ;;  %v1214_v46 = vsel %vm1200_vm0, %v1211_v39, %v1213_v36  ;;  %v1274_v40 = vshrl.u32 %v1273_v30, 23 }
 0x125   : > { %v812_v20 = vmul.f32 %v3821_v4, %v4744_v63  ;;  %v3833_v2 = vunpack.c.h.bf16 %v3919_v51  ;;  %v3836_v25 = vunpack.c.l.bf16 %v3920_v57  ;;  %v3837_v26 = vunpack.c.h.bf16 %v3920_v57 }
 0x126   : > { %v3610_v44 = vmin.u32 %v1027_v31, %v5006_v62  ;;  %v5050_v53 = vsub.s32 %v1124_v37, %v1127_v18  ;;  %v5052_v28 = vmul.u32.u64.low %v1215_v11, %v1214_v46  ;;  %v5053_v48 = vmul.u32.u64.high %v1215_v11, %v1214_v46, %v5052_v28  ;;  %v3924_v31 = vld [vmem:[%s4606_s22 + $0x138] sm:$0xff]  }
 0x127   : > { %v1206_v6 = vsel %vm1200_vm0, %v1203_v34, %v1205_v7  ;;  %v5057_v19 = vmul.u32.u64.low %v1215_v11, %v1210_v8  ;;  %v5058_v30 = vmul.u32.u64.high %v1215_v11, %v1210_v8, %v5057_v19  ;;  %v3621_v63 = vadd.s32 4294967169, %v1274_v40 }
 0x128   : > { %v818_v51 = vadd.f32 %v810_v16, %v4962_v9  ;;  %v852_v4 = vadd.f32 %v844_v29, %v817_v12  ;;  %v879_v32 = vmul.f32 %v3848_v61, %v4785_v49  ;;  %v3864_v23 = vunpack.c.l.bf16 %v5047_v50 }
 0x129   : > { %v819_v37 = vadd.f32 %v811_v13, %v4966_v43  ;;  %v820_v39 = vadd.f32 %v812_v20, %v4970_v14  ;;  %v845_v35 = vmul.f32 %v3833_v2, %v4762_v24  ;;  %v1280_v57 = vadd.s32 1, %v3621_v63 }
 0x12a   : > { %v1029_v18 = vclz %v3610_v44  ;;  %v1130_v34 = vsub.s32 0, %v5050_v53  ;;  %v1222_v36 = vmul.u32 %v1215_v11, %v1206_v6  ;;  %vm1224_vm1 = vc.u32 %v5053_v48, %v5057_v19 }
 0x12b   : > { %v846_v9 = vmul.f32 %v3836_v25, %v4762_v24  ;;  %v847_v16 = vmul.f32 %v3837_v26, %v4762_v24  ;;  %v1225_v43 = vadd.s32 1, %v5058_v30  ;;  %vm1281_vm2 = vcmp.gt.s32.totalorder %v1280_v57, 0 }
 0x12c   : > { %v887_v14 = vadd.f32 %v879_v32, %v852_v4  ;;  %v914_v13 = vmul.f32 %v3864_v23, %v4804_v15  ;;  %v3880_v12 = vunpack.c.l.bf16 %v5068_v21  ;;  %v1282_v29 = vsel %vm1281_vm2, %v1280_v57, 0 }
 0x12d   : > { %v3849_v61 = vunpack.c.h.bf16 %v5016_v17  ;;  %v3852_v7 = vunpack.c.l.bf16 %v3924_v31  ;;  %v1226_v11 = vsel %vm1224_vm1, %v1225_v43, %v5058_v30  ;;  %v1270_v8 = vand.u32 2147483647, %v4997_v38 }
 0x12e   : > { %v3611_v46 = vadd.s32 4294967294, %v1029_v18  ;;  %v3614_v40 = vmin.u32 %v1130_v34, %v5050_v53  ;;  %v1227_v24 = vadd.s32 %v1226_v11, %v1222_v36  ;;  %v1284_v20 = vand.u32 31, %v1282_v29 }
 0x12f   : > { %v3853_v2 = vunpack.c.h.bf16 %v3924_v31  ;;  %v922_v25 = vadd.f32 %v914_v13, %v887_v14  ;;  %v949_v26 = vmul.f32 %v3880_v12, %v4824_v47  ;;  %v853_v6 = vadd.f32 %v845_v35, %v818_v51 }
 0x130   : > { %v1228_v44 = vadd.s32 536870912, %v1227_v24  ;;  %v1285_v28 = vsub.s32 32, %v1284_v20  ;;  %v854_v63 = vadd.f32 %v846_v9, %v819_v37  ;;  %v855_v4 = vadd.f32 %v847_v16, %v820_v39 }
 0x131   : > { %v880_v17 = vmul.f32 %v3849_v61, %v4785_v49  ;;  %v881_v30 = vmul.f32 %v3852_v7, %v4785_v49  ;;  %vm3612_vm3 = vcmp.lt.s32.totalorder %v3611_v46, 0  ;;  %v1132_v32 = vclz %v3614_v40 }
 0x132   : > { %v1277_v23 = vand.u32 8388607, %v1270_v8  ;;  %v1287_v57 = vshll.u32 %v4310_v52, %v1284_v20  ;;  %v1288_v31 = vshrl.u32 %v4311_v55, %v1285_v28  ;;  %v1290_v18 = vshll.u32 %v4311_v55, %v1284_v20 }
 0x133   : > { %v1291_v34 = vshrl.u32 %v4312_v41, %v1285_v28  ;;  %v882_v51 = vmul.f32 %v3853_v2, %v4785_v49  ;;  %v5093_v37 = vadd.f32 %v949_v26, %v922_v25  ;;  %v5095_v39 = vshrl.u32 %v1228_v44, 30 }
 0x134   : > { %v1283_v35 = vshrl.u32 %v1282_v29, 5  ;;  %v5097_v36 = vadd.f32 %v880_v17, %v853_v6  ;;  %v1293_v9 = vshll.u32 %v4312_v41, %v1284_v20  ;;  %v1294_v16 = vshrl.u32 %v4313_v56, %v1285_v28 }
 0x135   : > { %v1296_v43 = vshll.u32 %v4313_v56, %v1284_v20  ;;  %v5102_v14 = vsel %vm3612_vm3, 0, %v3611_v46  ;;  %v3615_v13 = vadd.s32 4294967294, %v1132_v32  ;;  %v1278_v12 = vor.u32 8388608, %v1277_v23 }
 0x136   : > { %v1297_v61 = vshrl.u32 %v4314_v58, %v1285_v28  ;;  %v1289_v49 = vor.u32 %v1288_v31, %v1287_v57  ;;  %v1292_v7 = vor.u32 %v1291_v34, %v1290_v18  ;;  %v1299_v11 = vshll.u32 %v4314_v58, %v1284_v20 }
 0x137   : > { %v1300_v29 = vshrl.u32 %v4315_v45, %v1285_v28  ;;  %v1230_v40 = vshll.u32 %v5095_v39, 30  ;;  %vm1302_vm4 = vcmp.lt.s32.totalorder %v1283_v35, 1  ;;  %v1376_v25 = vand.u32 2139095040, %v5093_v37 }
 0x138   : > { %v1298_v2 = vor.u32 %v1297_v61, %v1296_v43  ;;  %v5109_v26 = vadd.f32 %v881_v30, %v854_v63  ;;  %v5111_v46 = vadd.f32 %v882_v51, %v855_v4  ;;  %v1037_v44 = vsub.s32 4294967266, %v5102_v14  ;;  %v3928_v51 = vld [vmem:[%s4606_s22 + $0x158] sm:$0xff]  }
 0x139   : > { %v1295_v6 = vor.u32 %v1294_v16, %v1293_v9  ;;  %vm3616_vm5 = vcmp.lt.s32.totalorder %v3615_v13, 0  ;;  %v1286_v17 = vshrl.u32 %v4310_v52, %v1285_v28  ;;  %vm1304_vm6 = vcmp.lt.s32.totalorder %v1283_v35, 3 }
 0x13a   : > { %v1318_v20 = vshll.u32 %v1278_v12, 8  ;;  %v1301_v32 = vor.u32 %v1300_v29, %v1299_v11  ;;  %vm1303_vm7 = vcmp.lt.s32.totalorder %v1283_v35, 2  ;;  %vm1305_vm8 = vcmp.lt.s32.totalorder %v1283_v35, 4 }
 0x13b   : > { %v1310_v23 = vsel %vm1302_vm4, %v1289_v49, %v1292_v7  ;;  %v5116_v57 = vsub.s32 %v1227_v24, %v1230_v40  ;;  %v1307_v63 = vsel %vm1305_vm8, %v1295_v6, 2102212464  ;;  %v1311_v4 = vsel %vm1305_vm8, %v1298_v2, 920167782 }
 0x13c   : > { %v1377_v30 = vshrl.u32 %v1376_v25, 23  ;;  %v1017_v31 = vadd.s32 %v4911_v27, %v4908_v54  ;;  %v1033_v18 = vsub.s32 32, %v5102_v14  ;;  %v1135_v28 = vsel %vm3616_vm5, 0, %v3615_v13 }
 0x13d   : > { %v1312_v34 = vsel %vm1304_vm6, %v1295_v6, %v1311_v4  ;;  %v1038_v9 = vadd.s32 127, %v1037_v44  ;;  %v1306_v16 = vsel %vm1302_vm4, %v1286_v17, %v1289_v49  ;;  %v1314_v43 = vsel %vm1302_vm4, %v1292_v7, %v1295_v6 }
 0x13e   : > { %v1313_v24 = vsel %vm1303_vm7, %v1310_v23, %v1312_v34  ;;  %v1308_v12 = vsel %vm1304_vm6, %v1292_v7, %v1307_v63  ;;  %v1315_v61 = vsel %vm1305_vm8, %v1301_v32, 1326507024  ;;  %v1140_v54 = vsub.s32 4294967266, %v1135_v28 }
 0x13f   : > { %v5130_v11 = vmul.u32.u64.low %v1318_v20, %v1313_v24  ;;  %v5131_v29 = vmul.u32.u64.high %v1318_v20, %v1313_v24, %v5130_v11  ;;  %v1233_v27 = vsub.s32 0, %v5116_v57  ;;  %v1316_v13 = vsel %vm1304_vm6, %v1298_v2, %v1315_v61 }
 0x140   : > { %v3625_v40 = vadd.s32 4294967169, %v1377_v30  ;;  %v3865_v49 = vunpack.c.h.bf16 %v5047_v50  ;;  %v3868_v25 = vunpack.c.l.bf16 %v3928_v51  ;;  %v3869_v44 = vunpack.c.h.bf16 %v3928_v51 }
 0x141   : > { %v1317_v6 = vsel %vm1303_vm7, %v1314_v43, %v1316_v13  ;;  %v1034_v7 = vshll.u32 %v5006_v62, %v5102_v14  ;;  %v1035_v17 = vshrl.u32 %v1017_v31, %v1033_v18  ;;  %v1039_v32 = vshll.u32 %v1038_v9, 23  ;;  %v5153_v9 = vld [vmem:[%s4606_s22 + $0x178] sm:$0xff]   ;;  %s3673_s22 = sshll.u32 %s4387_s9, 6 }
 0x142   : > { %v1309_v23 = vsel %vm1303_vm7, %v1306_v16, %v1308_v12  ;;  %v1120_v63 = vadd.s32 %v4950_v0, %v4956_v1  ;;  %v1136_v4 = vsub.s32 32, %v1135_v28  ;;  %v1141_v50 = vadd.s32 127, %v1140_v54 }
 0x143   : > { %v5143_v2 = vmul.u32.u64.low %v1318_v20, %v1317_v6  ;;  %v5144_v30 = vmul.u32.u64.high %v1318_v20, %v1317_v6, %v5143_v2  ;;  %v3618_v34 = vmin.u32 %v1233_v27, %v5116_v57  ;;  %v1328_v51 = vadd.s32 1, %v5131_v29 }
 0x144   : > { %v1383_v24 = vadd.s32 1, %v3625_v40  ;;  %v915_v62 = vmul.f32 %v3865_v49, %v4804_v15  ;;  %v916_v14 = vmul.f32 %v3868_v25, %v4804_v15  ;;  %v917_v35 = vmul.f32 %v3869_v44, %v4804_v15 }
 0x145   : > { %v1325_v31 = vmul.u32 %v1318_v20, %v1309_v23  ;;  %v3881_v18 = vunpack.c.h.bf16 %v5068_v21  ;;  %v1036_v0 = vor.u32 %v1035_v17, %v1034_v7  ;;  %v1040_v1 = vor.u32 4788187, %v1039_v32 }
 0x146   : > { %vm1384_vm9 = vcmp.gt.s32.totalorder %v1383_v24, 0  ;;  %v1137_v16 = vshll.u32 %v5050_v53, %v1135_v28  ;;  %vm1327_vm10 = vc.u32 %v5144_v30, %v5130_v11  ;;  %v1373_v43 = vand.u32 2147483647, %v5093_v37 }
 0x147   : > { %v1385_v12 = vsel %vm1384_vm9, %v1383_v24, 0  ;;  %v1138_v61 = vshrl.u32 %v1120_v63, %v1136_v4  ;;  %v1142_v54 = vshll.u32 %v1141_v50, 23  ;;  %v1235_v27 = vclz %v3618_v34 }
 0x148   : > { %v1329_v15 = vsel %vm1327_vm10, %v1328_v51, %v5131_v29  ;;  %v923_v21 = vadd.f32 %v915_v62, %v5097_v36  ;;  %v1387_v13 = vand.u32 31, %v1385_v12  ;;  %v5162_v40 = vadd.f32 %v916_v14, %v5109_v26 }
 0x149   : > { %v1330_v20 = vadd.s32 %v1329_v15, %v1325_v31  ;;  %v5165_v53 = vadd.f32 %v917_v35, %v5111_v46  ;;  %v3884_v28 = vunpack.c.l.bf16 %v5153_v9  ;;  %v950_v49 = vmul.f32 %v3881_v18, %v4824_v47 }
 0x14a   : > { %v1041_v25 = vand.u32 2147483647, %v1040_v1  ;;  %v1043_v44 = vcvt.s32.f32 %v1036_v0  ;;  %v1388_v7 = vsub.s32 32, %v1387_v13  ;;  %v1139_v17 = vor.u32 %v1138_v61, %v1137_v16 }
 0x14b   : > { %v1331_v6 = vadd.s32 536870912, %v1330_v20  ;;  %v1143_v29 = vor.u32 4788187, %v1142_v54  ;;  %v3619_v32 = vadd.s32 4294967294, %v1235_v27  ;;  %v1380_v36 = vand.u32 8388607, %v1373_v43 }
 0x14c   : > { %v1390_v26 = vshll.u32 %v4310_v52, %v1387_v13  ;;  %v1391_v46 = vshrl.u32 %v4311_v55, %v1388_v7  ;;  %v1393_v63 = vshll.u32 %v4311_v55, %v1387_v13  ;;  %v3885_v4 = vunpack.c.h.bf16 %v5153_v9 }
 0x14d   : > { %v5171_v23 = vshrl.u32 %v1331_v6, 30  ;;  %v5177_v2 = vadd.f32 %v950_v49, %v923_v21  ;;  %v1386_v50 = vshrl.u32 %v1385_v12, 5  ;;  %v1394_v34 = vshrl.u32 %v4312_v41, %v1388_v7 }
 0x14e   : > { %v1044_v51 = vmul.f32 %v1043_v44, %v1041_v25  ;;  %v1396_v62 = vshll.u32 %v4312_v41, %v1387_v13  ;;  %v1397_v14 = vshrl.u32 %v4313_v56, %v1388_v7  ;;  %v1144_v35 = vand.u32 2147483647, %v1143_v29 }
 0x14f   : > { %v1333_v24 = vshll.u32 %v5171_v23, 30  ;;  %v1146_v31 = vcvt.s32.f32 %v1139_v17  ;;  %vm3620_vm11 = vcmp.lt.s32.totalorder %v3619_v32, 0  ;;  %v1381_v18 = vor.u32 8388608, %v1380_v36 }
 0x150   : > { %vm963_vm12 = vcmp.lt.s32.totalorder %v4835_v60, 0  ;;  %v1392_v1 = vor.u32 %v1391_v46, %v1390_v26  ;;  %v1395_v16 = vor.u32 %v1394_v34, %v1393_v63  ;;  %v1399_v12 = vshll.u32 %v4313_v56, %v1387_v13 }
 0x151   : > { %v5184_v0 = vsub.s32 %v1330_v20, %v1333_v24  ;;  %v1389_v61 = vshrl.u32 %v4310_v52, %v1388_v7  ;;  %v1400_v54 = vshrl.u32 %v4314_v58, %v1388_v7  ;;  %v1402_v27 = vshll.u32 %v4314_v58, %v1387_v13 }
 0x152   : > { %vm1405_vm13 = vcmp.lt.s32.totalorder %v1386_v50, 1  ;;  %v1398_v21 = vor.u32 %v1397_v14, %v1396_v62  ;;  %v1403_v49 = vshrl.u32 %v4315_v45, %v1388_v7  ;;  %v1479_v25 = vand.u32 2139095040, %v5177_v2 }
 0x153   : > { %v1336_v15 = vsub.s32 0, %v5184_v0  ;;  %vm5195_vm14 = vcmp.le.f32.partialorder %v961_v42, 0.7853982  ;;  %v5200_v44 = vsel %vm3620_vm11, 0, %v3619_v32  ;;  %v1401_v6 = vor.u32 %v1400_v54, %v1399_v12 }
 0x154   : > { %vm1407_vm15 = vcmp.lt.s32.totalorder %v1386_v50, 3  ;;  %vm1408_vm0 = vcmp.lt.s32.totalorder %v1386_v50, 4  ;;  %vm1406_vm1 = vcmp.lt.s32.totalorder %v1386_v50, 2  ;;  %v1413_v17 = vsel %vm1405_vm13, %v1392_v1, %v1395_v16 }
 0x155   : > { %v3622_v13 = vmin.u32 %v1336_v15, %v5184_v0  ;;  %v1421_v7 = vshll.u32 %v1381_v18, 8  ;;  %v1404_v29 = vor.u32 %v1403_v49, %v1402_v27  ;;  %v1409_v36 = vsel %vm1405_vm13, %v1389_v61, %v1392_v1 }
 0x156   : > { %v1410_v42 = vsel %vm1408_vm0, %v1398_v21, 2102212464  ;;  %v1414_v26 = vsel %vm1408_vm0, %v1401_v6, 920167782  ;;  %v1417_v63 = vsel %vm1405_vm13, %v1395_v16, %v1398_v21  ;;  %v1480_v34 = vshrl.u32 %v1479_v25, 23 }
 0x157   : > { %v1411_v46 = vsel %vm1407_vm15, %v1395_v16, %v1410_v42  ;;  %v1415_v32 = vsel %vm1407_vm15, %v1398_v21, %v1414_v26  ;;  %v1045_v24 = vxor.u32 2147483648, %v1044_v51  ;;  %v1338_v62 = vclz %v3622_v13 }
 0x158   : > { %v1416_v14 = vsel %vm1406_vm1, %v1413_v17, %v1415_v32  ;;  %v1418_v18 = vsel %vm1408_vm0, %v1404_v29, 1326507024  ;;  %v1243_v12 = vsub.s32 4294967266, %v5200_v44  ;;  %v1047_v27 = vsub.s32 4, %v4976_v22 }
 0x159   : > { %v1419_v1 = vsel %vm1407_vm15, %v1401_v6, %v1418_v18  ;;  %v5214_v61 = vmul.u32.u64.low %v1421_v7, %v1416_v14  ;;  %v5215_v54 = vmul.u32.u64.high %v1421_v7, %v1416_v14, %v5214_v61  ;;  %v1412_v15 = vsel %vm1406_vm1, %v1409_v36, %v1411_v46 }
 0x15a   : > { %v1420_v16 = vsel %vm1406_vm1, %v1417_v63, %v1419_v1  ;;  %v3629_v21 = vadd.s32 4294967169, %v1480_v34  ;;  %v1147_v49 = vmul.f32 %v1146_v31, %v1144_v35  ;;  %v1223_v25 = vadd.s32 %v5057_v19, %v5053_v48 }
 0x15b   : > { %v5223_v13 = vmul.u32.u64.low %v1421_v7, %v1420_v16  ;;  %v5224_v17 = vmul.u32.u64.high %v1421_v7, %v1420_v16, %v5223_v13  ;;  %v1046_v6 = vsel %vm963_vm12, %v1045_v24, %v1044_v51  ;;  %v1239_v29 = vsub.s32 32, %v5200_v44 }
 0x15c   : > { %v3623_v42 = vadd.s32 4294967294, %v1338_v62  ;;  %v1486_v26 = vadd.s32 1, %v3629_v21  ;;  %v1244_v32 = vadd.s32 127, %v1243_v12  ;;  %v1428_v14 = vmul.u32 %v1421_v7, %v1412_v15 }
 0x15d   : > { %v1431_v50 = vadd.s32 1, %v5215_v54  ;;  %v1476_v36 = vand.u32 2147483647, %v5177_v2  ;;  %v951_v48 = vmul.f32 %v3884_v28, %v4824_v47  ;;  %v952_v19 = vmul.f32 %v3885_v4, %v4824_v47 }
 0x15e   : > { %v1048_v51 = vsel %vm963_vm12, %v1047_v27, %v4976_v22  ;;  %vm1487_vm2 = vcmp.gt.s32.totalorder %v1486_v26, 0  ;;  %v1049_v35 = vsel %vm5195_vm14, %v4835_v60, %v1046_v6  ;;  %v1148_v31 = vxor.u32 2147483648, %v1147_v49 }
 0x15f   : > { %v1240_v7 = vshll.u32 %v5116_v57, %v5200_v44  ;;  %vm1430_vm3 = vc.u32 %v5224_v17, %v5214_v61  ;;  %v1241_v28 = vshrl.u32 %v1223_v25, %v1239_v29  ;;  %vm3624_vm4 = vcmp.lt.s32.totalorder %v3623_v42, 0 }
 0x160   : > { %v1432_v47 = vsel %vm1430_vm3, %v1431_v50, %v5215_v54  ;;  %v1488_v9 = vsel %vm1487_vm2, %v1486_v26, 0  ;;  %vm1066_vm5 = vcmp.lt.s32.totalorder %v4842_v5, 0  ;;  %v1245_v22 = vshll.u32 %v1244_v32, 23 }
 0x161   : > { %v1433_v4 = vadd.s32 %v1432_v47, %v1428_v14  ;;  %v1483_v46 = vand.u32 8388607, %v1476_v36  ;;  %v5252_v63 = vadd.f32 %v951_v48, %v5162_v40  ;;  %v5255_v57 = vadd.f32 %v952_v19, %v5165_v53 }
 0x162   : > { %v5259_v44 = vsel %vm5195_vm14, 0, %v1048_v51  ;;  %v1490_v34 = vand.u32 31, %v1488_v9  ;;  %4052 = vcosq.f32 %v1049_v35  ;;  %v1150_v24 = vsub.s32 4, %v5008_v33 }
 0x163   : > { %v1341_v62 = vsel %vm3624_vm4, 0, %v3623_v42  ;;  %v1434_v18 = vadd.s32 536870912, %v1433_v4  ;;  %4054 = vsinq.f32 %v1049_v35  ;;  %v5264_v12 = vsel %vm1066_vm5, %v1148_v31, %v1147_v49 }
 0x164   : > { %v5266_v40 = vor.u32 %v1241_v28, %v1240_v7  ;;  %v1491_v1 = vsub.s32 32, %v1490_v34  ;;  %v5268_v53 = vor.u32 4788187, %v1245_v22  ;;  %v1326_v20 = vadd.s32 %v5130_v11, %v5144_v30 }
 0x165   : > { %v5272_v54 = vshrl.u32 %v1434_v18, 30  ;;  %v1484_v27 = vor.u32 8388608, %v1483_v46  ;;  %v1346_v15 = vsub.s32 4294967266, %v1341_v62  ;;  %v1493_v16 = vshll.u32 %v4310_v52, %v1490_v34 }
 0x166   : > { %v1496_v21 = vshll.u32 %v4311_v55, %v1490_v34  ;;  %v1582_v25 = vand.u32 2139095040, %v5252_v63  ;;  %v1494_v13 = vshrl.u32 %v4311_v55, %v1491_v1  ;;  %v1497_v6 = vshrl.u32 %v4312_v41, %v1491_v1 }
 0x167   : > { %v1436_v49 = vshll.u32 %v5272_v54, 30  ;;  %v1502_v29 = vshll.u32 %v4313_v56, %v1490_v34  ;;  %v1489_v42 = vshrl.u32 %v1488_v9, 5  ;;  %v1499_v11 = vshll.u32 %v4312_v41, %v1490_v34 }
 0x168   : > { %v1500_v30 = vshrl.u32 %v4313_v56, %v1491_v1  ;;  %v1503_v26 = vshrl.u32 %v4314_v58, %v1491_v1  ;;  %v1342_v32 = vsub.s32 32, %v1341_v62  ;;  %v1505_v50 = vshll.u32 %v4314_v58, %v1490_v34 }
 0x169   : > { %v5284_v14 = vsub.s32 %v1433_v4, %v1436_v49  ;;  %v5287_v48 = vshll.u32 %v1484_v27, 8  ;;  %v1347_v19 = vadd.s32 127, %v1346_v15  ;;  %v1492_v51 = vshrl.u32 %v4310_v52, %v1491_v1 }
 0x16a   : > { %v1506_v35 = vshrl.u32 %v4315_v45, %v1491_v1  ;;  %v1583_v31 = vshrl.u32 %v1582_v25, 23  ;;  %vm5293_vm6 = vcmp.le.f32.partialorder %v1064_v3, 0.7853982  ;;  %v1495_v47 = vor.u32 %v1494_v13, %v1493_v16 }
 0x16b   : > { %v1439_v28 = vsub.s32 0, %v5284_v14  ;;  %v1498_v9 = vor.u32 %v1497_v6, %v1496_v21  ;;  %v1504_v22 = vor.u32 %v1503_v26, %v1502_v29  ;;  %v1501_v4 = vor.u32 %v1500_v30, %v1499_v11 }
 0x16c   : > { %v1507_v46 = vor.u32 %v1506_v35, %v1505_v50  ;;  %vm1508_vm7 = vcmp.lt.s32.totalorder %v1489_v42, 1  ;;  %vm1511_vm8 = vcmp.lt.s32.totalorder %v1489_v42, 4  ;;  %v1343_v34 = vshll.u32 %v5184_v0, %v1341_v62 }
 0x16d   : > { %v1344_v18 = vshrl.u32 %v1326_v20, %v1342_v32  ;;  %v3626_v1 = vmin.u32 %v1439_v28, %v5284_v14  ;;  %vm1510_vm9 = vcmp.lt.s32.totalorder %v1489_v42, 3  ;;  %vm1509_vm10 = vcmp.lt.s32.totalorder %v1489_v42, 2 }
 0x16e   : > { %v1512_v3 = vsel %vm1508_vm7, %v1492_v51, %v1495_v47  ;;  %v1513_v27 = vsel %vm1511_vm8, %v1501_v4, 2102212464  ;;  %v3633_v15 = vadd.s32 4294967169, %v1583_v31  ;;  %v1516_v21 = vsel %vm1508_vm7, %v1495_v47, %v1498_v9 }
 0x16f   : > { %v1441_v25 = vclz %v3626_v1  ;;  %v1514_v16 = vsel %vm1510_vm9, %v1498_v9, %v1513_v27  ;;  %v1517_v49 = vsel %vm1511_vm8, %v1504_v22, 920167782  ;;  %v5305_v13 = vpop.eup %4052  ;;  %v1348_v0 = vshll.u32 %v1347_v19, 23 }
 0x170   : > { %v1518_v62 = vsel %vm1510_vm9, %v1501_v4, %v1517_v49  ;;  %v1520_v20 = vsel %vm1508_vm7, %v1498_v9, %v1501_v4  ;;  %v1521_v6 = vsel %vm1511_vm8, %v1507_v46, 1326507024  ;;  %v5310_v29 = vpop.eup %4054  ;;  %v1345_v11 = vor.u32 %v1344_v18, %v1343_v34 }
 0x171   : > { %v3627_v30 = vadd.s32 4294967294, %v1441_v25  ;;  %v1519_v26 = vsel %vm1509_vm10, %v1516_v21, %v1518_v62  ;;  %v1522_v32 = vsel %vm1510_vm9, %v1504_v22, %v1521_v6  ;;  %v1515_v50 = vsel %vm1509_vm10, %v1512_v3, %v1514_v16 }
 0x172   : > { %v1523_v51 = vsel %vm1509_vm10, %v1520_v20, %v1522_v32  ;;  %v5317_v19 = vmul.u32.u64.low %v5287_v48, %v1519_v26  ;;  %v5318_v35 = vmul.u32.u64.high %v5287_v48, %v1519_v26, %v5317_v19  ;;  %v1589_v47 = vadd.s32 1, %v3633_v15 }
 0x173   : > { %vm3628_vm11 = vcmp.lt.s32.totalorder %v3627_v30, 0  ;;  %v5322_v31 = vmul.u32.u64.low %v5287_v48, %v1523_v51  ;;  %v5323_v28 = vmul.u32.u64.high %v5287_v48, %v1523_v51, %v5322_v31  ;;  %v5326_v9 = vand.u32 3, %v5259_v44 }
 0x174   : > { %v1151_v42 = vsel %vm1066_vm5, %v1150_v24, %v5008_v33  ;;  %vm1169_vm12 = vcmp.lt.s32.totalorder %v4848_v10, 0  ;;  %v1349_v22 = vor.u32 4788187, %v1348_v0  ;;  %v1253_v4 = vsub.s32 4, %v5095_v39 }
 0x175   : > { %v1444_v46 = vsel %vm3628_vm11, 0, %v3627_v30  ;;  %v1531_v34 = vmul.u32 %v5287_v48, %v1515_v50  ;;  %vm1590_vm13 = vcmp.gt.s32.totalorder %v1589_v47, 0  ;;  %v1152_v18 = vsel %vm5293_vm6, %v4842_v5, %v5264_v12 }
 0x176   : > { %v1249_v1 = vcvt.s32.f32 %v5266_v40  ;;  %v1534_v3 = vadd.s32 1, %v5318_v35  ;;  %v1591_v27 = vsel %vm1590_vm13, %v1589_v47, 0  ;;  %v1247_v33 = vand.u32 2147483647, %v5268_v53 }
 0x177   : > { %v1352_v24 = vcvt.s32.f32 %v1345_v11  ;;  %vm1533_vm14 = vc.u32 %v5323_v28, %v5317_v19  ;;  %v6899_v15 = vand.u32 2147483647, %v5252_v63  ;;  %v1350_v48 = vand.u32 2147483647, %v1349_v22 }
 0x178   : > { %v1449_v25 = vsub.s32 4294967266, %v1444_v46  ;;  %v1535_v16 = vsel %vm1533_vm14, %v1534_v3, %v5318_v35  ;;  %v1593_v21 = vand.u32 31, %v1591_v27  ;;  %v5349_v12 = vsel %vm5293_vm6, 0, %v1151_v42 }
 0x179   : > { %v1429_v40 = vadd.s32 %v5214_v61, %v5224_v17  ;;  %v1445_v49 = vsub.s32 32, %v1444_v46  ;;  %v1536_v53 = vadd.s32 %v1535_v16, %v1531_v34  ;;  %4056 = vcosq.f32 %v1152_v18 }
 0x17a   : > { %v5354_v0 = vand.u32 3, %v5349_v12  ;;  %v5359_v62 = vsel %vm1169_vm12, %v1253_v4, %v5095_v39  ;;  %v1594_v20 = vsub.s32 32, %v1593_v21  ;;  %v1057_v6 = vxor.u32 2147483648, %v5310_v29 }
 0x17b   : > { %v1060_v7 = vxor.u32 2147483648, %v5305_v13  ;;  %4058 = vsinq.f32 %v1152_v18  ;;  %v1537_v11 = vadd.s32 536870912, %v1536_v53  ;;  %v5363_v30 = vmul.f32 %v1249_v1, %v1247_v33 }
 0x17c   : > { %v5365_v61 = vmul.f32 %v1352_v24, %v1350_v48  ;;  %v1450_v17 = vadd.s32 127, %v1449_v25  ;;  %v1586_v26 = vand.u32 8388607, %v6899_v15  ;;  %v1446_v32 = vshll.u32 %v5284_v14, %v1444_v46 }
 0x17d   : > { %v1447_v50 = vshrl.u32 %v1429_v40, %v1445_v49  ;;  %v5370_v39 = vshrl.u32 %v1537_v11, 30  ;;  %v1592_v51 = vshrl.u32 %v1591_v27, 5  ;;  %v1596_v35 = vshll.u32 %v4310_v52, %v1593_v21 }
 0x17e   : > { %v1597_v31 = vshrl.u32 %v4311_v55, %v1594_v20  ;;  %v1599_v47 = vshll.u32 %v4311_v55, %v1593_v21  ;;  %v1600_v42 = vshrl.u32 %v4312_v41, %v1594_v20  ;;  %v1602_v4 = vshll.u32 %v4312_v41, %v1593_v21 }
 0x17f   : > { %v1539_v22 = vshll.u32 %v5370_v39, 30  ;;  %v1603_v34 = vshrl.u32 %v4313_v56, %v1594_v20  ;;  %v1605_v14 = vshll.u32 %v4313_v56, %v1593_v21  ;;  %v1251_v46 = vxor.u32 2147483648, %v5363_v30 }
 0x180   : > { %v1451_v18 = vshll.u32 %v1450_v17, 23  ;;  %v1606_v1 = vshrl.u32 %v4314_v58, %v1594_v20  ;;  %v1608_v3 = vshll.u32 %v4314_v58, %v1593_v21  ;;  %vm1272_vm15 = vcmp.lt.s32.totalorder %v4997_v38, 0 }
 0x181   : > { %v1448_v27 = vor.u32 %v1447_v50, %v1446_v32  ;;  %v5384_v33 = vsub.s32 %v1536_v53, %v1539_v22  ;;  %v1587_v24 = vor.u32 8388608, %v1586_v26  ;;  %v1609_v48 = vshrl.u32 %v4315_v45, %v1594_v20 }
 0x182   : > { %v1354_v25 = vxor.u32 2147483648, %v5365_v61  ;;  %v1595_v16 = vshrl.u32 %v4310_v52, %v1594_v20  ;;  %v1598_v40 = vor.u32 %v1597_v31, %v1596_v35  ;;  %v1601_v49 = vor.u32 %v1600_v42, %v1599_v47 }
 0x183   : > { %vm1059_vm0 = vcmp.eq.s32.totalorder %v5326_v9, 2  ;;  %v1542_v11 = vsub.s32 0, %v5384_v33  ;;  %v1604_v17 = vor.u32 %v1603_v34, %v1602_v4  ;;  %v1607_v21 = vor.u32 %v1606_v1, %v1605_v14 }
 0x184   : > { %vm1611_vm1 = vcmp.lt.s32.totalorder %v1592_v51, 1  ;;  %vm1056_vm2 = vcmp.eq.s32.totalorder %v5326_v9, 0  ;;  %vm5394_vm3 = vcmp.le.f32.partialorder %v1167_v59, 0.7853982  ;;  %v1452_v26 = vor.u32 4788187, %v1451_v18 }
 0x185   : > { %v1610_v32 = vor.u32 %v1609_v48, %v1608_v3  ;;  %vm1614_vm4 = vcmp.lt.s32.totalorder %v1592_v51, 4  ;;  %v1685_v20 = vand.u32 2139095040, %v5255_v57  ;;  %vm5401_vm5 = vcmp.le.f32.partialorder %v1270_v8, 0.7853982 }
 0x186   : > { %v1455_v35 = vcvt.s32.f32 %v1448_v27  ;;  %v3630_v31 = vmin.u32 %v1542_v11, %v5384_v33  ;;  %vm1613_vm6 = vcmp.lt.s32.totalorder %v1592_v51, 3  ;;  %v1627_v47 = vshll.u32 %v1587_v24, 8  ;;  %v5409_v4 = vpop.eup %4056 }
 0x187   : > { %vm1612_vm7 = vcmp.lt.s32.totalorder %v1592_v51, 2  ;;  %v1615_v59 = vsel %vm1611_vm1, %v1595_v16, %v1598_v40  ;;  %v1616_v42 = vsel %vm1614_vm4, %v1604_v17, 2102212464  ;;  %v1619_v22 = vsel %vm1611_vm1, %v1598_v40, %v1601_v49 }
 0x188   : > { %v1544_v34 = vclz %v3630_v31  ;;  %v1617_v8 = vsel %vm1613_vm6, %v1601_v49, %v1616_v42  ;;  %v1620_v14 = vsel %vm1614_vm4, %v1607_v21, 920167782  ;;  %v1623_v18 = vsel %vm1611_vm1, %v1601_v49, %v1604_v17  ;;  %v5414_v1 = vpop.eup %4058 }
 0x189   : > { %vm1055_vm8 = vcmp.lt.s32.totalorder %v5326_v9, 2  ;;  %v1453_v3 = vand.u32 2147483647, %v1452_v26  ;;  %v1621_v27 = vsel %vm1613_vm6, %v1604_v17, %v1620_v14  ;;  %v1624_v24 = vsel %vm1614_vm4, %v1610_v32, 1326507024 }
 0x18a   : > { %v1686_v48 = vshrl.u32 %v1685_v20, 23  ;;  %v3631_v16 = vadd.s32 4294967294, %v1544_v34  ;;  %v1618_v40 = vsel %vm1612_vm7, %v1615_v59, %v1617_v8  ;;  %v1622_v11 = vsel %vm1612_vm7, %v1619_v22, %v1621_v27 }
 0x18b   : > { %v1625_v31 = vsel %vm1613_vm6, %v1607_v21, %v1624_v24  ;;  %vm1375_vm9 = vcmp.lt.s32.totalorder %v5093_v37, 0  ;;  %v5424_v42 = vmul.u32.u64.low %v1627_v47, %v1622_v11  ;;  %v5425_v15 = vmul.u32.u64.high %v1627_v47, %v1622_v11, %v5424_v42 }
 0x18c   : > { %v1626_v49 = vsel %vm1612_vm7, %v1623_v18, %v1625_v31  ;;  %v3637_v26 = vadd.s32 4294967169, %v1686_v48  ;;  %v1252_v17 = vsel %vm1169_vm12, %v1251_v46, %v5363_v30  ;;  %vm3632_vm10 = vcmp.lt.s32.totalorder %v3631_v16, 0 }
 0x18d   : > { %v5431_v32 = vmul.u32.u64.low %v1627_v47, %v1626_v49  ;;  %v5432_v20 = vmul.u32.u64.high %v1627_v47, %v1626_v49, %v5431_v32  ;;  %v1355_v21 = vsel %vm1272_vm15, %v1354_v25, %v5365_v61  ;;  %v1532_v51 = vadd.s32 %v5317_v19, %v5323_v28 }
 0x18e   : > { %v1547_v59 = vsel %vm3632_vm10, 0, %v3631_v16  ;;  %v1692_v22 = vadd.s32 1, %v3637_v26  ;;  %vm5441_vm11 = vcmp.le.f32.partialorder %v1373_v43, 0.7853982  ;;  %v1456_v30 = vmul.f32 %v1455_v35, %v1453_v3 }
 0x18f   : > { %v1548_v46 = vsub.s32 32, %v1547_v59  ;;  %v1552_v8 = vsub.s32 4294967266, %v1547_v59  ;;  %v1634_v14 = vmul.u32 %v1627_v47, %v1618_v40  ;;  %v1061_v61 = vsel %vm1059_vm0, %v1060_v7, %v5310_v29 }
 0x190   : > { %v5453_v19 = vsel %vm5394_vm3, 0, %v5359_v62  ;;  %v1637_v43 = vadd.s32 1, %v5425_v15  ;;  %vm1693_vm12 = vcmp.gt.s32.totalorder %v1692_v22, 0  ;;  %v1058_v28 = vsel %vm1056_vm2, %v5305_v13, %v1057_v6 }
 0x191   : > { %v1255_v25 = vsel %vm5394_vm3, %v4848_v10, %v1252_v17  ;;  %v1553_v35 = vadd.s32 127, %v1552_v8  ;;  %vm1636_vm13 = vc.u32 %v5432_v20, %v5424_v42  ;;  %v1358_v62 = vsel %vm5401_vm5, %v4997_v38, %v1355_v21 }
 0x192   : > { %v1638_v47 = vsel %vm1636_vm13, %v1637_v43, %v5425_v15  ;;  %v1682_v18 = vand.u32 2147483647, %v5255_v57  ;;  %v1694_v3 = vsel %vm1693_vm12, %v1692_v22, 0  ;;  %v1457_v27 = vxor.u32 2147483648, %v1456_v30 }
 0x193   : > { %v1549_v24 = vshll.u32 %v5384_v33, %v1547_v59  ;;  %v1550_v48 = vshrl.u32 %v1532_v51, %v1548_v46  ;;  %v1639_v16 = vadd.s32 %v1638_v47, %v1634_v14  ;;  %4060 = vcosq.f32 %v1255_v25 }
 0x194   : > { %v1356_v53 = vsub.s32 4, %v5171_v23  ;;  %v1554_v40 = vshll.u32 %v1553_v35, 23  ;;  %v1696_v11 = vand.u32 31, %v1694_v3  ;;  %v5475_v31 = vsel %vm1055_vm8, %v1058_v28, %v1061_v61 }
 0x195   : > { %4062 = vsinq.f32 %v1255_v25  ;;  %v5478_v15 = vand.u32 3, %v5453_v19  ;;  %v1640_v49 = vadd.s32 536870912, %v1639_v16  ;;  %v1160_v26 = vxor.u32 2147483648, %v5414_v1 }
 0x196   : > { %v1163_v33 = vxor.u32 2147483648, %v5409_v4  ;;  %4064 = vcosq.f32 %v1358_v62  ;;  %v1697_v17 = vsub.s32 32, %v1696_v11  ;;  %v1458_v32 = vsel %vm1375_vm9, %v1457_v27, %v1456_v30 }
 0x197   : > { %v1551_v21 = vor.u32 %v1550_v48, %v1549_v24  ;;  %v5484_v51 = vshrl.u32 %v1640_v49, 30  ;;  %v1689_v9 = vand.u32 8388607, %v1682_v18  ;;  %v1357_v59 = vsel %vm1272_vm15, %v1356_v53, %v5171_v23 }
 0x198   : > { %4066 = vsinq.f32 %v1358_v62  ;;  %v1555_v22 = vor.u32 4788187, %v1554_v40  ;;  %v1699_v46 = vshll.u32 %v4310_v52, %v1696_v11  ;;  %v1700_v14 = vshrl.u32 %v4311_v55, %v1697_v17 }
 0x199   : > { %v1642_v8 = vshll.u32 %v5484_v51, 30  ;;  %v1702_v30 = vshll.u32 %v4311_v55, %v1696_v11  ;;  %v1703_v61 = vshrl.u32 %v4312_v41, %v1697_v17  ;;  %v1461_v43 = vsel %vm5441_vm11, %v5093_v37, %v1458_v32 }
 0x19a   : > { %v1695_v28 = vshrl.u32 %v1694_v3, 5  ;;  %v1705_v25 = vshll.u32 %v4312_v41, %v1696_v11  ;;  %v1706_v23 = vshrl.u32 %v4313_v56, %v1697_v17  ;;  %v1558_v35 = vcvt.s32.f32 %v1551_v21 }
 0x19b   : > { %v5501_v62 = vsub.s32 %v1639_v16, %v1642_v8  ;;  %v1690_v47 = vor.u32 8388608, %v1689_v9  ;;  %v1708_v27 = vshll.u32 %v4313_v56, %v1696_v11  ;;  %v1556_v24 = vand.u32 2147483647, %v1555_v22 }
 0x19c   : > { %v1698_v55 = vshrl.u32 %v4310_v52, %v1697_v17  ;;  %v1709_v48 = vshrl.u32 %v4314_v58, %v1697_v17  ;;  %v1711_v53 = vshll.u32 %v4314_v58, %v1696_v11  ;;  %vm1478_vm14 = vcmp.lt.s32.totalorder %v5177_v2, 0 }
 0x19d   : > { %v1645_v3 = vsub.s32 0, %v5501_v62  ;;  %v1701_v41 = vor.u32 %v1700_v14, %v1699_v46  ;;  %v1704_v40 = vor.u32 %v1703_v61, %v1702_v30  ;;  %v1712_v49 = vshrl.u32 %v4315_v45, %v1697_v17 }
 0x19e   : > { %4068 = vcosq.f32 %v1461_v43  ;;  %v1707_v16 = vor.u32 %v1706_v23, %v1705_v25  ;;  %v1710_v32 = vor.u32 %v1709_v48, %v1708_v27  ;;  %vm1714_vm15 = vcmp.lt.s32.totalorder %v1695_v28, 1 }
 0x19f   : > { %vm1053_vm0 = vweird.f32 %v4835_v60  ;;  %vm1159_vm1 = vcmp.eq.s32.totalorder %v5354_v0, 0  ;;  %vm1162_vm2 = vcmp.eq.s32.totalorder %v5354_v0, 2  ;;  %v5515_v52 = vsel %vm5401_vm5, 0, %v1357_v59 }
 0x1a0   : > { %4070 = vsinq.f32 %v1461_v43  ;;  %v3634_v56 = vmin.u32 %v1645_v3, %v5501_v62  ;;  %v5518_v58 = vshll.u32 %v1690_v47, 8  ;;  %v1559_v45 = vmul.f32 %v1558_v35, %v1556_v24  ;;  %v5520_v17 = vpop.eup %4060 }
 0x1a1   : > { %v1713_v11 = vor.u32 %v1712_v49, %v1711_v53  ;;  %vm1715_vm3 = vcmp.lt.s32.totalorder %v1695_v28, 2  ;;  %vm1716_vm4 = vcmp.lt.s32.totalorder %v1695_v28, 3  ;;  %vm1717_vm6 = vcmp.lt.s32.totalorder %v1695_v28, 4 }
 0x1a2   : > { %v1647_v21 = vclz %v3634_v56  ;;  %v1718_v9 = vsel %vm1714_vm15, %v1698_v55, %v1701_v41  ;;  %v1722_v22 = vsel %vm1714_vm15, %v1701_v41, %v1704_v40  ;;  %v5524_v50 = vpop.eup %4062  ;;  %v1719_v59 = vsel %vm1717_vm6, %v1707_v16, 2102212464 }
 0x1a3   : > { %v1723_v46 = vsel %vm1717_vm6, %v1710_v32, 920167782  ;;  %v1726_v8 = vsel %vm1714_vm15, %v1704_v40, %v1707_v16  ;;  %v1727_v14 = vsel %vm1717_vm6, %v1713_v11, 1326507024  ;;  %v5527_v30 = vpop.eup %4064  ;;  %v1720_v43 = vsel %vm1716_vm4, %v1704_v40, %v1719_v59 }
 0x1a4   : > { %v3635_v61 = vadd.s32 4294967294, %v1647_v21  ;;  %v1724_v25 = vsel %vm1716_vm4, %v1707_v16, %v1723_v46  ;;  %v1728_v23 = vsel %vm1716_vm4, %v1710_v32, %v1727_v14  ;;  %v1459_v35 = vsub.s32 4, %v5272_v54 }
 0x1a5   : > { %v1560_v47 = vxor.u32 2147483648, %v1559_v45  ;;  %v1725_v27 = vsel %vm1715_vm3, %v1722_v22, %v1724_v25  ;;  %v1729_v24 = vsel %vm1715_vm3, %v1726_v8, %v1728_v23  ;;  %v5532_v55 = vpop.eup %4066  ;;  %vm1158_vm5 = vcmp.lt.s32.totalorder %v5354_v0, 2 }
 0x1a6   : > { %v1635_v48 = vadd.s32 %v5424_v42, %v5432_v20  ;;  %vm3636_vm7 = vcmp.lt.s32.totalorder %v3635_v61, 0  ;;  %v5538_v53 = vmul.u32.u64.low %v5518_v58, %v1729_v24  ;;  %v5539_v3 = vmul.u32.u64.high %v5518_v58, %v1729_v24, %v5538_v53 }
 0x1a7   : > { %vm1262_vm8 = vcmp.eq.s32.totalorder %v5478_v15, 0  ;;  %v1650_v41 = vsel %vm3636_vm7, 0, %v3635_v61  ;;  %v1721_v40 = vsel %vm1715_vm3, %v1718_v9, %v1720_v43  ;;  %v5549_v32 = vand.u32 3, %v5515_v52 }
 0x1a8   : > { %v5544_v49 = vmul.u32.u64.low %v5518_v58, %v1725_v27  ;;  %v5545_v16 = vmul.u32.u64.high %v5518_v58, %v1725_v27, %v5544_v49  ;;  %v1651_v56 = vsub.s32 32, %v1650_v41  ;;  %v1652_v42 = vshll.u32 %v5501_v62, %v1650_v41 }
 0x1a9   : > { %v1655_v20 = vsub.s32 4294967266, %v1650_v41  ;;  %vm1265_vm10 = vcmp.eq.s32.totalorder %v5478_v15, 2  ;;  %v1460_v11 = vsel %vm1375_vm9, %v1459_v35, %v5272_v54  ;;  %vm5558_vm12 = vcmp.le.f32.partialorder %v1476_v36, 0.7853982 }
 0x1aa   : > { %v1561_v21 = vsel %vm1478_vm14, %v1560_v47, %v1559_v45  ;;  %vm1156_vm13 = vweird.f32 %v4842_v5  ;;  %vm1261_vm15 = vcmp.lt.s32.totalorder %v5478_v15, 2  ;;  %v1653_v62 = vshrl.u32 %v1635_v48, %v1651_v56 }
 0x1ab   : > { %v1656_v9 = vadd.s32 127, %v1655_v20  ;;  %v1737_v22 = vmul.u32 %v5518_v58, %v1721_v40  ;;  %vm1739_vm9 = vc.u32 %v5539_v3, %v5544_v49  ;;  %v5572_v36 = vsel %vm1053_vm0, nan, %v5475_v31  ;;  %v5585_v59 = vpop.eup %4068 }
 0x1ac   : > { %v1161_v54 = vsel %vm1159_vm1, %v5409_v4, %v1160_v26  ;;  %v1164_v58 = vsel %vm1162_vm2, %v1163_v33, %v5414_v1  ;;  %v1740_v45 = vadd.s32 1, %v5545_v16  ;;  %v1266_v46 = vxor.u32 2147483648, %v5520_v17 }
 0x1ad   : > { %vm1365_vm3 = vcmp.eq.s32.totalorder %v5549_v32, 0  ;;  %v1654_v31 = vor.u32 %v1653_v62, %v1652_v42  ;;  %v1657_v8 = vshll.u32 %v1656_v9, 23  ;;  %v5589_v14 = vpop.eup %4070  ;;  %v1263_v61 = vxor.u32 2147483648, %v5524_v50 }
 0x1ae   : > { %v5594_v43 = vsel %vm5441_vm11, 0, %v1460_v11  ;;  %v1564_v25 = vsel %vm5558_vm12, %v5177_v2, %v1561_v21  ;;  %v1741_v23 = vsel %vm1739_vm9, %v1740_v45, %v5545_v16  ;;  %vm1259_vm1 = vweird.f32 %v4848_v10 }
 0x1af   : > { %v1366_v35 = vxor.u32 2147483648, %v5532_v55  ;;  %v1369_v47 = vxor.u32 2147483648, %v5527_v30  ;;  %v1658_v27 = vor.u32 4788187, %v1657_v8  ;;  %v1742_v24 = vadd.s32 %v1741_v23, %v1737_v22 }
 0x1b0   : > { %vm6901_vm2 = vweird.f32 %v4997_v38  ;;  %vm1368_vm4 = vcmp.eq.s32.totalorder %v5549_v32, 2  ;;  %v1466_v34 = vand.u32 3, %v5594_v43  ;;  %v1562_v48 = vsub.s32 4, %v5370_v39 }
 0x1b1   : > { %v1878_v53 = vadd.s32 3, %v5259_v44  ;;  %4072 = vcosq.f32 %v1564_v25  ;;  %v1659_v41 = vand.u32 2147483647, %v1658_v27  ;;  %v1661_v40 = vcvt.s32.f32 %v1654_v31 }
 0x1b2   : > { %v1743_v16 = vadd.s32 536870912, %v1742_v24  ;;  %v1165_v56 = vsel %vm1158_vm5, %v1161_v54, %v1164_v58  ;;  %v1267_v42 = vsel %vm1265_vm10, %v1266_v46, %v5524_v50  ;;  %vm1364_vm11 = vcmp.lt.s32.totalorder %v5549_v32, 2 }
 0x1b3   : > { %4074 = vsinq.f32 %v1564_v25  ;;  %v1264_v44 = vsel %vm1262_vm8, %v5520_v17, %v1263_v61  ;;  %v1367_v0 = vsel %vm1365_vm3, %v5527_v30, %v1366_v35  ;;  %v1370_v20 = vsel %vm1368_vm4, %v1369_v47, %v5532_v55 }
 0x1b4   : > { %vm6900_vm6 = vweird.f32 %v5093_v37  ;;  %v5630_v11 = vshrl.u32 %v1743_v16, 30  ;;  %v1469_v21 = vxor.u32 2147483648, %v5589_v14  ;;  %v1472_v62 = vxor.u32 2147483648, %v5585_v59 }
 0x1b5   : > { %v1563_v9 = vsel %vm1478_vm14, %v1562_v48, %v5370_v39  ;;  %v1879_v22 = vand.u32 3, %v1878_v53  ;;  %vm1468_vm5 = vcmp.eq.s32.totalorder %v1466_v34, 0  ;;  %vm1471_vm7 = vcmp.eq.s32.totalorder %v1466_v34, 2 }
 0x1b6   : > { %v1662_v54 = vmul.f32 %v1661_v40, %v1659_v41  ;;  %v1745_v58 = vshll.u32 %v5630_v11, 30  ;;  %v5640_v45 = vsel %vm1156_vm13, nan, %v1165_v56  ;;  %v1268_v31 = vsel %vm1261_vm15, %v1264_v44, %v1267_v42 }
 0x1b7   : > { %vm1467_vm8 = vcmp.lt.s32.totalorder %v1466_v34, 2  ;;  %v1982_v8 = vadd.s32 3, %v5349_v12  ;;  %v1371_v25 = vsel %vm1364_vm11, %v1367_v0, %v1370_v20  ;;  %v1565_v39 = vsel %vm5558_vm12, 0, %v1563_v9 }
 0x1b8   : > { %v1665_v23 = vsub.s32 4, %v5484_v51  ;;  %v5650_v27 = vsub.s32 %v1742_v24, %v1745_v58  ;;  %v1470_v48 = vsel %vm1468_vm5, %v5585_v59, %v1469_v21  ;;  %v1473_v15 = vsel %vm1471_vm7, %v1472_v62, %v5589_v14 }
 0x1b9   : > { %v5658_v53 = vand.u32 3, %v1565_v39  ;;  %vm1881_vm14 = vcmp.eq.s32.totalorder %v1879_v22, 0  ;;  %v1663_v12 = vxor.u32 2147483648, %v1662_v54  ;;  %vm1884_vm10 = vcmp.eq.s32.totalorder %v1879_v22, 2 }
 0x1ba   : > { %v1748_v32 = vsub.s32 0, %v5650_v27  ;;  %v2086_v28 = vadd.s32 3, %v5453_v19  ;;  %v5664_v24 = vsel %vm1259_vm1, nan, %v1268_v31  ;;  %v6965_v41 = vand.u32 2147483647, %v5252_v63 }
 0x1bb   : > { %vm1581_vm15 = vcmp.lt.s32.totalorder %v5252_v63, 0  ;;  %v5673_v16 = vand.u32 3, %v1982_v8  ;;  %v5677_v56 = vsel %vm6901_vm2, nan, %v1371_v25  ;;  %v1474_v19 = vsel %vm1467_vm8, %v1470_v48, %v1473_v15 }
 0x1bc   : > { %vm5668_vm12 = vcmp.le.f32.partialorder %v6965_v41, 0.7853982  ;;  %v1666_v42 = vsel %vm1581_vm15, %v1665_v23, %v5484_v51  ;;  %v3638_v44 = vmin.u32 %v1748_v32, %v5650_v27  ;;  %vm1880_vm9 = vcmp.lt.s32.totalorder %v1879_v22, 2 }
 0x1bd   : > { %v1883_v0 = vsel %vm1881_vm14, %v5305_v13, %v1057_v6  ;;  %v1886_v20 = vsel %vm1884_vm10, %v1060_v7, %v5310_v29  ;;  %v2190_v9 = vadd.s32 3, %v5515_v52  ;;  %vm1571_vm3 = vcmp.eq.s32.totalorder %v5658_v53, 0 }
 0x1be   : > { %v1664_v58 = vsel %vm1581_vm15, %v1663_v12, %v1662_v54  ;;  %v1750_v34 = vclz %v3638_v44  ;;  %v5690_v31 = vand.u32 3, %v2086_v28  ;;  %v5692_v51 = vpop.eup %4072  ;;  %v5696_v8 = vsel %vm6900_vm6, nan, %v1474_v19 }
 0x1bf   : > { %vm1574_vm4 = vcmp.eq.s32.totalorder %v5658_v53, 2  ;;  %v1668_v13 = vsel %vm5668_vm12, 0, %v1666_v42  ;;  %vm1985_vm11 = vcmp.eq.s32.totalorder %v5673_v16, 0  ;;  %v5707_v52 = vsel %vm1880_vm9, %v1883_v0, %v1886_v20 }
 0x1c0   : > { %v5702_v29 = vpop.eup %4074  ;;  %v5704_v6 = vand.u32 3, %v1668_v13  ;;  %v3639_v7 = vadd.s32 4294967294, %v1750_v34  ;;  %vm1984_vm5 = vcmp.lt.s32.totalorder %v5673_v16, 2  ;;  %vm1570_vm7 = vcmp.lt.s32.totalorder %v5658_v53, 2 }
 0x1c1   : > { %v1667_v54 = vsel %vm5668_vm12, %v5252_v63, %v1664_v58  ;;  %v1738_v25 = vadd.s32 %v5544_v49, %v5539_v3  ;;  %vm1988_vm8 = vcmp.eq.s32.totalorder %v5673_v16, 2  ;;  %v2191_v23 = vand.u32 3, %v2190_v9 }
 0x1c2   : > { %vm3640_vm14 = vcmp.lt.s32.totalorder %v3639_v7, 0  ;;  %v1987_v22 = vsel %vm1985_vm11, %v5409_v4, %v1160_v26  ;;  %vm2089_vm10 = vcmp.eq.s32.totalorder %v5690_v31, 0  ;;  %v2294_v48 = vadd.s32 3, %v5594_v43 }
 0x1c3   : > { %v1572_v15 = vxor.u32 2147483648, %v5702_v29  ;;  %v1575_v12 = vxor.u32 2147483648, %v5692_v51  ;;  %v1753_v32 = vsel %vm3640_vm14, 0, %v3639_v7  ;;  %v2398_v28 = vadd.s32 3, %v1565_v39 }
 0x1c4   : > { %4076 = vcosq.f32 %v1667_v54  ;;  %vm1684_vm12 = vcmp.lt.s32.totalorder %v5255_v57, 0  ;;  %v1754_v3 = vsub.s32 32, %v1753_v32  ;;  %v1755_v49 = vshll.u32 %v5650_v27, %v1753_v32 }
 0x1c5   : > { %v1758_v41 = vsub.s32 4294967266, %v1753_v32  ;;  %4078 = vsinq.f32 %v1667_v54  ;;  %v1990_v26 = vsel %vm1988_vm8, %v1163_v33, %v5414_v1  ;;  %vm2092_vm15 = vcmp.eq.s32.totalorder %v5690_v31, 2 }
 0x1c6   : > { %vm2193_vm9 = vcmp.eq.s32.totalorder %v2191_v23, 0  ;;  %vm1568_vm11 = vweird.f32 %v5177_v2  ;;  %v1756_v43 = vshrl.u32 %v1738_v25, %v1754_v3  ;;  %vm2196_vm14 = vcmp.eq.s32.totalorder %v2191_v23, 2  ;;  %v5824_v3 = vld [vmem:[%s4617_s2 + $0x18] sm:$0xff] }
 0x1c7   : > { %v1759_v39 = vadd.s32 127, %v1758_v41  ;;  %v2295_v40 = vand.u32 3, %v2294_v48  ;;  %v1576_v27 = vsel %vm1574_vm4, %v1575_v12, %v5702_v29  ;;  %vm2088_vm6 = vcmp.lt.s32.totalorder %v5690_v31, 2  ;;  %v5830_v41 = vld [vmem:[%s4617_s2 + $0x28] sm:$0xff] }
 0x1c8   : > { %v2091_v4 = vsel %vm2089_vm10, %v5520_v17, %v1263_v61  ;;  %v2399_v1 = vand.u32 3, %v2398_v28  ;;  %v1573_v33 = vsel %vm1571_vm3, %v5692_v51, %v1572_v15  ;;  %vm5747_vm8 = vcmp.le.f32.partialorder %v1682_v18, 0.7853982 }
 0x1c9   : > { %v1757_v42 = vor.u32 %v1756_v43, %v1755_v49  ;;  %v1760_v44 = vshll.u32 %v1759_v39, 23  ;;  %v2094_v0 = vsel %vm2092_vm15, %v1266_v46, %v5524_v50  ;;  %v1768_v20 = vsub.s32 4, %v5630_v11  ;;  %v5827_v49 = vld [vmem:[%s4617_s2 + $0x20] sm:$0xff]  ;;  %v5838_v43 = vld [vmem:[%s4624_s10 + $0x8] sm:$0xff]  ;;  %v5841_v39 = vld [vmem:[%s4624_s10 + $0x10] sm:$0xff] }
 0x1ca   : > { %vm2192_vm4 = vcmp.lt.s32.totalorder %v2191_v23, 2  ;;  %v2195_v61 = vsel %vm2193_vm9, %v5527_v30, %v1366_v35  ;;  %v2198_v18 = vsel %vm2196_vm14, %v1369_v47, %v5532_v55  ;;  %vm2297_vm3 = vcmp.eq.s32.totalorder %v2295_v40, 0  ;;  %v2618_v23 = vld [vmem:[%s4617_s2 + $0x8] sm:$0xff] }
 0x1cb   : > { %v1761_v9 = vor.u32 4788187, %v1760_v44  ;;  %v1764_v58 = vcvt.s32.f32 %v1757_v42  ;;  %vm2300_vm10 = vcmp.eq.s32.totalorder %v2295_v40, 2  ;;  %v1991_v17 = vsel %vm1984_vm5, %v1987_v22, %v1990_v26  ;;  %v5811_v22 = vld [vmem:[%s4617_s2 + $0x10] sm:$0xff] }
 0x1cc   : > { %vm2401_vm15 = vcmp.eq.s32.totalorder %v2399_v1, 0  ;;  %vm2404_vm2 = vcmp.eq.s32.totalorder %v2399_v1, 2  ;;  %v2502_v50 = vadd.s32 3, %v1668_v13  ;;  %v1577_v46 = vsel %vm1570_vm7, %v1573_v33, %v1576_v27  ;;  %v5844_v27 = vld [vmem:[%s4624_s10 + $0x18] sm:$0xff] }
 0x1cd   : > { %v1762_v34 = vand.u32 2147483647, %v1761_v9  ;;  %v2095_v30 = vsel %vm2088_vm6, %v2091_v4, %v2094_v0  ;;  %v2199_v55 = vsel %vm2192_vm4, %v2195_v61, %v2198_v18  ;;  %v1769_v35 = vsel %vm1684_vm12, %v1768_v20, %v5630_v11  ;;  %v5847_v4 = vld [vmem:[%s4624_s10 + $0x20] sm:$0xff]  ;;  %v5862_v61 = vld [vmem:[%s4624_s10 + $0x28] sm:$0xff] }
 0x1ce   : > { %vm2296_vm9 = vcmp.lt.s32.totalorder %v2295_v40, 2  ;;  %v2299_v47 = vsel %vm2297_vm3, %v5585_v59, %v1469_v21  ;;  %v2302_v53 = vsel %vm2300_vm10, %v1472_v62, %v5589_v14  ;;  %vm2400_vm5 = vcmp.lt.s32.totalorder %v2399_v1, 2  ;;  %v2617_v59 = vld [vmem:[%s4617_s2] sm:$0xff] }
 0x1cf   : > { %v1765_v16 = vmul.f32 %v1764_v58, %v1762_v34  ;;  %v2403_v31 = vsel %vm2401_vm15, %v5692_v51, %v1572_v15  ;;  %v2406_v13 = vsel %vm2404_vm2, %v1575_v12, %v5702_v29  ;;  %vm1674_vm6 = vcmp.eq.s32.totalorder %v5704_v6, 0  ;;  %v2625_v14 = vld [vmem:[%s4624_s10] sm:$0xff] }
 0x1d0   : > { %vm1677_vm7 = vcmp.eq.s32.totalorder %v5704_v6, 2  ;;  %v1888_v11 = vsel %vm1053_vm0, nan, %v5707_v52  ;;  %v5784_v21 = vand.u32 3, %v2502_v50  ;;  %v5790_v51 = vsel %vm1156_vm13, nan, %v1991_v17 }
 0x1d1   : > { %v1766_v62 = vxor.u32 2147483648, %v1765_v16  ;;  %v5794_v29 = vsel %vm1259_vm1, nan, %v2095_v30  ;;  %v2303_v7 = vsel %vm2296_vm9, %v2299_v47, %v2302_v53  ;;  %v4077_v54 = vpop.eup %4076  ;;  %v5799_v60 = vsel %vm1568_vm11, nan, %v1577_v46 }
 0x1d2   : > { %vm1673_vm0 = vcmp.lt.s32.totalorder %v5704_v6, 2  ;;  %v1771_v5 = vsel %vm5747_vm8, 0, %v1769_v35  ;;  %vm6970_vm13 = vweird.f32 %v4997_v38  ;;  %v2407_v52 = vsel %vm2400_vm5, %v2403_v31, %v2406_v13  ;;  %v4079_v25 = vpop.eup %4078 }
 0x1d3   : > { %v5806_v10 = vsel %vm6970_vm13, nan, %v2199_v55  ;;  %v2633_v48 = vmul.f32 %v2617_v59, %v5572_v36  ;;  %v2641_v15 = vmul.f32 %v2625_v14, %v1888_v11  ;;  %v2657_v12 = vmul.f32 %v2617_v59, %v1888_v11 }
 0x1d4   : > { %v2665_v32 = vmul.f32 %v2625_v14, %v5572_v36  ;;  %v1767_v38 = vsel %vm1684_vm12, %v1766_v62, %v1765_v16  ;;  %vm6971_vm1 = vweird.f32 %v5093_v37  ;;  %vm2504_vm2 = vcmp.lt.s32.totalorder %v5784_v21, 2 }
 0x1d5   : > { %v5819_v28 = vsel %vm6971_vm1, nan, %v2303_v7  ;;  %vm2505_vm14 = vcmp.eq.s32.totalorder %v5784_v21, 0  ;;  %v1678_v26 = vxor.u32 2147483648, %v4077_v54  ;;  %v5834_v36 = vsel %vm1568_vm11, nan, %v2407_v52 }
 0x1d6   : > { %vm2508_vm12 = vcmp.eq.s32.totalorder %v5784_v21, 2  ;;  %v2606_v37 = vadd.s32 3, %v1771_v5  ;;  %v1675_v40 = vxor.u32 2147483648, %v4079_v25  ;;  %v2634_v1 = vmul.f32 %v2618_v23, %v5640_v45 }
 0x1d7   : > { %v2635_v2 = vmul.f32 %v5811_v22, %v5664_v24  ;;  %v2681_v33 = vlaneseq  ;;  %v1770_v42 = vsel %vm5747_vm8, %v5255_v57, %v1767_v38  ;;  %v2636_v44 = vmul.f32 %v5824_v3, %v5677_v56 }
 0x1d8   : > { %v5857_v0 = vsub.f32 %v2633_v48, %v2641_v15  ;;  %v5859_v20 = vadd.f32 %v2665_v32, %v2657_v12  ;;  %v2637_v18 = vmul.f32 %v5827_v49, %v5696_v8  ;;  %v2638_v9 = vmul.f32 %v5830_v41, %v5799_v60  ;;  %v2623_v32 = vld [vmem:[%s4617_s2 + $0x30] sm:$0xff] }
 0x1d9   : > { %v2642_v19 = vmul.f32 %v5838_v43, %v5790_v51  ;;  %v2643_v58 = vmul.f32 %v5841_v39, %v5794_v29  ;;  %v1679_v17 = vsel %vm1677_vm7, %v1678_v26, %v4079_v25  ;;  %v2510_v50 = vsel %vm2508_vm12, %v1678_v26, %v4079_v25 }
 0x1da   : > { %v2644_v46 = vmul.f32 %v5844_v27, %v5806_v10  ;;  %v2645_v34 = vmul.f32 %v5847_v4, %v5819_v28  ;;  %v1676_v30 = vsel %vm1674_vm6, %v4077_v54, %v1675_v40  ;;  %4080 = vcosq.f32 %v1770_v42 }
 0x1db   : > { %v2507_v55 = vsel %vm2505_vm14, %v4077_v54, %v1675_v40  ;;  %v2682_v35 = vshrl.u32 %v2681_v33, 7  ;;  %4082 = vsinq.f32 %v1770_v42  ;;  %v2646_v47 = vmul.f32 %v5862_v61, %v5834_v36 }
 0x1dc   : > { %v5888_v53 = vand.u32 2147483647, %v5857_v0  ;;  %v5891_v16 = vand.u32 2147483647, %v5859_v20  ;;  %vm1671_vm11 = vweird.f32 %v5252_v63  ;;  %v5894_v31 = vand.u32 3, %v1771_v5 }
 0x1dd   : > { %v5896_v13 = vand.u32 3, %v2606_v37  ;;  %v5898_v11 = vsub.f32 %v2634_v1, %v2642_v19  ;;  %v1680_v59 = vsel %vm1673_vm0, %v1676_v30, %v1679_v17  ;;  %v2511_v14 = vsel %vm2504_vm2, %v2507_v55, %v2510_v50  ;;  %v2631_v1 = vld [vmem:[%s4624_s10 + $0x30] sm:$0xff] }
 0x1de   : > { %v5904_v62 = vsub.f32 %v2635_v2, %v2643_v58  ;;  %v5906_v7 = vsub.f32 %v2636_v44, %v2644_v46  ;;  %v2683_v54 = vadd.s32 8, %v2682_v35  ;;  %v2684_v52 = vadd.s32 16, %v2682_v35 }
 0x1df   : > { %v2685_v5 = vadd.s32 24, %v2682_v35  ;;  %v2691_v25 = vstv %s3673_s22  ;;  %v5908_v48 = vsub.f32 %v2637_v18, %v2645_v34  ;;  %v5910_v15 = vsub.f32 %v2638_v9, %v2646_v47  ;;  %s4225_s22 = scalar_lea.vmem %s4224_s1, 2048 }
 0x1e0   : > { %v2658_v12 = vmul.f32 %v2618_v23, %v5790_v51  ;;  %v2757_v6 = vmax.f32 %v5888_v53, %v5891_v16  ;;  %v1681_v21 = vsel %vm1671_vm11, nan, %v1680_v59  ;;  %v2659_v38 = vmul.f32 %v5811_v22, %v5794_v29 }
 0x1e1   : > { %6972 = vst [vmem:[#allocation25_spill] sm:$0xff] %v5910_v15  ;;  %v2686_v26 = vadd.s32 32, %v2682_v35  ;;  %v2687_v37 = vadd.s32 40, %v2682_v35  ;;  %v2512_v40 = vsel %vm1671_vm11, nan, %v2511_v14  ;;  %v2688_v2 = vadd.s32 48, %v2682_v35 }
 0x1e2   : > { %v2689_v42 = vadd.s32 56, %v2682_v35  ;;  %v2692_v44 = vadd.s32 %v2691_v25, %v2682_v35  ;;  %v2660_v51 = vmul.f32 %v5824_v3, %v5806_v10  ;;  %v2693_v23 = vadd.s32 %v2691_v25, %v2683_v54 }
 0x1e3   : > { %v2694_v18 = vadd.s32 %v2691_v25, %v2684_v52  ;;  %v2695_v9 = vadd.s32 %v2691_v25, %v2685_v5  ;;  %v2639_v19 = vmul.f32 %v2623_v32, %v1681_v21  ;;  %v2661_v58 = vmul.f32 %v5827_v49, %v5819_v28 }
 0x1e4   : > { %v2662_v29 = vmul.f32 %v5830_v41, %v5834_v36  ;;  %4084 = vrcp.f32 %v2757_v6  ;;  %vm1777_vm8 = vcmp.eq.s32.totalorder %v5894_v31, 0  ;;  %vm1780_vm4 = vcmp.eq.s32.totalorder %v5894_v31, 2 }
 0x1e5   : > { %v2647_v63 = vmul.f32 %v2631_v1, %v2512_v40  ;;  %v2696_v22 = vadd.s32 %v2691_v25, %v2686_v26  ;;  %v2697_v17 = vadd.s32 %v2691_v25, %v2687_v37  ;;  %v2701_v50 = vand.u32 127, %v2681_v33 }
 0x1e6   : > { %v2666_v10 = vmul.f32 %v5838_v43, %v5640_v45  ;;  %v2698_v3 = vadd.s32 %v2691_v25, %v2688_v2  ;;  %v2699_v46 = vadd.s32 %v2691_v25, %v2689_v42  ;;  %v2702_v34 = vcvt.s32.f32 %v2692_v44 }
 0x1e7   : > { %vm2609_vm3 = vcmp.eq.s32.totalorder %v5896_v13, 0  ;;  %vm2612_vm10 = vcmp.eq.s32.totalorder %v5896_v13, 2  ;;  %v2663_v28 = vmul.f32 %v2623_v32, %v2512_v40  ;;  %v2703_v49 = vcvt.s32.f32 %v2693_v23  ;;  %v4081_v30 = vpop.eup %4080 }
 0x1e8   : > { %v2704_v41 = vcvt.s32.f32 %v2694_v18  ;;  %v2705_v36 = vcvt.s32.f32 %v2695_v9  ;;  %vm1776_vm15 = vcmp.lt.s32.totalorder %v5894_v31, 2  ;;  %v2667_v33 = vmul.f32 %v5841_v39, %v5664_v24  ;;  %v4083_v35 = vpop.eup %4082 }
 0x1e9   : > { %v2668_v45 = vmul.f32 %v5844_v27, %v5677_v56  ;;  %v2669_v43 = vmul.f32 %v5847_v4, %v5696_v8  ;;  %v2670_v55 = vmul.f32 %v5862_v61, %v5799_v60  ;;  %v5944_v47 = vsub.f32 %v2639_v19, %v2647_v63 }
 0x1ea   : > { %v2706_v59 = vcvt.s32.f32 %v2696_v22  ;;  %v2707_v14 = vcvt.s32.f32 %v2697_v17  ;;  %v2726_v54 = vcvt.s32.f32 %v2701_v50  ;;  %vm2608_vm9 = vcmp.lt.s32.totalorder %v5896_v13, 2 }
 0x1eb   : > { %6973 = vst [vmem:[#allocation26_spill] sm:$0xff] %v5944_v47  ;;  %v2671_v52 = vmul.f32 %v2631_v1, %v1681_v21  ;;  %v2708_v5 = vcvt.s32.f32 %v2698_v3  ;;  %v2709_v24 = vcvt.s32.f32 %v2699_v46  ;;  %v3674_v39 = vadd.f32 -63.5, %v2702_v34 }
 0x1ec   : > { %v5947_v25 = vadd.f32 %v2666_v10, %v2658_v12  ;;  %v3675_v56 = vadd.f32 -63.5, %v2703_v49  ;;  %v3676_v27 = vadd.f32 -63.5, %v2704_v41  ;;  %v3677_v8 = vadd.f32 -63.5, %v2705_v36 }
 0x1ed   : > { %vm1774_vm5 = vweird.f32 %v5255_v57  ;;  %v1778_v60 = vxor.u32 2147483648, %v4083_v35  ;;  %v1781_v4 = vxor.u32 2147483648, %v4081_v30  ;;  %v5950_v61 = vadd.f32 %v2667_v33, %v2659_v38 }
 0x1ee   : > { %v5952_v6 = vadd.f32 %v2668_v45, %v2660_v51  ;;  %v5954_v32 = vadd.f32 %v2669_v43, %v2661_v58  ;;  %v3678_v26 = vadd.f32 -63.5, %v2706_v59  ;;  %v3679_v21 = vadd.f32 -63.5, %v2707_v14 }
 0x1ef   : > { %v3682_v37 = vadd.f32 -63.5, %v2726_v54  ;;  %v3680_v40 = vadd.f32 -63.5, %v2708_v5  ;;  %v3681_v1 = vadd.f32 -63.5, %v2709_v24  ;;  %v2718_v12 = vmul.f32 0.00015625, %v3674_v39  ;;  %v2624_v54 = vld [vmem:[%s4617_s2 + $0x38] sm:$0xff] }
 0x1f0   : > { %v2756_v2 = vmin.f32 %v5888_v53, %v5891_v16  ;;  %v5958_v42 = vadd.f32 %v2670_v55, %v2662_v29  ;;  %v2719_v44 = vmul.f32 0.00015625, %v3675_v56  ;;  %v2720_v23 = vmul.f32 0.00015625, %v3676_v27  ;;  %v2632_v39 = vld [vmem:[%s4624_s10 + $0x38] sm:$0xff]  ;;  %s6364_s2 = scalar_lea.vmem [#allocation13], %s4614_s13 }
 0x1f1   : > { %v2721_v18 = vmul.f32 0.00015625, %v3677_v8  ;;  %v1779_v38 = vsel %vm1777_vm8, %v4081_v30, %v1778_v60  ;;  %v1782_v51 = vsel %vm1780_vm4, %v1781_v4, %v4083_v35  ;;  %v5965_v9 = vand.u32 2147483647, %v5898_v11  ;;  %v4085_v58 = vpop.eup %4084  ;;  %s3506_s13 = sshll.u32 %s4387_s9, 3  ;;  %s3258_s21 = sshll.u32 %s6364_s2, 4  ;;  %s6835_s21 = int_to_ptr.vmem [resolvable:$true] %s3258_s21 }
 0x1f2   : > { %6974 = vst [vmem:[#allocation27_spill] sm:$0xff] %v5958_v42  ;;  %v5968_v19 = vand.u32 2147483647, %v5947_v25  ;;  %v5970_v63 = vadd.f32 %v2671_v52, %v2663_v28  ;;  %v2722_v29 = vmul.f32 0.00015625, %v3678_v26  ;;  %v2611_v50 = vsel %vm2609_vm3, %v4081_v30, %v1778_v60  ;;  %p6502_p13 = scmp.lt.s32.totalorder %s3506_s13, 15  ;;  %p4226_p4 = scmp.lt.s32.totalorder %s6835_s21, %s4224_s1 }
 0x1f3   : > { %v2723_v22 = vmul.f32 0.00015625, %v3679_v21  ;;  %v2728_v17 = vmul.f32 0.00015625, %v3682_v37  ;;  %v2614_v10 = vsel %vm2612_vm10, %v1781_v4, %v4083_v35  ;;  %v5976_v3 = vmul.f32 %v4085_v58, %v2756_v2  ;;  %s3237_s9 = scalar_lea.sflag [#allocation4], %s4602_s24  ;;  %s4219_s4 = scalar_lea.vmem %s6835_s21, 1024 }
 0x1f4   : > { %v2804_v46 = vmax.f32 %v5965_v9, %v5968_v19  ;;  %v1783_v34 = vsel %vm1776_vm15, %v1779_v38, %v1782_v51  ;;  %v2724_v28 = vmul.f32 0.00015625, %v3680_v40  ;;  %v2725_v49 = vmul.f32 0.00015625, %v3681_v1  ;;  %s7088_s13 = smov (!%p6502_p13, %s3506_s13), 15  ;;  %p4220_p9 = scmp.ne.s32.totalorder %s6835_s21, %s4219_s4 }
 0x1f5   : > { %v2730_v41 = vmul.f32 %v2718_v12, %v2718_v12  ;;  %v5984_v36 = vmul.f32 %v5976_v3, %v5976_v3  ;;  %v5987_v30 = vand.u32 2147483647, %v5904_v62  ;;  %v5990_v33 = vand.u32 2147483647, %v5950_v61  ;;  %s3507_s12 = sshll.u32 %s7088_s13, 3  ;;  %p4227_p6 = scmp.lt.s32.totalorder %s4225_s22, %s4219_s4 }
 0x1f6   : > { %4086 = vrcp.f32 %v2804_v46  ;;  %v2615_v31 = vsel %vm2608_vm9, %v2611_v50, %v2614_v10  ;;  %v2731_v45 = vmul.f32 %v2719_v44, %v2719_v44  ;;  %v2732_v43 = vmul.f32 %v2720_v23, %v2720_v23  ;;  %s6696_s0 = scalar_lea.vmem %s6885_s6, %s3507_s12  ;;  %s547_s23 = scalar_lea.vmem %s6886_s7, %s3507_s12 }
 0x1f7   : > { %vm2784_vm6 = vcmp.lt.s32.totalorder %v5857_v0, 0  ;;  %v5995_v55 = vmul.f32 %v2728_v17, %v2728_v17  ;;  %v2761_v35 = vmul.f32 0.002785687, %v5984_v36  ;;  %v2851_v59 = vmax.f32 %v5987_v30, %v5990_v33  ;;  %p4221_p11 = pnand %p4220_p9, %p7079_p10  ;;  %p4228_p1 = por %p4227_p6, %p4226_p4 }
 0x1f8   : > { %v1784_v14 = vsel %vm1774_vm5, nan, %v1783_v34  ;;  %v2733_v52 = vmul.f32 %v2721_v18, %v2721_v18  ;;  %v2734_v5 = vmul.f32 %v2722_v29, %v2722_v29  ;;  %v2735_v24 = vmul.f32 %v2723_v22, %v2723_v22 }
 0x1f9   : > { %vm2781_vm7 = vcmp.lt.f32.partialorder %v5857_v0, 0.0  ;;  %v2616_v13 = vsel %vm1774_vm5, nan, %v2615_v31  ;;  %v2762_v56 = vadd.f32 -0.015866, %v2761_v35  ;;  %4088 = vrcp.f32 %v2851_v59  ;;  %p4222_p12 = pneg %p4221_p11 }
 0x1fa   : > { %v6008_v27 = vand.u32 2147483647, %v5906_v7  ;;  %v6010_v8 = vmul.f32 %v2724_v28, %v2724_v28  ;;  %v6012_v60 = vmul.f32 %v2725_v49, %v2725_v49  ;;  %v6905_v4 = vmov 0.0  }
 0x1fb   : > { %v6017_v26 = vsel %vm2784_vm6, 3.1415927, %v6905_v4  ;;  %v6020_v21 = vand.u32 2147483647, %v5952_v6  ;;  %v2640_v57 = vmul.f32 %v2624_v54, %v1784_v14  ;;  %v6023_v37 = vadd.f32 %v2730_v41, %v5995_v55  ;;  %p4229_p0 = pnand %p4228_p1, %p4222_p12 }
 0x1fc   : > { %v6026_v40 = vadd.f32 %v2731_v45, %v5995_v55  ;;  %v2763_v1 = vmul.f32 %v2762_v56, %v5984_v36  ;;  %v2648_v12 = vmul.f32 %v2632_v39, %v2616_v13  ;;  %v2664_v2 = vmul.f32 %v2624_v54, %v2616_v13 }
 0x1fd   : > { %v2672_v44 = vmul.f32 %v2632_v39, %v1784_v14  ;;  %v2898_v23 = vmax.f32 %v6008_v27, %v6020_v21  ;;  %v6032_v18 = vadd.f32 %v2732_v43, %v5995_v55  ;;  %v6035_v38 = vadd.f32 %v2733_v52, %v5995_v55 }
 0x1fe   : > { %v6038_v51 = vadd.f32 %v2734_v5, %v5995_v55  ;;  %v2764_v58 = vadd.f32 0.04247222, %v2763_v1  ;;  %v6041_v29 = vand.u32 2147483647, %v5908_v48  ;;  %v6044_v22 = vand.u32 2147483647, %v5954_v32 }
 0x1ff   : > { %6975 = vst [vmem:[#allocation28_spill] sm:$0xff] %v6035_v38  ;;  %4090 = vrcp.f32 %v2898_v23  ;;  %v6047_v17 = vadd.f32 %v2735_v24, %v5995_v55  ;;  %v2803_v10 = vmin.f32 %v5965_v9, %v5968_v19  ;;  %vm2831_vm0 = vcmp.lt.s32.totalorder %v5898_v11, 0 }
 0x200   : > { %6976 = vst [vmem:[#allocation29_spill] sm:$0xff] %v6038_v51  ;;  %v2765_v50 = vmul.f32 %v2764_v58, %v5984_v36  ;;  %v6053_v46 = vsub.f32 %v2640_v57, %v2648_v12  ;;  %v6055_v34 = vadd.f32 %v2672_v44, %v2664_v2  ;;  %v2945_v49 = vmax.f32 %v6041_v29, %v6044_v22 }
 0x201   : > { %6977 = vst [vmem:[#allocation30_spill] sm:$0xff] %v6047_v17  ;;  %v6902_v31 = vmov 0.7853982   ;;  %vm2828_vm13 = vcmp.lt.f32.partialorder %v5898_v11, 0.0  ;;  %vm2878_vm1 = vcmp.lt.s32.totalorder %v5904_v62, 0  ;;  %v2850_v59 = vmin.f32 %v5987_v30, %v5990_v33 }
 0x202   : > { %6978 = vst [vmem:[#allocation31_spill] sm:$0xff] %v6055_v34  ;;  %v2766_v41 = vadd.f32 -0.074975304, %v2765_v50  ;;  %v6063_v45 = vsel %vm2781_vm7, 2.3561945, %v6902_v31  ;;  %4092 = vrcp.f32 %v2945_v49  ;;  %vm2925_vm2 = vcmp.lt.s32.totalorder %v5906_v7, 0 }
 0x203   : > { %v4087_v43 = vpop.eup %4086  ;;  %v6068_v35 = vsel %vm2831_vm0, 3.1415927, %v6905_v4  ;;  %v6073_v14 = vand.u32 2147483647, %v5910_v15  ;;  %v6080_v5 = vand.u32 2147483647, %v5958_v42  ;;  %v2897_v49 = vmin.f32 %v6008_v27, %v6020_v21 }
 0x204   : > { %v2767_v54 = vmul.f32 %v2766_v41, %v5984_v36  ;;  %v6076_v52 = vmul.f32 %v4087_v43, %v2803_v10  ;;  %v6085_v24 = vsel %vm2828_vm13, 2.3561945, %v6902_v31  ;;  %vm2875_vm14 = vcmp.lt.f32.partialorder %v5904_v62, 0.0 }
 0x205   : > { %6979 = vst [vmem:[#allocation32_spill] sm:$0xff] %v6073_v14  ;;  %6980 = vst [vmem:[#allocation33_spill] sm:$0xff] %v6080_v5  ;;  %v6090_v39 = vsel %vm2878_vm1, 3.1415927, %v6905_v4  ;;  %v6099_v1 = vsel %vm2875_vm14, 2.3561945, %v6902_v31  ;;  %v2992_v12 = vmax.f32 %v6073_v14, %v6080_v5  ;;  %vm2778_vm15 = vcmp.gt.f32.partialorder %v5891_v16, %v5888_v53 }
 0x206   : > { %6981 = vst [vmem:[#allocation34_spill] sm:$0xff] %v6090_v39  ;;  %v2768_v56 = vadd.f32 0.1064488, %v2767_v54  ;;  %v6094_v57 = vmul.f32 %v6076_v52, %v6076_v52  ;;  %6982 = vst [vmem:[#allocation35_spill] sm:$0xff] %v6099_v1  ;;  %v4089_v2 = vpop.eup %4088  ;;  %vm6927_vm12 = vcmp.lt.f32.partialorder %v5906_v7, 0.0  ;;  %vm2972_vm11 = vcmp.lt.s32.totalorder %v5908_v48, 0 }
 0x207   : > { %v6106_v23 = vsel %vm2925_vm2, 3.1415927, %v6905_v4  ;;  %v6111_v10 = vmul.f32 %v4089_v2, %v2850_v59  ;;  %4094 = vrcp.f32 %v2992_v12  ;;  %v6118_v41 = vsel %vm6927_vm12, 2.3561945, %v6902_v31 }
 0x208   : > { %6983 = vst [vmem:[#allocation36_spill] sm:$0xff] %v6106_v23  ;;  %v2769_v58 = vmul.f32 %v2768_v56, %v5984_v36  ;;  %v2808_v50 = vmul.f32 0.002785687, %v6094_v57  ;;  %6984 = vst [vmem:[#allocation37_spill] sm:$0xff] %v6118_v41  ;;  %v6121_v43 = vand.u32 2147483647, %v5944_v47  ;;  %v2944_v2 = vmin.f32 %v6041_v29, %v6044_v22 }
 0x209   : > { %v6124_v54 = vand.u32 2147483647, %v5970_v63  ;;  %v6128_v59 = vmul.f32 %v6111_v10, %v6111_v10  ;;  %vm6926_vm8 = vcmp.lt.f32.partialorder %v5908_v48, 0.0  ;;  %v6135_v13 = vsel %vm2972_vm11, 3.1415927, %v6905_v4 }
 0x20a   : > { %v2770_v56 = vadd.f32 -0.14207031, %v2769_v58  ;;  %v2809_v44 = vadd.f32 -0.015866, %v2808_v50  ;;  %6985 = vst [vmem:[#allocation38_spill] sm:$0xff] %v6135_v13  ;;  %vm3019_vm4 = vcmp.lt.s32.totalorder %v5910_v15, 0  ;;  %v6153_v4 = vadd.f32 %v6010_v8, %v5995_v55 }
 0x20b   : > { %v3039_v28 = vmax.f32 %v6121_v43, %v6124_v54  ;;  %v2855_v17 = vmul.f32 0.002785687, %v6128_v59  ;;  %v6986_v41 = vmov 0.7853982   ;;  %vm6925_vm3 = vcmp.lt.f32.partialorder %v5910_v15, 0.0 }
 0x20c   : > { %v4091_v31 = vpop.eup %4090  ;;  %v2771_v58 = vmul.f32 %v2770_v56, %v5984_v36  ;;  %v2810_v50 = vmul.f32 %v2809_v44, %v6094_v57  ;;  %v6148_v23 = vsel %vm6926_vm8, 2.3561945, %v6986_v41  ;;  %6988 = vst [vmem:[#allocation40_spill] sm:$0xff] %v6153_v4  ;;  %vm3066_vm10 = vcmp.lt.s32.totalorder %v5944_v47, 0 }
 0x20d   : > { %v6143_v12 = vmul.f32 %v4091_v31, %v2897_v49  ;;  %6987 = vst [vmem:[#allocation39_spill] sm:$0xff] %v6148_v23  ;;  %4096 = vrcp.f32 %v3039_v28  ;;  %v2856_v13 = vadd.f32 -0.015866, %v2855_v17  ;;  %v6989_v49 = vmov 0.0  }
 0x20e   : > { %v2772_v56 = vadd.f32 0.19993454, %v2771_v58  ;;  %v2811_v44 = vadd.f32 0.04247222, %v2810_v50  ;;  %v6161_v1 = vsel %vm3019_vm4, 3.1415927, %v6989_v49  ;;  %vm2788_vm9 = vcmp.ne.f32.partialorder %v5857_v0, %v5857_v0 }
 0x20f   : > { %v6157_v51 = vmul.f32 %v6143_v12, %v6143_v12  ;;  %6990 = vst [vmem:[#allocation41_spill] sm:$0xff] %v6161_v1  ;;  %v6166_v28 = vsel %vm6925_vm3, 2.3561945, %v6986_v41  ;;  %v4093_v23 = vpop.eup %4092  ;;  %v2857_v17 = vmul.f32 %v2856_v13, %v6128_v59  ;;  %v6178_v1 = vand.u32 2147483647, %v6053_v46 }
 0x210   : > { %6991 = vst [vmem:[#allocation42_spill] sm:$0xff] %v6166_v28  ;;  %v2773_v8 = vmul.f32 %v2772_v56, %v5984_v36  ;;  %v2812_v58 = vmul.f32 %v2811_v44, %v6094_v57  ;;  %v6175_v31 = vmul.f32 %v4093_v23, %v2944_v2  ;;  %v6181_v28 = vand.u32 2147483647, %v6055_v34 }
 0x211   : > { %v2902_v50 = vmul.f32 0.002785687, %v6157_v51  ;;  %v2858_v44 = vadd.f32 0.04247222, %v2857_v17  ;;  %v2991_v13 = vmin.f32 %v6073_v14, %v6080_v5  ;;  %vm2789_vm5 = vcmp.ne.f32.partialorder %v5859_v20, %v5859_v20 }
 0x212   : > { %6992 = vst [vmem:[#allocation43_spill] sm:$0xff] %v6175_v31  ;;  %v2774_v56 = vadd.f32 -0.33333147, %v2773_v8  ;;  %v2813_v4 = vadd.f32 -0.074975304, %v2812_v58  ;;  %v6191_v2 = vmul.f32 %v6175_v31, %v6175_v31  ;;  %v3086_v8 = vmax.f32 %v6178_v1, %v6181_v28  ;;  %vm6253_vm4 = vmor %vm2788_vm9, %vm2789_vm5 }
 0x213   : > { %v2903_v23 = vadd.f32 -0.015866, %v2902_v50  ;;  %vm2794_vm6 = vcmp.eq.s32.totalorder %v5888_v53, inf  ;;  %vm2795_vm0 = vcmp.eq.s32.totalorder %v5891_v16, inf  ;;  %v2859_v15 = vmul.f32 %v2858_v44, %v6128_v59 }
 0x214   : > { %v2775_v58 = vmul.f32 %v2774_v56, %v5984_v36  ;;  %v2814_v17 = vmul.f32 %v2813_v4, %v6094_v57  ;;  %vm6924_vm1 = vcmp.lt.f32.partialorder %v5944_v47, 0.0  ;;  %v4095_v50 = vpop.eup %4094  ;;  %vm2786_vm2 = vcmp.eq.f32.partialorder %v5859_v20, 0.0 }
 0x215   : > { %v2904_v34 = vmul.f32 %v2903_v23, %v6157_v51  ;;  %v2949_v42 = vmul.f32 0.002785687, %v6191_v2  ;;  %v6208_v36 = vsel %vm3066_vm10, 3.1415927, %v6989_v49  ;;  %4098 = vrcp.f32 %v3086_v8  ;;  %vm6272_vm10 = vmand %vm2794_vm6, %vm2795_vm0 }
 0x216   : > { %6993 = vst [vmem:[#allocation44_spill] sm:$0xff] %v6208_v36  ;;  %v2776_v56 = vmul.f32 %v2775_v58, %v5976_v3  ;;  %v2815_v4 = vadd.f32 0.1064488, %v2814_v17  ;;  %v2860_v5 = vadd.f32 -0.074975304, %v2859_v15  ;;  %v6211_v44 = vmul.f32 %v4095_v50, %v2991_v13 }
 0x217   : > { %v2905_v14 = vadd.f32 0.04247222, %v2904_v34  ;;  %v2950_v38 = vadd.f32 -0.015866, %v2949_v42  ;;  %v3038_v39 = vmin.f32 %v6121_v43, %v6124_v54  ;;  %v6218_v23 = vsel %vm6924_vm1, 2.3561945, %v6986_v41 }
 0x218   : > { %6994 = vst [vmem:[#allocation45_spill] sm:$0xff] %v6218_v23  ;;  %v2777_v31 = vadd.f32 %v2776_v56, %v5976_v3  ;;  %v2816_v8 = vmul.f32 %v2815_v4, %v6094_v57  ;;  %v2861_v58 = vmul.f32 %v2860_v5, %v6128_v59  ;;  %v6225_v15 = vmul.f32 %v6211_v44, %v6211_v44 }
 0x219   : > { %v2906_v42 = vmul.f32 %v2905_v14, %v6157_v51  ;;  %v2951_v34 = vmul.f32 %v2950_v38, %v6191_v2  ;;  %vm3113_vm11 = vcmp.lt.s32.totalorder %v6053_v46, 0  ;;  %v6233_v3 = vadd.f32 %v6012_v60, %v5995_v55 }
 0x21a   : > { %v4097_v17 = vpop.eup %4096  ;;  %v2779_v50 = vsub.f32 1.5707964, %v2777_v31  ;;  %v2817_v56 = vadd.f32 -0.14207031, %v2816_v8  ;;  %v2862_v5 = vadd.f32 0.1064488, %v2861_v58  ;;  %v3085_v55 = vmin.f32 %v6178_v1, %v6181_v28 }
 0x21b   : > { %6995 = vst [vmem:[#allocation46_spill] sm:$0xff] %v6233_v3  ;;  %v2907_v4 = vadd.f32 -0.074975304, %v2906_v42  ;;  %v2952_v23 = vadd.f32 0.04247222, %v2951_v34  ;;  %v6236_v47 = vmul.f32 %v4097_v17, %v3038_v39  ;;  %vm2825_vm9 = vcmp.gt.f32.partialorder %v5968_v19, %v5965_v9  ;;  %v6636_v3 = vld [vmem:[%s4634_s20 + $0x30] sm:$0xff] }
 0x21c   : > { %v2996_v36 = vmul.f32 0.002785687, %v6225_v15  ;;  %v2780_v38 = vsel %vm2778_vm15, %v2779_v50, %v2777_v31  ;;  %v2818_v14 = vmul.f32 %v2817_v56, %v6094_v57  ;;  %v2863_v13 = vmul.f32 %v2862_v5, %v6128_v59 }
 0x21d   : > { %v2782_v60 = vsub.f32 3.1415927, %v2780_v38  ;;  %v2908_v8 = vmul.f32 %v2907_v4, %v6157_v51  ;;  %v2953_v58 = vmul.f32 %v2952_v23, %v6191_v2  ;;  %v6259_v17 = vmul.f32 %v6236_v47, %v6236_v47 }
 0x21e   : > { %v2997_v42 = vadd.f32 -0.015866, %v2996_v36  ;;  %v2819_v31 = vadd.f32 0.19993454, %v2818_v14  ;;  %v2864_v34 = vadd.f32 -0.14207031, %v2863_v13  ;;  %vm2835_vm5 = vcmp.ne.f32.partialorder %v5898_v11, %v5898_v11 }
 0x21f   : > { %v6264_v36 = vsel %vm3113_vm11, 3.1415927, %v6989_v49  ;;  %v2783_v23 = vsel %vm2781_vm7, %v2782_v60, %v2780_v38  ;;  %v2909_v13 = vadd.f32 0.1064488, %v2908_v8  ;;  %v2954_v56 = vadd.f32 -0.074975304, %v2953_v58 }
 0x220   : > { %6998 = vst [vmem:[#allocation47_spill] sm:$0xff] %v6264_v36  ;;  %v2998_v5 = vmul.f32 %v2997_v42, %v6225_v15  ;;  %vm2746_vm15 = vcmp.le.f32.partialorder %v6023_v37, 0.0001  ;;  %v2787_v49 = vsel %vm2786_vm2, %v6017_v26, %v2783_v23  ;;  %v2820_v4 = vmul.f32 %v2819_v31, %v6094_v57  ;;  %v6292_v26 = vld [vmem:[%s4627_s25] sm:$0xff] }
 0x221   : > { %v2865_v16 = vmul.f32 %v2864_v34, %v6128_v59  ;;  %v3043_v53 = vmul.f32 0.002785687, %v6259_v17  ;;  %vm6928_vm7 = vcmp.lt.f32.partialorder %v6053_v46, 0.0  ;;  %v2791_v38 = vsel %vm6253_vm4, nan, %v2787_v49 }
 0x222   : > { %v2910_v14 = vmul.f32 %v2909_v13, %v6157_v51  ;;  %v2955_v60 = vmul.f32 %v2954_v56, %v6191_v2  ;;  %v2999_v8 = vadd.f32 0.04247222, %v2998_v5  ;;  %v4099_v58 = vpop.eup %4098  ;;  %v2797_v42 = vsel %vm6272_vm10, %v6063_v45, %v2791_v38 }
 0x223   : > { %v2821_v31 = vadd.f32 -0.33333147, %v2820_v4  ;;  %v2866_v34 = vadd.f32 0.19993454, %v2865_v16  ;;  %v3044_v23 = vadd.f32 -0.015866, %v3043_v53  ;;  %vm2836_vm6 = vcmp.ne.f32.partialorder %v5947_v25, %v5947_v25 }
 0x224   : > { %v2798_v39 = vand.u32 2147483647, %v2797_v42  ;;  %v2911_v13 = vadd.f32 -0.14207031, %v2910_v14  ;;  %v2956_v56 = vadd.f32 0.1064488, %v2955_v60  ;;  %v3000_v5 = vmul.f32 %v2999_v8, %v6225_v15  ;;  %vm6378_vm3 = vmor %vm2835_vm5, %vm2836_vm6 }
 0x225   : > { %v2822_v49 = vmul.f32 %v2821_v31, %v6094_v57  ;;  %vm2841_vm0 = vcmp.eq.s32.totalorder %v5965_v9, inf  ;;  %vm2842_vm2 = vcmp.eq.s32.totalorder %v5968_v19, inf  ;;  %v2867_v45 = vmul.f32 %v2866_v34, %v6128_v59 }
 0x226   : > { %v3045_v50 = vmul.f32 %v3044_v23, %v6259_v17  ;;  %v6307_v4 = vmul.f32 %v4099_v58, %v3085_v55  ;;  %vm2833_vm11 = vcmp.eq.f32.partialorder %v5947_v25, 0.0  ;;  %vm2872_vm4 = vcmp.gt.f32.partialorder %v5990_v33, %v5987_v30  ;;  %vm6395_vm5 = vmand %vm2841_vm0, %vm2842_vm2 }
 0x227   : > { %v2912_v16 = vmul.f32 %v2911_v13, %v6157_v51  ;;  %v2957_v53 = vmul.f32 %v2956_v56, %v6191_v2  ;;  %v3001_v57 = vadd.f32 -0.074975304, %v3000_v5  ;;  %v6316_v38 = vmul.f32 %v6292_v26, %v5857_v0 }
 0x228   : > { %v2823_v14 = vmul.f32 %v2822_v49, %v6076_v52  ;;  %v2868_v60 = vadd.f32 -0.33333147, %v2867_v45  ;;  %v3046_v8 = vadd.f32 0.04247222, %v3045_v50  ;;  %v6321_v55 = vmul.f32 %v6307_v4, %v6307_v4 }
 0x229   : > { %v7001_v58 = vand.u32 2147483648, %v5859_v20  ;;  %vm2882_vm10 = vcmp.ne.f32.partialorder %v5904_v62, %v5904_v62  ;;  %vm2883_vm1 = vcmp.ne.f32.partialorder %v5950_v61, %v5950_v61  ;;  %v2913_v31 = vadd.f32 0.19993454, %v2912_v16 }
 0x22a   : > { %v2958_v34 = vadd.f32 -0.14207031, %v2957_v53  ;;  %v3002_v23 = vmul.f32 %v3001_v57, %v6225_v15  ;;  %v2824_v13 = vadd.f32 %v2823_v14, %v6076_v52  ;;  %v2869_v56 = vmul.f32 %v2868_v60, %v6128_v59 }
 0x22b   : > { %v2800_v42 = vor.u32 %v7001_v58, %v2798_v39  ;;  %vm2889_vm8 = vcmp.eq.s32.totalorder %v5990_v33, inf  ;;  %v3047_v39 = vmul.f32 %v3046_v8, %v6259_v17  ;;  %v3090_v5 = vmul.f32 0.002785687, %v6321_v55  ;;  %v7012_v33 = vld [vmem:[#allocation28_spill] sm:$0xff] }
 0x22c   : > { %vm2880_vm12 = vcmp.eq.f32.partialorder %v5950_v61, 0.0  ;;  %v2914_v49 = vmul.f32 %v2913_v31, %v6157_v51  ;;  %v2959_v45 = vmul.f32 %v2958_v34, %v6191_v2  ;;  %v3003_v50 = vadd.f32 0.1064488, %v3002_v23  ;;  %v6351_v31 = vld [vmem:[%s4627_s25 + $0x8] sm:$0xff] }
 0x22d   : > { %v6342_v52 = vsel %vm6928_vm7, 2.3561945, %v6986_v41  ;;  %v2826_v59 = vsub.f32 1.5707964, %v2824_v13  ;;  %v2870_v16 = vmul.f32 %v2869_v56, %v6111_v10  ;;  %v3048_v53 = vadd.f32 -0.074975304, %v3047_v39 }
 0x22e   : > { %7002 = vst [vmem:[#allocation48_spill] sm:$0xff] %v6342_v52  ;;  %v3091_v57 = vadd.f32 -0.015866, %v3090_v5  ;;  %v2915_v14 = vadd.f32 -0.33333147, %v2914_v49  ;;  %v3004_v8 = vmul.f32 %v3003_v50, %v6225_v15  ;;  %v3130_v58 = vsel %vm2746_vm15, %v2800_v42, 0.0 }
 0x22f   : > { %v2960_v60 = vadd.f32 0.19993454, %v2959_v45  ;;  %v2827_v41 = vsel %vm2825_vm9, %v2826_v59, %v2824_v13  ;;  %v2871_v34 = vadd.f32 %v2870_v16, %v6111_v10  ;;  %v3049_v23 = vmul.f32 %v3048_v53, %v6259_v17  ;;  %3138 = vst [vmem:[%s6364_s2] sm:$0xff] %v3130_v58  ;;  %v7011_v39 = vld [vmem:[#allocation34_spill] sm:$0xff]  ;;  %v6448_v59 = vld [vmem:[%s4627_s25 + $0x10] sm:$0xff] }
 0x230   : > { %v3092_v56 = vmul.f32 %v3091_v57, %v6321_v55  ;;  %v2829_v37 = vsub.f32 3.1415927, %v2827_v41  ;;  %v2916_v42 = vmul.f32 %v2915_v14, %v6157_v51  ;;  %vm2936_vm7 = vcmp.eq.s32.totalorder %v6020_v21, inf }
 0x231   : > { %v2961_v10 = vmul.f32 %v2960_v60, %v6191_v2  ;;  %v3005_v13 = vadd.f32 -0.14207031, %v3004_v8  ;;  %v2873_v5 = vsub.f32 1.5707964, %v2871_v34  ;;  %vm2927_vm15 = vcmp.eq.f32.partialorder %v5952_v6, 0.0 }
 0x232   : > { %vm2966_vm9 = vcmp.gt.f32.partialorder %v6044_v22, %v6041_v29  ;;  %v3050_v51 = vadd.f32 0.1064488, %v3049_v23  ;;  %v3093_v49 = vadd.f32 0.04247222, %v3092_v56  ;;  %v6387_v45 = vmul.f32 %v6351_v31, %v5898_v11 }
 0x233   : > { %v2830_v50 = vsel %vm2828_vm13, %v2829_v37, %v2827_v41  ;;  %v2917_v16 = vmul.f32 %v2916_v42, %v6143_v12  ;;  %v2962_v53 = vadd.f32 -0.33333147, %v2961_v10  ;;  %v3006_v57 = vmul.f32 %v3005_v13, %v6225_v15  ;;  %v7010_v10 = vld [vmem:[#allocation43_spill] sm:$0xff] }
 0x234   : > { %vm2748_vm6 = vcmp.le.f32.partialorder %v6032_v18, 0.0001  ;;  %v2834_v14 = vsel %vm2833_vm11, %v6068_v35, %v2830_v50  ;;  %v2874_v19 = vsel %vm2872_vm4, %v2873_v5, %v2871_v34  ;;  %vm2976_vm13 = vcmp.ne.f32.partialorder %v5908_v48, %v5908_v48 }
 0x235   : > { %vm2977_vm0 = vcmp.ne.f32.partialorder %v5954_v32, %v5954_v32  ;;  %v3051_v9 = vmul.f32 %v3050_v51, %v6259_v17  ;;  %v3094_v60 = vmul.f32 %v3093_v49, %v6321_v55  ;;  %v2838_v8 = vsel %vm6378_vm3, nan, %v2834_v14  ;;  %vm6429_vm3 = vmor %vm2882_vm10, %vm2883_vm1 }
 0x236   : > { %v2876_v58 = vsub.f32 3.1415927, %v2874_v19  ;;  %v2918_v35 = vadd.f32 %v2917_v16, %v6143_v12  ;;  %v2963_v41 = vmul.f32 %v2962_v53, %v6191_v2  ;;  %vm2983_vm11 = vcmp.eq.s32.totalorder %v6044_v22, inf  ;;  %v6571_v22 = vld [vmem:[%s4627_s25 + $0x38] sm:$0xff] }
 0x237   : > { %v2844_v34 = vsel %vm6395_vm5, %v6085_v24, %v2838_v8  ;;  %vm2974_vm4 = vcmp.eq.f32.partialorder %v5954_v32, 0.0  ;;  %v3007_v2 = vadd.f32 0.19993454, %v3006_v57  ;;  %v3052_v23 = vadd.f32 -0.14207031, %v3051_v9  ;;  %v7016_v9 = vld [vmem:[#allocation33_spill] sm:$0xff] }
 0x238   : > { %v3095_v56 = vadd.f32 -0.074975304, %v3094_v60  ;;  %v2845_v37 = vand.u32 2147483647, %v2844_v34  ;;  %v2877_v24 = vsel %vm2875_vm14, %v2876_v58, %v2874_v19  ;;  %vm7009_vm5 = vcmp.eq.s32.totalorder %v5987_v30, inf  ;;  %v7015_v19 = vld [vmem:[#allocation32_spill] sm:$0xff] }
 0x239   : > { %vm2890_vm2 = vmand %vm7009_vm5, %vm2889_vm8  ;;  %v2920_v42 = vsub.f32 1.5707964, %v2918_v35  ;;  %v2964_v13 = vmul.f32 %v2963_v41, %v7010_v10  ;;  %v2881_v5 = vsel %vm2880_vm12, %v7011_v39, %v2877_v24  ;;  %v3008_v51 = vmul.f32 %v3007_v2, %v6225_v15  ;;  %v7017_v60 = vld [vmem:[#allocation35_spill] sm:$0xff]  ;;  %7043 = vst [vmem:[#allocation28_spill] sm:$0xff] %v6571_v22 }
 0x23a   : > { %v3053_v49 = vmul.f32 %v3052_v23, %v6259_v17  ;;  %v3096_v50 = vmul.f32 %v3095_v56, %v6321_v55  ;;  %vm2749_vm14 = vcmp.le.f32.partialorder %v7012_v33, 0.0001  ;;  %v7013_v30 = vand.u32 2147483648, %v5947_v25  ;;  %v7022_v23 = vld [vmem:[#allocation25_spill] sm:$0xff]  ;;  %v7023_v56 = vld [vmem:[#allocation27_spill] sm:$0xff] }
 0x23b   : > { %v2885_v53 = vsel %vm6429_vm3, nan, %v2881_v5  ;;  %vm7014_vm12 = vcmp.gt.f32.partialorder %v6020_v21, %v6008_v27  ;;  %v2965_v14 = vadd.f32 %v2964_v13, %v7010_v10  ;;  %vm3013_vm8 = vcmp.gt.f32.partialorder %v7016_v9, %v7015_v19  ;;  %v6498_v21 = vld [vmem:[%s4627_s25 + $0x18] sm:$0xff] }
 0x23c   : > { %v2847_v16 = vor.u32 %v7013_v30, %v2845_v37  ;;  %v2921_v57 = vsel %vm7014_vm12, %v2920_v42, %v2918_v35  ;;  %v2891_v8 = vsel %vm2890_vm2, %v7017_v60, %v2885_v53  ;;  %v3009_v41 = vadd.f32 -0.33333147, %v3008_v51 }
 0x23d   : > { %v2923_v58 = vsub.f32 3.1415927, %v2921_v57  ;;  %v3054_v34 = vadd.f32 0.19993454, %v3053_v49  ;;  %v2892_v2 = vand.u32 2147483647, %v2891_v8  ;;  %vm7018_vm1 = vcmp.ne.f32.partialorder %v5952_v6, %v5952_v6 }
 0x23e   : > { %vm7019_vm10 = vcmp.ne.f32.partialorder %v5906_v7, %v5906_v7  ;;  %v2967_v12 = vsub.f32 1.5707964, %v2965_v14  ;;  %v3097_v37 = vadd.f32 0.1064488, %v3096_v50  ;;  %v6479_v24 = vmul.f32 %v6448_v59, %v5904_v62  ;;  %v7032_v49 = vld [vmem:[#allocation36_spill] sm:$0xff] }
 0x23f   : > { %vm6469_vm3 = vmor %vm7019_vm10, %vm7018_vm1  ;;  %vm7024_vm12 = vcmp.lt.f32.partialorder %v5906_v7, 0.0  ;;  %vm7025_vm1 = vcmp.eq.s32.totalorder %v6008_v27, inf  ;;  %v3010_v13 = vmul.f32 %v3009_v41, %v6225_v15  ;;  %vm3029_vm2 = vcmp.eq.s32.totalorder %v7015_v19, inf  ;;  %v7030_v27 = vld [vmem:[#allocation29_spill] sm:$0xff] }
 0x240   : > { %v2924_v42 = vsel %vm7024_vm12, %v2923_v58, %v2921_v57  ;;  %vm6487_vm10 = vmand %vm7025_vm1, %vm2936_vm7  ;;  %vm3030_vm5 = vcmp.eq.s32.totalorder %v7016_v9, inf  ;;  %v3055_v39 = vmul.f32 %v3054_v34, %v6259_v17  ;;  %vm7028_vm12 = vcmp.le.f32.partialorder %v6026_v40, 0.0001  ;;  %v6527_v58 = vld [vmem:[%s4627_s25 + $0x28] sm:$0xff]  ;;  %v6610_v34 = vld [vmem:[%s4634_s20 + $0x18] sm:$0xff] }
 0x241   : > { %v3131_v5 = vsel %vm7028_vm12, %v2847_v16, 0.0  ;;  %vm2750_vm7 = vcmp.le.f32.partialorder %v7030_v27, 0.0001  ;;  %v7031_v15 = vand.u32 2147483648, %v5950_v61  ;;  %v2928_v50 = vsel %vm2927_vm15, %v7032_v49, %v2924_v42  ;;  %v6521_v16 = vld [vmem:[%s4627_s25 + $0x20] sm:$0xff]  ;;  %7033 = vst [vmem:[#allocation43_spill] sm:$0xff] %v6527_v58  ;;  %vm6538_vm15 = vmor %vm2976_vm13, %vm2977_vm0 }
 0x242   : > { %v2968_v40 = vsel %vm2966_vm9, %v2967_v12, %v2965_v14  ;;  %vm3021_vm1 = vcmp.eq.f32.partialorder %v7023_v56, 0.0  ;;  %vm3060_vm12 = vcmp.gt.f32.partialorder %v6124_v54, %v6121_v43  ;;  %v3098_v30 = vmul.f32 %v3097_v37, %v6321_v55  ;;  %3139 = vst [vmem:[%s6364_s2 + $0x8] sm:$0xff] %v3131_v5  ;;  %v7034_v14 = vld [vmem:[#allocation37_spill] sm:$0xff]  ;;  %v6568_v5 = vld [vmem:[%s4627_s25 + $0x30] sm:$0xff] }
 0x243   : > { %v2894_v51 = vor.u32 %v7031_v15, %v2892_v2  ;;  %v2932_v53 = vsel %vm6469_vm3, nan, %v2928_v50  ;;  %v2970_v57 = vsub.f32 3.1415927, %v2968_v40  ;;  %v3011_v60 = vmul.f32 %v3010_v13, %v6211_v44  ;;  %v7037_v2 = vld [vmem:[#allocation26_spill] sm:$0xff]  ;;  %7042 = vst [vmem:[#allocation34_spill] sm:$0xff] %v6568_v5 }
 0x244   : > { %v3056_v8 = vadd.f32 -0.33333147, %v3055_v39  ;;  %v2938_v41 = vsel %vm6487_vm10, %v7034_v14, %v2932_v53  ;;  %vm3071_vm3 = vcmp.ne.f32.partialorder %v5970_v63, %v5970_v63  ;;  %v3099_v35 = vadd.f32 -0.14207031, %v3098_v30 }
 0x245   : > { %v3132_v12 = vsel %vm2748_vm6, %v2894_v51, 0.0  ;;  %v6550_v37 = vmul.f32 %v6498_v21, %v5906_v7  ;;  %v2939_v42 = vand.u32 2147483647, %v2938_v41  ;;  %vm7038_vm13 = vcmp.lt.f32.partialorder %v5908_v48, 0.0 }
 0x246   : > { %v2971_v10 = vsel %vm7038_vm13, %v2970_v57, %v2968_v40  ;;  %vm7039_vm0 = vcmp.eq.s32.totalorder %v6041_v29, inf  ;;  %v3012_v18 = vadd.f32 %v3011_v60, %v6211_v44  ;;  %v3057_v39 = vmul.f32 %v3056_v8, %v6259_v17  ;;  %3140 = vst [vmem:[%s6364_s2 + $0x10] sm:$0xff] %v3132_v12  ;;  %v7044_v29 = vld [vmem:[#allocation38_spill] sm:$0xff]  ;;  %v6598_v57 = vld [vmem:[%s4634_s20] sm:$0xff]  ;;  %v7046_v8 = vld [vmem:[#allocation39_spill] sm:$0xff] }
 0x247   : > { %vm6558_vm10 = vmand %vm7039_vm0, %vm2983_vm11  ;;  %vm3076_vm6 = vcmp.eq.s32.totalorder %v6121_v43, inf  ;;  %vm3077_vm9 = vcmp.eq.s32.totalorder %v6124_v54, inf  ;;  %v2975_v15 = vsel %vm2974_vm4, %v7044_v29, %v2971_v10  ;;  %vm3068_vm11 = vcmp.eq.f32.partialorder %v5970_v63, 0.0  ;;  %v6601_v60 = vld [vmem:[%s4634_s20 + $0x8] sm:$0xff] }
 0x248   : > { %v3100_v44 = vmul.f32 %v3099_v35, %v6321_v55  ;;  %v6580_v17 = vmul.f32 %v6521_v16, %v5908_v48  ;;  %v6584_v51 = vmul.f32 %v6527_v58, %v7022_v23  ;;  %v7045_v49 = vand.u32 2147483648, %v5952_v6  ;;  %v6607_v35 = vld [vmem:[%s4634_s20 + $0x10] sm:$0xff]  ;;  %v7047_v10 = vld [vmem:[#allocation30_spill] sm:$0xff]  ;;  %v7057_v58 = vld [vmem:[#allocation41_spill] sm:$0xff] }
 0x249   : > { %v2979_v40 = vsel %vm6538_vm15, nan, %v2975_v15  ;;  %v3014_v30 = vsub.f32 1.5707964, %v3012_v18  ;;  %v3058_v53 = vmul.f32 %v3057_v39, %v6236_v47  ;;  %v6614_v12 = vmul.f32 %v6568_v5, %v7037_v2  ;;  %v7056_v5 = vld [vmem:[#allocation40_spill] sm:$0xff] }
 0x24a   : > { %v2941_v50 = vor.u32 %v7045_v49, %v2939_v42  ;;  %v2985_v14 = vsel %vm6558_vm10, %v7046_v8, %v2979_v40  ;;  %v3101_v41 = vadd.f32 0.19993454, %v3100_v44  ;;  %v6618_v42 = vmul.f32 %v6571_v22, %v6053_v46  ;;  %v6628_v44 = vld [vmem:[%s4634_s20 + $0x20] sm:$0xff]  ;;  %v6631_v49 = vld [vmem:[%s4634_s20 + $0x28] sm:$0xff]  ;;  %vm6668_vm10 = vmand %vm3029_vm2, %vm3030_vm5 }
 0x24b   : > { %vm2751_vm4 = vcmp.le.f32.partialorder %v7047_v10, 0.0001  ;;  %v2986_v13 = vand.u32 2147483647, %v2985_v14  ;;  %v3015_v39 = vsel %vm3013_vm8, %v3014_v30, %v3012_v18  ;;  %v3059_v29 = vadd.f32 %v3058_v53, %v6236_v47  ;;  %v3161_v53 = vld [vmem:[%s4634_s20 + $0x38] sm:$0xff] }
 0x24c   : > { %v3133_v15 = vsel %vm2749_vm14, %v2941_v50, 0.0  ;;  %v3017_v40 = vsub.f32 3.1415927, %v3015_v39  ;;  %v3102_v8 = vmul.f32 %v3101_v41, %v6321_v55  ;;  %v3170_v14 = vmul.f32 %v6598_v57, %v5859_v20 }
 0x24d   : > { %3141 = vst [vmem:[%s6364_s2 + $0x18] sm:$0xff] %v3133_v15  ;;  %v3171_v18 = vmul.f32 %v6601_v60, %v5947_v25  ;;  %v7048_v47 = vand.u32 2147483648, %v5954_v32  ;;  %vm7049_vm14 = vcmp.ne.f32.partialorder %v7023_v56, %v7023_v56  ;;  %vm7050_vm8 = vcmp.ne.f32.partialorder %v7022_v23, %v7022_v23 }
 0x24e   : > { %vm6651_vm15 = vmor %vm7050_vm8, %vm7049_vm14  ;;  %v3061_v30 = vsub.f32 1.5707964, %v3059_v29  ;;  %vm3107_vm13 = vcmp.gt.f32.partialorder %v6181_v28, %v6178_v1  ;;  %v3172_v41 = vmul.f32 %v6607_v35, %v5950_v61  ;;  %vm7053_vm0 = vcmp.lt.f32.partialorder %v7022_v23, 0.0 }
 0x24f   : > { %v2988_v33 = vor.u32 %v7048_v47, %v2986_v13  ;;  %v3173_v13 = vmul.f32 %v6610_v34, %v5952_v6  ;;  %v3018_v15 = vsel %vm7053_vm0, %v3017_v40, %v3015_v39  ;;  %v3103_v52 = vadd.f32 -0.33333147, %v3102_v8  ;;  %v7058_v39 = vld [vmem:[#allocation31_spill] sm:$0xff] }
 0x250   : > { %v3174_v36 = vmul.f32 %v6628_v44, %v5954_v32  ;;  %v3175_v22 = vmul.f32 %v6631_v49, %v7023_v56  ;;  %vm2752_vm14 = vcmp.le.f32.partialorder %v7056_v5, 0.0001  ;;  %v3022_v9 = vsel %vm3021_vm1, %v7057_v58, %v3018_v15 }
 0x251   : > { %v3062_v19 = vsel %vm3060_vm12, %v3061_v30, %v3059_v29  ;;  %vm3117_vm2 = vcmp.ne.f32.partialorder %v6053_v46, %v6053_v46  ;;  %vm3118_vm5 = vcmp.ne.f32.partialorder %v7058_v39, %v7058_v39  ;;  %v3134_v40 = vsel %vm2750_vm7, %v2988_v33, 0.0  ;;  %v7059_v33 = vld [vmem:[#allocation42_spill] sm:$0xff] }
 0x252   : > { %v3176_v8 = vmul.f32 %v6636_v3, %v5970_v63  ;;  %v3026_v58 = vsel %vm6651_vm15, nan, %v3022_v9  ;;  %v3064_v29 = vsub.f32 3.1415927, %v3062_v19  ;;  %v3104_v30 = vmul.f32 %v3103_v52, %v6321_v55  ;;  %3142 = vst [vmem:[%s6364_s2 + $0x20] sm:$0xff] %v3134_v40 }
 0x253   : > { %vm3123_vm1 = vcmp.eq.s32.totalorder %v6178_v1, inf  ;;  %vm3124_vm12 = vcmp.eq.s32.totalorder %v6181_v28, inf  ;;  %v3177_v27 = vmul.f32 %v3161_v53, %v7058_v39  ;;  %v3032_v15 = vsel %vm6668_vm10, %v7059_v33, %v3026_v58 }
 0x254   : > { %vm7060_vm7 = vcmp.ne.f32.partialorder %v7037_v2, %v7037_v2  ;;  %vm3115_vm15 = vcmp.eq.f32.partialorder %v7058_v39, 0.0  ;;  %v3178_v52 = vsub.f32 %v6316_v38, %v3170_v14  ;;  %v3179_v50 = vsub.f32 %v6387_v45, %v3171_v18  ;;  %v7064_v14 = vld [vmem:[#allocation44_spill] sm:$0xff] }
 0x255   : > { %vm6714_vm8 = vmor %vm7060_vm7, %vm3071_vm3  ;;  %v3180_v47 = vsub.f32 %v6479_v24, %v3172_v41  ;;  %v3033_v9 = vand.u32 2147483647, %v3032_v15  ;;  %vm7063_vm0 = vcmp.lt.f32.partialorder %v7037_v2, 0.0  ;;  %v3105_v58 = vmul.f32 %v3104_v30, %v6307_v4  ;;  %v7077_v15 = vld [vmem:[#allocation48_spill] sm:$0xff] }
 0x256   : > { %v3065_v40 = vsel %vm7063_vm0, %v3064_v29, %v3062_v19  ;;  %vm3078_vm3 = vmand %vm3076_vm6, %vm3077_vm9  ;;  %v3181_v38 = vsub.f32 %v6550_v37, %v3173_v13  ;;  %v3182_v24 = vsub.f32 %v6580_v17, %v3174_v36  ;;  %v3183_v18 = vsub.f32 %v6584_v51, %v3175_v22  ;;  %3186 = vst [vmem:[%s6696_s0] sm:$0xff] %v3178_v52  ;;  %v7066_v36 = vld [vmem:[#allocation45_spill] sm:$0xff] }
 0x257   : > { %v3069_v45 = vsel %vm3068_vm11, %v7064_v14, %v3065_v40  ;;  %v3184_v54 = vsub.f32 %v6614_v12, %v3176_v8  ;;  %3187 = vst [vmem:[%s6696_s0 + $0x8] sm:$0xff] %v3179_v50  ;;  %3188 = vst [vmem:[%s6696_s0 + $0x10] sm:$0xff] %v3180_v47  ;;  %v7065_v43 = vand.u32 2147483648, %v7023_v56  ;;  %v3106_v13 = vadd.f32 %v3105_v58, %v6307_v4 }
 0x258   : > { %v3073_v37 = vsel %vm6714_vm8, nan, %v3069_v45  ;;  %v3185_v19 = vsub.f32 %v6618_v42, %v3177_v27  ;;  %3189 = vst [vmem:[%s6696_s0 + $0x18] sm:$0xff] %v3181_v38  ;;  %3190 = vst [vmem:[%s6696_s0 + $0x20] sm:$0xff] %v3182_v24  ;;  %v3194_v17 = vmul.f32 %v6598_v57, %v5857_v0  ;;  %v3195_v51 = vmul.f32 %v6601_v60, %v5898_v11 }
 0x259   : > { %v3035_v41 = vor.u32 %v7065_v43, %v3033_v9  ;;  %v3079_v22 = vsel %vm3078_vm3, %v7066_v36, %v3073_v37  ;;  %3191 = vst [vmem:[%s6696_s0 + $0x28] sm:$0xff] %v3183_v18  ;;  %3192 = vst [vmem:[%s6696_s0 + $0x30] sm:$0xff] %v3184_v54  ;;  %v3196_v12 = vmul.f32 %v6607_v35, %v5904_v62  ;;  %v3108_v29 = vsub.f32 1.5707964, %v3106_v13 }
 0x25a   : > { %v3080_v8 = vand.u32 2147483647, %v3079_v22  ;;  %3193 = vst [vmem:[%s6696_s0 + $0x38] sm:$0xff] %v3185_v19  ;;  %v3197_v42 = vmul.f32 %v6610_v34, %v5906_v7  ;;  %v3198_v0 = vmul.f32 %v6628_v44, %v5908_v48  ;;  %v3199_v11 = vmul.f32 %v6631_v49, %v7022_v23  ;;  %vm6795_vm9 = vmor %vm3117_vm2, %vm3118_vm5  ;;  %v7076_v49 = vld [vmem:[#allocation47_spill] sm:$0xff] }
 0x25b   : > { %v3135_v4 = vsel %vm2751_vm4, %v3035_v41, 0.0  ;;  %v3200_v62 = vmul.f32 %v6636_v3, %v7037_v2  ;;  %v3201_v57 = vmul.f32 %v3161_v53, %v6053_v46  ;;  %v7067_v60 = vand.u32 2147483648, %v5970_v63  ;;  %vm6813_vm11 = vmand %vm3123_vm1, %vm3124_vm12 }
 0x25c   : > { %3143 = vst [vmem:[%s6364_s2 + $0x28] sm:$0xff] %v3135_v4  ;;  %v3109_v7 = vsel %vm3107_vm13, %v3108_v29, %v3106_v13  ;;  %v3202_v34 = vmul.f32 %v6292_v26, %v5859_v20  ;;  %v3203_v48 = vmul.f32 %v6351_v31, %v5947_v25  ;;  %v3204_v3 = vmul.f32 %v6448_v59, %v5950_v61  ;;  %v7070_v61 = vld [vmem:[#allocation43_spill] sm:$0xff]  ;;  %v7072_v31 = vld [vmem:[#allocation28_spill] sm:$0xff] }
 0x25d   : > { %v3082_v35 = vor.u32 %v7067_v60, %v3080_v8  ;;  %v3111_v23 = vsub.f32 3.1415927, %v3109_v7  ;;  %v3205_v2 = vmul.f32 %v6498_v21, %v5952_v6  ;;  %v3206_v10 = vmul.f32 %v6521_v16, %v5954_v32  ;;  %v7071_v32 = vld [vmem:[#allocation34_spill] sm:$0xff] }
 0x25e   : > { %v3207_v6 = vmul.f32 %v7070_v61, %v7023_v56  ;;  %v3208_v26 = vmul.f32 %v7071_v32, %v5970_v63  ;;  %v3209_v59 = vmul.f32 %v7072_v31, %v7058_v39  ;;  %vm7073_vm6 = vcmp.lt.f32.partialorder %v6053_v46, 0.0 }
 0x25f   : > { %v3136_v25 = vsel %vm2752_vm14, %v3082_v35, 0.0  ;;  %v3112_v21 = vsel %vm7073_vm6, %v3111_v23, %v3109_v7  ;;  %v3210_v5 = vadd.f32 %v3202_v34, %v3194_v17  ;;  %v3211_v56 = vadd.f32 %v3203_v48, %v3195_v51 }
 0x260   : > { %3144 = vst [vmem:[%s6364_s2 + $0x30] sm:$0xff] %v3136_v25  ;;  %v3212_v44 = vadd.f32 %v3204_v3, %v3196_v12  ;;  %v3116_v63 = vsel %vm3115_vm15, %v7076_v49, %v3112_v21  ;;  %v3213_v53 = vadd.f32 %v3205_v2, %v3197_v42  ;;  %v3214_v46 = vadd.f32 %v3206_v10, %v3198_v0 }
 0x261   : > { %v3215_v30 = vadd.f32 %v3207_v6, %v3199_v11  ;;  %v3120_v1 = vsel %vm6795_vm9, nan, %v3116_v63  ;;  %v3128_v28 = vand.u32 2147483648, %v7058_v39  ;;  %v3216_v27 = vadd.f32 %v3208_v26, %v3200_v62  ;;  %3218 = vst [vmem:[%s547_s23] sm:$0xff] %v3210_v5  ;;  %3219 = vst [vmem:[%s547_s23 + $0x8] sm:$0xff] %v3211_v56  ;;  %v7078_v39 = vld [vmem:[#allocation46_spill] sm:$0xff] }
 0x262   : > { %v3217_v33 = vadd.f32 %v3209_v59, %v3201_v57  ;;  %3220 = vst [vmem:[%s547_s23 + $0x10] sm:$0xff] %v3212_v44  ;;  %v3126_v55 = vsel %vm6813_vm11, %v7077_v15, %v3120_v1  ;;  %3221 = vst [vmem:[%s547_s23 + $0x18] sm:$0xff] %v3213_v53  ;;  %vm2753_vm4 = vcmp.le.f32.partialorder %v7078_v39, 0.0001 }
 0x263   : > { %3222 = vst [vmem:[%s547_s23 + $0x20] sm:$0xff] %v3214_v46  ;;  %3223 = vst [vmem:[%s547_s23 + $0x28] sm:$0xff] %v3215_v30  ;;  %v3127_v52 = vand.u32 2147483647, %v3126_v55 }
 0x264   : > { %3224 = vst [vmem:[%s547_s23 + $0x30] sm:$0xff] %v3216_v27  ;;  %3225 = vst [vmem:[%s547_s23 + $0x38] sm:$0xff] %v3217_v33 }
 0x265   : > { %v3129_v50 = vor.u32 %v3128_v28, %v3127_v52 }
 0x267   : > { %v3137_v47 = vsel %vm2753_vm4, %v3129_v50, 0.0 }
 0x268   : > { %3145 = vst [vmem:[%s6364_s2 + $0x38] sm:$0xff] %v3137_v47 }
 0x269   : > { %4232 = shalt.err (!%p4229_p0)
}
 0x26a   : > { %s4233_s2 = scalar_lea.hbm %s6833_s15, 1024  ;;  %s4237_s12 = scalar_lea.hbm %s6887_s8, 2048 }
 0x26b   : > { %p4234_p2 = scmp.ne.s32.totalorder %s6833_s15, %s4233_s2  ;;  %p4238_p8 = scmp.lt.s32.totalorder %s6833_s15, %s6887_s8 }
 0x26c   : > { %p4239_p5 = scmp.lt.s32.totalorder %s4237_s12, %s4233_s2 }
 0x26d   : > { %p4235_p3 = pnand %p4234_p2, %p7079_p10 }
 0x26e   : > { %p4240_p13 = por %p4239_p5, %p4238_p8 }
 0x26f   : > { %p4236_p7 = pneg %p4235_p3 }
 0x271   : > { %p4241_p9 = pnand %p4240_p13, %p4236_p7 }
 0x273   : > { %4244 = shalt.err (!%p4241_p9)
}
 0x274   : > { %s4319_s0 = smov 128   ;;  %s4320_s11 = smov 8  }
 0x275   : > { %3988 = dma.vmem_to_hbm [thread:$0]  (%p7079_p10), %s6835_s21, 1024, %s6833_s15, %s3237_s9, %s4319_s0, %s4319_s0, %s4320_s11  }
 0x276 PF: > { %s3289_s16 = sand.u32 1, %s4283_s27   ;;  %p7080_p11 = scmp.ne.s32.totalorder %s6942_s18, 0 }
 0x277   : > { %p7081_p12 = scmp.ge.s32.totalorder %s4295_s30, 2  ;;  %s3290_s23 = scalar_lea.sflag [#allocation4], %s3289_s16 }
 0x279   : > { %p3995_p4 = pnand %p7081_p12, %p7080_p11 }
 0x27b   : > { %p3996_p6 = pneg %p3995_p4 }
 0x27d   : > { %4278 = dma.done.wait (%p3996_p6), %s3290_s23, 1024  }
 0x27e   : > { %4280 = vsyncadd (%p3996_p6), %s3290_s23, 4294966272  ;;  %s7082_s30 = sld [smem:[#allocation23_spill]]  ;;  %s7085_s27 = smov %s4287_s28 }
 0x27f   : > { %s7083_s14 = sld [smem:[#allocation22_spill]] }
 0x280   : > { %s7084_s29 = sld [smem:[#allocation24_spill]] }
 0x284   : > { %p29_p1 = scmp.ge.s32.totalorder %s7082_s30, 4  }
 0x285   : > { %s7086_s28 = smov %s7083_s14 }
 0x286   :  { %31 = sbr.rel (!%p29_p1) target bundleno = 15 (0xf), region = 182 }
 0x28b   :  { %3295 = vsyncpa [#allocation3], 1 }
 0x28c   :  { %3297 = vsyncpa [#allocation3 + $0x1], 1 }
 0x28d   :  { %3298 = vsyncpa [#allocation8], 1 }
 0x28e   :  { %3300 = vsyncpa [#allocation8 + $0x1], 1 }
 0x28f   :  { %3301 = vsyncpa [#allocation11], 1 }
 0x290   :  { %3303 = vsyncpa [#allocation11 + $0x1], 1 }
 0x291   :  { %3304 = vsyncpa [#allocation4], 1 }
 0x292   :  { %3306 = vsyncpa [#allocation4 + $0x1], 1 }
 0x293   :  { %3307 = vsyncpa [#allocation5], 1 }
 0x294   :  { %3309 = vsyncpa [#allocation5 + $0x1], 1 }

// kernel: custom-call
= control target key start
LH: loop header
LB: loop body
LE: loop exit
PB: predicated region body
PF: predicated region fallthrough
CT: control target
= control target key end

     0   :  { %2 = vsyncpa [#allocation0], 0  ;;  %s47_s0 = inlined_call_operand.hbm [shape: c64[128,128], index: 0, kind: input, shape index: {}]   ;;  %s48_s1 = inlined_call_operand.vmem [shape: f32[128,128], index: 1, kind: output, shape index: {}]  }
   0x1   :  { %s3_s8 = sshll.u32 %s48_s1, 4  ;;  %s4_s8 = int_to_ptr.vmem [resolvable:$true] %s3_s8 }
   0x2   :  { %s17_s9 = scalar_lea.vmem %s4_s8, 2048  ;;  %p22_p1 = scmp.lt.s32.totalorder %s4_s8, %s4_s8 }
   0x3   :  { %p18_p0 = scmp.ne.s32.totalorder %s4_s8, %s17_s9  ;;  %p23_p2 = scmp.lt.s32.totalorder %s17_s9, %s17_s9 }
   0x5   :  { %p24_p3 = por %p23_p2, %p22_p1 }
   0x7   :  { %p25_p4 = pnand %p24_p3, %p18_p0 }
   0x9   :  { %28 = shalt.err (!%p25_p4)  }
   0xa   :  { %6 = dma.hbm_to_vmem [thread:$0]  %s47_s0, 2048, %s4_s8, [#allocation0] }
   0xb   :  { %29 = dma.done.wait [#allocation0], 2048  }
   0xc   :  { %30 = vsyncadd [#allocation0], 4294965248 }
   0xd   :  { %8 = vsyncpa [#allocation0], 1 }

// kernel: custom-call.1
= control target key start
LH: loop header
LB: loop body
LE: loop exit
PB: predicated region body
PF: predicated region fallthrough
CT: control target
= control target key end

     0   :  { %s51_s0 = inlined_call_operand.hbm [shape: c64[128,128], index: 0, kind: input, shape index: {}]   ;;  %s52_s1 = inlined_call_operand.vmem [shape: f32[128,128], index: 1, kind: output, shape index: {}]  }
   0x1   :  { %s2_s8 = scalar_lea.hbm %s51_s0, 2048 }
   0x2   :  { %3 = vsyncpa [#allocation0], 0  ;;  %s4_s11 = sshll.u32 %s52_s1, 4  ;;  %s5_s11 = int_to_ptr.vmem [resolvable:$true] %s4_s11 }
   0x3   :  { %s20_s12 = scalar_lea.vmem %s5_s11, 2048  ;;  %p25_p1 = scmp.lt.s32.totalorder %s5_s11, %s5_s11 }
   0x4   :  { %p21_p0 = scmp.ne.s32.totalorder %s5_s11, %s20_s12  ;;  %p26_p2 = scmp.lt.s32.totalorder %s20_s12, %s20_s12 }
   0x6   :  { %p27_p3 = por %p26_p2, %p25_p1 }
   0x8   :  { %p28_p4 = pnand %p27_p3, %p21_p0 }
   0xa   :  { %31 = shalt.err (!%p28_p4)  }
   0xb   :  { %7 = dma.hbm_to_vmem [thread:$0]  %s2_s8, 2048, %s5_s11, [#allocation0] }
   0xc   :  { %33 = dma.done.wait [#allocation0], 2048  }
   0xd   :  { %34 = vsyncadd [#allocation0], 4294965248 }
   0xe   :  { %9 = vsyncpa [#allocation0], 1 }

</bundles_post_ra>
